<compile_context>
chip_gen: v6e
topology: v6e:2x2x1
jax: 0.10.0
libtpu: 0.0.40
codegen_flags: <defaults>
</compile_context>

<pallas_src>
import functools

import jax
import jax.numpy as jnp
import numpy as np
from jax.experimental import pallas as pl
from jax.experimental.pallas import tpu as pltpu


# ---------------------------------------------------------------------------
# Fused bottleneck kernel: one (batch, row-strip) tile per grid step
# ---------------------------------------------------------------------------
def _bottleneck_kernel(x_ref, w1_ref, s1_ref, b1_ref,
                       w2_ref, s2_ref, b2_ref,
                       w3_ref, s3_ref, b3_ref,
                       o_ref, y1p_ref, *, W, th):
    """All channel dims pre-padded to multiples of 128 (lane-dense).

    x_ref  : (1, H+2, W, Cp)  bf16  spatially row-padded input image
    w1_ref : (Cp, Cm)         bf16
    w2_ref : (3, 3, Cm, Cm)   bf16  [dy, dx, cin, cout]
    w3_ref : (Cm, Cp)         bf16
    s*_ref/b*_ref : (1, C)    f32   folded BN scale/shift
    o_ref  : (1, th, W, Cp)   output strip
    y1p_ref: (th+2, Wpad, Cm) bf16  VMEM scratch, conv1 output + halo
    """
    Cp = x_ref.shape[-1]
    Cm = w1_ref.shape[-1]
    r = pl.program_id(1)
    r0 = pl.multiple_of(r * th, th)

    # ---- conv1 (1x1) + BN1 + ReLU on th+2 rows (incl. 1-row halo each side)
    xs = x_ref[0, pl.ds(r0, th + 2)]                          # (th+2, W, Cp)
    y1 = jnp.dot(xs.reshape((th + 2) * W, Cp), w1_ref[...],
                 preferred_element_type=jnp.float32)
    y1 = jnp.maximum(y1 * s1_ref[...] + b1_ref[...], 0.0)
    y1p_ref[:, 1:W + 1, :] = y1.reshape(th + 2, W, Cm).astype(y1p_ref.dtype)

    # Left/right halo columns must be zero (re-done each step: tiny + safe
    # under megacore partitioning of the grid).
    zcol = jnp.zeros((th + 2, 1, Cm), y1p_ref.dtype)
    y1p_ref[:, 0:1, :] = zcol
    y1p_ref[:, W + 1:W + 2, :] = zcol

    # Top/bottom image-boundary halo rows must be zero in y1 (post-BN) space.
    @pl.when(r == 0)
    def _():
        y1p_ref[0:1, 1:W + 1, :] = jnp.zeros((1, W, Cm), y1p_ref.dtype)

    @pl.when(r == pl.num_programs(1) - 1)
    def _():
        y1p_ref[th + 1:th + 2, 1:W + 1, :] = jnp.zeros((1, W, Cm),
                                                       y1p_ref.dtype)

    # ---- conv2 (3x3, stride 1, pad 1) + BN2 + ReLU: 9 K=Cm MXU calls, f32 acc
    acc = jnp.zeros((th * W, Cm), jnp.float32)
    for dy in range(3):
        for dx in range(3):
            patch = y1p_ref[dy:dy + th, dx:dx + W, :]         # (th, W, Cm)
            acc = acc + jnp.dot(patch.reshape(th * W, Cm), w2_ref[dy, dx],
                                preferred_element_type=jnp.float32)
    y2 = jnp.maximum(acc * s2_ref[...] + b2_ref[...], 0.0)

    # ---- conv3 (1x1) + BN3 + residual + ReLU, same strip -------------------
    y3 = jnp.dot(y2.astype(y1p_ref.dtype), w3_ref[...],
                 preferred_element_type=jnp.float32)
    identity = x_ref[0, pl.ds(r0 + 1, th)].reshape(th * W, Cp)
    y3 = y3 * s3_ref[...] + b3_ref[...] + identity.astype(jnp.float32)
    o_ref[0] = jnp.maximum(y3, 0.0).reshape(th, W, Cp).astype(o_ref.dtype)


# ---------------------------------------------------------------------------
# Wrapper: channel/row padding + pallas_call glue
# ---------------------------------------------------------------------------
def _round_up(n, m):
    return ((n + m - 1) // m) * m


def _pick_row_tile(H, W):
    # Largest divisor of H with th*W <= 256 rows per matmul chunk
    # (fills the 256-wide MXU M dim on v6e/v7x, keeps f32 acc modest).
    best = 1
    for th in range(1, H + 1):
        if H % th == 0 and th * W <= 256:
            best = th
    return best


def block_forward_pallas(x_nhwc, p):
    """Fused bottleneck block.  x_nhwc: (N, H, W, Cin) with Cin == out_c*4."""
    N, H, W, Cin = x_nhwc.shape
    out_c = p["w1"].shape[1]
    out4 = p["w3"].shape[1]
    assert Cin == out4, "identity add requires inChannels == outChannels*4"

    Cp = _round_up(Cin, 128)    # padded in/out channels (lane-dense)
    Cm = _round_up(out_c, 128)  # padded mid channels
    th = _pick_row_tile(H, W)
    Wp2 = _round_up(W + 2, 16)  # bf16 sublane-aligned scratch row pitch

    f32, bf16 = jnp.float32, jnp.bfloat16

    # Spatial 1-row zero pad (halo) + channel zero pad; bf16 MXU operands.
    # Shift (b*) pads with 0 so padded channels stay exactly 0 end-to-end.
    xp = jnp.pad(x_nhwc, ((0, 0), (1, 1), (0, 0), (0, Cp - Cin))).astype(bf16)
    w1 = jnp.pad(p["w1"], ((0, Cp - Cin), (0, Cm - out_c))).astype(bf16)
    s1 = jnp.pad(p["scale1"], (0, Cm - out_c)).reshape(1, Cm).astype(f32)
    b1 = jnp.pad(p["shift1"], (0, Cm - out_c)).reshape(1, Cm).astype(f32)
    w2 = jnp.pad(p["w2"], ((0, 0), (0, 0),
                           (0, Cm - out_c), (0, Cm - out_c))).astype(bf16)
    s2 = jnp.pad(p["scale2"], (0, Cm - out_c)).reshape(1, Cm).astype(f32)
    b2 = jnp.pad(p["shift2"], (0, Cm - out_c)).reshape(1, Cm).astype(f32)
    w3 = jnp.pad(p["w3"], ((0, Cm - out_c), (0, Cp - out4))).astype(bf16)
    s3 = jnp.pad(p["scale3"], (0, Cp - out4)).reshape(1, Cp).astype(f32)
    b3 = jnp.pad(p["shift3"], (0, Cp - out4)).reshape(1, Cp).astype(f32)

    const_cm = pl.BlockSpec((1, Cm), lambda n, r: (0, 0))
    const_cp = pl.BlockSpec((1, Cp), lambda n, r: (0, 0))

    out = pl.pallas_call(
        functools.partial(_bottleneck_kernel, W=W, th=th),
        out_shape=jax.ShapeDtypeStruct((N, H, W, Cp), x_nhwc.dtype),
        grid=(N, H // th),
        in_specs=[
            # x: whole padded image per batch element (block index constant
            # over the row axis -> fetched once per n, rows sliced in-kernel).
            pl.BlockSpec((1, H + 2, W, Cp), lambda n, r: (n, 0, 0, 0)),
            pl.BlockSpec((Cp, Cm), lambda n, r: (0, 0)),        # w1
            const_cm, const_cm,                                 # s1, b1
            pl.BlockSpec((3, 3, Cm, Cm), lambda n, r: (0, 0, 0, 0)),  # w2
            const_cm, const_cm,                                 # s2, b2
            pl.BlockSpec((Cm, Cp), lambda n, r: (0, 0)),        # w3
            const_cp, const_cp,                                 # s3, b3
        ],
        out_specs=pl.BlockSpec((1, th, W, Cp), lambda n, r: (n, r, 0, 0)),
        scratch_shapes=[pltpu.VMEM((th + 2, Wp2, Cm), jnp.bfloat16)],
        compiler_params=pltpu.CompilerParams(
            dimension_semantics=("parallel", "parallel"),
            vmem_limit_bytes=48 * 1024 * 1024),
    )(xp, w1, s1, b1, w2, s2, b2, w3, s3, b3)

    if Cp != out4:                      # fast path: no-op for aligned channels
        out = out[..., :out4]
    return out


# ---------------------------------------------------------------------------
# Parameter construction (deterministic, synthetic) + BN folding
# ---------------------------------------------------------------------------
def _fold_bn(gamma, beta, mean, var, bias, eps=1e-5):
    scale = gamma / jnp.sqrt(var + eps)
    shift = beta - mean * scale + bias * scale
    return scale, shift


def make_params(key, in_c, out_c, expansion=4):
    ks = jax.random.split(key, 16)
    out4 = out_c * expansion

    def nrm(k, shape, s=0.1):
        return (s * jax.random.normal(k, shape)).astype(jnp.float32)

    p = {}
    # conv1: 1x1, in_c -> out_c (stored as (Cin, Cout))
    p["w1"] = nrm(ks[0], (in_c, out_c))
    b1 = nrm(ks[1], (out_c,))
    g1, be1 = 1.0 + nrm(ks[2], (out_c,)), nrm(ks[3], (out_c,))
    m1, v1 = nrm(ks[4], (out_c,)), 0.5 + jnp.abs(nrm(ks[5], (out_c,)))
    p["scale1"], p["shift1"] = _fold_bn(g1, be1, m1, v1, b1)
    # conv2: 3x3, out_c -> out_c (HWIO)
    p["w2"] = nrm(ks[6], (3, 3, out_c, out_c))
    b2 = nrm(ks[7], (out_c,))
    g2, be2 = 1.0 + nrm(ks[8], (out_c,)), nrm(ks[9], (out_c,))
    m2, v2 = nrm(ks[10], (out_c,)), 0.5 + jnp.abs(nrm(ks[11], (out_c,)))
    p["scale2"], p["shift2"] = _fold_bn(g2, be2, m2, v2, b2)
    # conv3: 1x1, out_c -> out_c*4
    p["w3"] = nrm(ks[12], (out_c, out4))
    b3 = nrm(ks[13], (out4,))
    g3, be3 = 1.0 + nrm(ks[14], (out4,)), nrm(ks[15], (out4,))
    m3 = jnp.zeros((out4,), jnp.float32)
    v3 = jnp.ones((out4,), jnp.float32)
    p["scale3"], p["shift3"] = _fold_bn(g3, be3, m3, v3, b3)
    return p


# ---------------------------------------------------------------------------
# Pure-JAX reference (same bf16-operand / f32-accumulate numerics)
# ---------------------------------------------------------------------------
def block_forward_ref(x_nhwc, p):
    bf = jnp.bfloat16

    def conv(x, w_hwio, pad):
        return jax.lax.conv_general_dilated(
            x.astype(bf), w_hwio.astype(bf), window_strides=(1, 1),
            padding=pad, dimension_numbers=("NHWC", "HWIO", "NHWC"),
            preferred_element_type=jnp.float32)

    out_c = p["w1"].shape[1]
    y = conv(x_nhwc, p["w1"].reshape(1, 1, -1, out_c), "VALID")
    y = jnp.maximum(y * p["scale1"] + p["shift1"], 0.0)
    y = conv(y, p["w2"], ((1, 1), (1, 1)))
    y = jnp.maximum(y * p["scale2"] + p["shift2"], 0.0)
    y = conv(y, p["w3"].reshape(1, 1, out_c, -1), "VALID")
    y = y * p["scale3"] + p["shift3"] + x_nhwc.astype(bf).astype(jnp.float32)
    return jnp.maximum(y, 0.0)


# ---------------------------------------------------------------------------
if __name__ == "__main__":
    # Bottleneck block with identity residual (identity_downsample=None,
    # stride=1) requires inChannels == outChannels * expansion.
    N, H, W = 2, 16, 16
    out_c = 8
    in_c = out_c * 4  # 32

    key = jax.random.PRNGKey(0)
    kx, kp = jax.random.split(key)
    x_nchw = jax.random.normal(kx, (N, in_c, H, W), dtype=jnp.float32)
    x_nhwc = jnp.transpose(x_nchw, (0, 2, 3, 1))  # NCHW -> NHWC

    params = make_params(kp, in_c, out_c)

    out = jax.jit(block_forward_pallas)(x_nhwc, params)
    out = jax.block_until_ready(out)

    ref = block_forward_ref(x_nhwc, params)
    np.testing.assert_allclose(np.asarray(out), np.asarray(ref),
                               rtol=2e-3, atol=2e-3)
    print("KERNEL_OK")
</pallas_src>

<mosaic_0001>
module attributes {stable_mosaic.version = 11 : i64} {
  func.func @_bottleneck_kernel(%arg0: i32, %arg1: i32, %arg2: memref<1x18x16x128xbf16, #tpu.memory_space<vmem>>, %arg3: memref<128x128xbf16, #tpu.memory_space<vmem>>, %arg4: memref<1x128xf32, #tpu.memory_space<vmem>>, %arg5: memref<1x128xf32, #tpu.memory_space<vmem>>, %arg6: memref<3x3x128x128xbf16, #tpu.memory_space<vmem>>, %arg7: memref<1x128xf32, #tpu.memory_space<vmem>>, %arg8: memref<1x128xf32, #tpu.memory_space<vmem>>, %arg9: memref<128x128xbf16, #tpu.memory_space<vmem>>, %arg10: memref<1x128xf32, #tpu.memory_space<vmem>>, %arg11: memref<1x128xf32, #tpu.memory_space<vmem>>, %arg12: memref<1x16x16x128xf32, #tpu.memory_space<vmem>>, %arg13: memref<18x32x128xbf16, #tpu.memory_space<vmem>>) attributes {dimension_semantics = [#tpu.dimension_semantics<parallel>, #tpu.dimension_semantics<parallel>], iteration_bounds = array<i64: 2, 1>, scalar_prefetch = 0 : i64, scratch_operands = 1 : i64, tpu.core_type = #tpu.core_type<tc>, window_params = [{transform_indices = @transform_0, window_bounds = array<i64: 1, 18, 16, 128>}, {pipeline_mode = #tpu.pipeline_mode<synchronous>, transform_indices = @transform_1, window_bounds = array<i64: 128, 128>}, {pipeline_mode = #tpu.pipeline_mode<synchronous>, transform_indices = @transform_2, window_bounds = array<i64: 1, 128>}, {pipeline_mode = #tpu.pipeline_mode<synchronous>, transform_indices = @transform_3, window_bounds = array<i64: 1, 128>}, {pipeline_mode = #tpu.pipeline_mode<synchronous>, transform_indices = @transform_4, window_bounds = array<i64: 3, 3, 128, 128>}, {pipeline_mode = #tpu.pipeline_mode<synchronous>, transform_indices = @transform_5, window_bounds = array<i64: 1, 128>}, {pipeline_mode = #tpu.pipeline_mode<synchronous>, transform_indices = @transform_6, window_bounds = array<i64: 1, 128>}, {pipeline_mode = #tpu.pipeline_mode<synchronous>, transform_indices = @transform_7, window_bounds = array<i64: 128, 128>}, {pipeline_mode = #tpu.pipeline_mode<synchronous>, transform_indices = @transform_8, window_bounds = array<i64: 1, 128>}, {pipeline_mode = #tpu.pipeline_mode<synchronous>, transform_indices = @transform_9, window_bounds = array<i64: 1, 128>}, {transform_indices = @transform_10, window_bounds = array<i64: 1, 16, 16, 128>}]} {
    %c16_i32 = arith.constant 16 : i32
    %0 = arith.muli %arg1, %c16_i32 : i32
    %1 = tpu.assume_multiple %0, 16 : i32
    %c0 = arith.constant 0 : index
    %2 = arith.index_cast %1 : i32 to index
    %c0_0 = arith.constant 0 : index
    %c0_1 = arith.constant 0 : index
    %3 = vector.load %arg2[%c0, %2, %c0_0, %c0_1] : memref<1x18x16x128xbf16, #tpu.memory_space<vmem>>, vector<1x18x16x128xbf16>
    %4 = vector.shape_cast %3 : vector<1x18x16x128xbf16> to vector<18x16x128xbf16>
    %5 = vector.shape_cast %4 : vector<18x16x128xbf16> to vector<288x128xbf16>
    %c0_2 = arith.constant 0 : index
    %c0_3 = arith.constant 0 : index
    %6 = vector.load %arg3[%c0_2, %c0_3] : memref<128x128xbf16, #tpu.memory_space<vmem>>, vector<128x128xbf16>
    %cst = arith.constant dense<0.000000e+00> : vector<288x128xf32>
    %7 = tpu.matmul %5, %6, %cst {dimension_numbers = #tpu.dot_dimension_numbers<[1], [0], [0], [1], [0, 0, 1, 1], [], []>} : vector<288x128xbf16>, vector<128x128xbf16>, vector<288x128xf32> -> vector<288x128xf32>
    %c0_4 = arith.constant 0 : index
    %c0_5 = arith.constant 0 : index
    %8 = vector.load %arg4[%c0_4, %c0_5] : memref<1x128xf32, #tpu.memory_space<vmem>>, vector<1x128xf32>
    %9 = vector.broadcast %8 : vector<1x128xf32> to vector<288x128xf32>
    %10 = arith.mulf %7, %9 : vector<288x128xf32>
    %c0_6 = arith.constant 0 : index
    %c0_7 = arith.constant 0 : index
    %11 = vector.load %arg5[%c0_6, %c0_7] : memref<1x128xf32, #tpu.memory_space<vmem>>, vector<1x128xf32>
    %12 = vector.broadcast %11 : vector<1x128xf32> to vector<288x128xf32>
    %13 = arith.addf %10, %12 : vector<288x128xf32>
    %cst_8 = arith.constant 0.000000e+00 : f32
    %14 = vector.broadcast %cst_8 : f32 to vector<288x128xf32>
    %15 = arith.maximumf %13, %14 : vector<288x128xf32>
    %16 = vector.shape_cast %15 : vector<288x128xf32> to vector<18x16x128xf32>
    %17 = arith.truncf %16 : vector<18x16x128xf32> to vector<18x16x128xbf16>
    %c0_9 = arith.constant 0 : index
    %c1 = arith.constant 1 : index
    %c0_10 = arith.constant 0 : index
    %18 = vector.load %arg13[%c0_9, %c1, %c0_10] : memref<18x32x128xbf16, #tpu.memory_space<vmem>>, vector<18x16x128xbf16>
    tpu.vector_store %arg13[%c0_9, %c1, %c0_10], %17 {strides = array<i32>} : memref<18x32x128xbf16, #tpu.memory_space<vmem>>, vector<18x16x128xbf16>,
    %cst_11 = arith.constant 0.000000e+00 : bf16
    %19 = vector.broadcast %cst_11 : bf16 to vector<18x1x128xbf16>
    %c0_12 = arith.constant 0 : index
    %c0_13 = arith.constant 0 : index
    %c0_14 = arith.constant 0 : index
    %20 = vector.load %arg13[%c0_12, %c0_13, %c0_14] : memref<18x32x128xbf16, #tpu.memory_space<vmem>>, vector<18x1x128xbf16>
    tpu.vector_store %arg13[%c0_12, %c0_13, %c0_14], %19 {strides = array<i32>} : memref<18x32x128xbf16, #tpu.memory_space<vmem>>, vector<18x1x128xbf16>,
    %c0_15 = arith.constant 0 : index
    %c17 = arith.constant 17 : index
    %c0_16 = arith.constant 0 : index
    %21 = vector.load %arg13[%c0_15, %c17, %c0_16] : memref<18x32x128xbf16, #tpu.memory_space<vmem>>, vector<18x1x128xbf16>
    tpu.vector_store %arg13[%c0_15, %c17, %c0_16], %19 {strides = array<i32>} : memref<18x32x128xbf16, #tpu.memory_space<vmem>>, vector<18x1x128xbf16>,
    %c0_i32 = arith.constant 0 : i32
    %22 = arith.cmpi eq, %arg1, %c0_i32 : i32
    %23 = arith.extui %22 : i1 to i32
    %c0_i32_17 = arith.constant 0 : i32
    %24 = arith.cmpi ne, %23, %c0_i32_17 : i32
    scf.if %24 {
      %cst_112 = arith.constant 0.000000e+00 : bf16
      %113 = vector.broadcast %cst_112 : bf16 to vector<1x16x128xbf16>
      %c0_113 = arith.constant 0 : index
      %c1_114 = arith.constant 1 : index
      %c0_115 = arith.constant 0 : index
      %114 = vector.load %arg13[%c0_113, %c1_114, %c0_115] : memref<18x32x128xbf16, #tpu.memory_space<vmem>>, vector<1x16x128xbf16>
      tpu.vector_store %arg13[%c0_113, %c1_114, %c0_115], %113 {strides = array<i32>} : memref<18x32x128xbf16, #tpu.memory_space<vmem>>, vector<1x16x128xbf16>,
    } else {
    }
    %c0_i32_18 = arith.constant 0 : i32
    %25 = arith.cmpi eq, %arg1, %c0_i32_18 : i32
    %26 = arith.extui %25 : i1 to i32
    %c0_i32_19 = arith.constant 0 : i32
    %27 = arith.cmpi ne, %26, %c0_i32_19 : i32
    scf.if %27 {
      %cst_112 = arith.constant 0.000000e+00 : bf16
      %113 = vector.broadcast %cst_112 : bf16 to vector<1x16x128xbf16>
      %c17_113 = arith.constant 17 : index
      %c1_114 = arith.constant 1 : index
      %c0_115 = arith.constant 0 : index
      %114 = vector.load %arg13[%c17_113, %c1_114, %c0_115] : memref<18x32x128xbf16, #tpu.memory_space<vmem>>, vector<1x16x128xbf16>
      tpu.vector_store %arg13[%c17_113, %c1_114, %c0_115], %113 {strides = array<i32>} : memref<18x32x128xbf16, #tpu.memory_space<vmem>>, vector<1x16x128xbf16>,
    } else {
    }
    %cst_20 = arith.constant 0.000000e+00 : f32
    %28 = vector.broadcast %cst_20 : f32 to vector<256x128xf32>
    %c0_21 = arith.constant 0 : index
    %c0_22 = arith.constant 0 : index
    %c0_23 = arith.constant 0 : index
    %29 = vector.load %arg13[%c0_21, %c0_22, %c0_23] : memref<18x32x128xbf16, #tpu.memory_space<vmem>>, vector<16x16x128xbf16>
    %30 = vector.shape_cast %29 : vector<16x16x128xbf16> to vector<256x128xbf16>
    %c0_24 = arith.constant 0 : index
    %c0_25 = arith.constant 0 : index
    %c0_26 = arith.constant 0 : index
    %c0_27 = arith.constant 0 : index
    %31 = vector.load %arg6[%c0_24, %c0_25, %c0_26, %c0_27] : memref<3x3x128x128xbf16, #tpu.memory_space<vmem>>, vector<1x1x128x128xbf16>
    %32 = vector.shape_cast %31 : vector<1x1x128x128xbf16> to vector<128x128xbf16>
    %cst_28 = arith.constant dense<0.000000e+00> : vector<256x128xf32>
    %33 = tpu.matmul %30, %32, %cst_28 {dimension_numbers = #tpu.dot_dimension_numbers<[1], [0], [0], [1], [0, 0, 1, 1], [], []>} : vector<256x128xbf16>, vector<128x128xbf16>, vector<256x128xf32> -> vector<256x128xf32>
    %34 = arith.addf %28, %33 : vector<256x128xf32>
    %c0_29 = arith.constant 0 : index
    %c1_30 = arith.constant 1 : index
    %c0_31 = arith.constant 0 : index
    %35 = vector.load %arg13[%c0_29, %c1_30, %c0_31] : memref<18x32x128xbf16, #tpu.memory_space<vmem>>, vector<16x16x128xbf16>
    %36 = vector.shape_cast %35 : vector<16x16x128xbf16> to vector<256x128xbf16>
    %c0_32 = arith.constant 0 : index
    %c1_33 = arith.constant 1 : index
    %c0_34 = arith.constant 0 : index
    %c0_35 = arith.constant 0 : index
    %37 = vector.load %arg6[%c0_32, %c1_33, %c0_34, %c0_35] : memref<3x3x128x128xbf16, #tpu.memory_space<vmem>>, vector<1x1x128x128xbf16>
    %38 = vector.shape_cast %37 : vector<1x1x128x128xbf16> to vector<128x128xbf16>
    %cst_36 = arith.constant dense<0.000000e+00> : vector<256x128xf32>
    %39 = tpu.matmul %36, %38, %cst_36 {dimension_numbers = #tpu.dot_dimension_numbers<[1], [0], [0], [1], [0, 0, 1, 1], [], []>} : vector<256x128xbf16>, vector<128x128xbf16>, vector<256x128xf32> -> vector<256x128xf32>
    %40 = arith.addf %34, %39 : vector<256x128xf32>
    %c0_37 = arith.constant 0 : index
    %c2 = arith.constant 2 : index
    %c0_38 = arith.constant 0 : index
    %41 = vector.load %arg13[%c0_37, %c2, %c0_38] : memref<18x32x128xbf16, #tpu.memory_space<vmem>>, vector<16x16x128xbf16>
    %42 = vector.shape_cast %41 : vector<16x16x128xbf16> to vector<256x128xbf16>
    %c0_39 = arith.constant 0 : index
    %c2_40 = arith.constant 2 : index
    %c0_41 = arith.constant 0 : index
    %c0_42 = arith.constant 0 : index
    %43 = vector.load %arg6[%c0_39, %c2_40, %c0_41, %c0_42] : memref<3x3x128x128xbf16, #tpu.memory_space<vmem>>, vector<1x1x128x128xbf16>
    %44 = vector.shape_cast %43 : vector<1x1x128x128xbf16> to vector<128x128xbf16>
    %cst_43 = arith.constant dense<0.000000e+00> : vector<256x128xf32>
    %45 = tpu.matmul %42, %44, %cst_43 {dimension_numbers = #tpu.dot_dimension_numbers<[1], [0], [0], [1], [0, 0, 1, 1], [], []>} : vector<256x128xbf16>, vector<128x128xbf16>, vector<256x128xf32> -> vector<256x128xf32>
    %46 = arith.addf %40, %45 : vector<256x128xf32>
    %c1_44 = arith.constant 1 : index
    %c0_45 = arith.constant 0 : index
    %c0_46 = arith.constant 0 : index
    %47 = vector.load %arg13[%c1_44, %c0_45, %c0_46] : memref<18x32x128xbf16, #tpu.memory_space<vmem>>, vector<16x16x128xbf16>
    %48 = vector.shape_cast %47 : vector<16x16x128xbf16> to vector<256x128xbf16>
    %c1_47 = arith.constant 1 : index
    %c0_48 = arith.constant 0 : index
    %c0_49 = arith.constant 0 : index
    %c0_50 = arith.constant 0 : index
    %49 = vector.load %arg6[%c1_47, %c0_48, %c0_49, %c0_50] : memref<3x3x128x128xbf16, #tpu.memory_space<vmem>>, vector<1x1x128x128xbf16>
    %50 = vector.shape_cast %49 : vector<1x1x128x128xbf16> to vector<128x128xbf16>
    %cst_51 = arith.constant dense<0.000000e+00> : vector<256x128xf32>
    %51 = tpu.matmul %48, %50, %cst_51 {dimension_numbers = #tpu.dot_dimension_numbers<[1], [0], [0], [1], [0, 0, 1, 1], [], []>} : vector<256x128xbf16>, vector<128x128xbf16>, vector<256x128xf32> -> vector<256x128xf32>
    %52 = arith.addf %46, %51 : vector<256x128xf32>
    %c1_52 = arith.constant 1 : index
    %c1_53 = arith.constant 1 : index
    %c0_54 = arith.constant 0 : index
    %53 = vector.load %arg13[%c1_52, %c1_53, %c0_54] : memref<18x32x128xbf16, #tpu.memory_space<vmem>>, vector<16x16x128xbf16>
    %54 = vector.shape_cast %53 : vector<16x16x128xbf16> to vector<256x128xbf16>
    %c1_55 = arith.constant 1 : index
    %c1_56 = arith.constant 1 : index
    %c0_57 = arith.constant 0 : index
    %c0_58 = arith.constant 0 : index
    %55 = vector.load %arg6[%c1_55, %c1_56, %c0_57, %c0_58] : memref<3x3x128x128xbf16, #tpu.memory_space<vmem>>, vector<1x1x128x128xbf16>
    %56 = vector.shape_cast %55 : vector<1x1x128x128xbf16> to vector<128x128xbf16>
    %cst_59 = arith.constant dense<0.000000e+00> : vector<256x128xf32>
    %57 = tpu.matmul %54, %56, %cst_59 {dimension_numbers = #tpu.dot_dimension_numbers<[1], [0], [0], [1], [0, 0, 1, 1], [], []>} : vector<256x128xbf16>, vector<128x128xbf16>, vector<256x128xf32> -> vector<256x128xf32>
    %58 = arith.addf %52, %57 : vector<256x128xf32>
    %c1_60 = arith.constant 1 : index
    %c2_61 = arith.constant 2 : index
    %c0_62 = arith.constant 0 : index
    %59 = vector.load %arg13[%c1_60, %c2_61, %c0_62] : memref<18x32x128xbf16, #tpu.memory_space<vmem>>, vector<16x16x128xbf16>
    %60 = vector.shape_cast %59 : vector<16x16x128xbf16> to vector<256x128xbf16>
    %c1_63 = arith.constant 1 : index
    %c2_64 = arith.constant 2 : index
    %c0_65 = arith.constant 0 : index
    %c0_66 = arith.constant 0 : index
    %61 = vector.load %arg6[%c1_63, %c2_64, %c0_65, %c0_66] : memref<3x3x128x128xbf16, #tpu.memory_space<vmem>>, vector<1x1x128x128xbf16>
    %62 = vector.shape_cast %61 : vector<1x1x128x128xbf16> to vector<128x128xbf16>
    %cst_67 = arith.constant dense<0.000000e+00> : vector<256x128xf32>
    %63 = tpu.matmul %60, %62, %cst_67 {dimension_numbers = #tpu.dot_dimension_numbers<[1], [0], [0], [1], [0, 0, 1, 1], [], []>} : vector<256x128xbf16>, vector<128x128xbf16>, vector<256x128xf32> -> vector<256x128xf32>
    %64 = arith.addf %58, %63 : vector<256x128xf32>
    %c2_68 = arith.constant 2 : index
    %c0_69 = arith.constant 0 : index
    %c0_70 = arith.constant 0 : index
    %65 = vector.load %arg13[%c2_68, %c0_69, %c0_70] : memref<18x32x128xbf16, #tpu.memory_space<vmem>>, vector<16x16x128xbf16>
    %66 = vector.shape_cast %65 : vector<16x16x128xbf16> to vector<256x128xbf16>
    %c2_71 = arith.constant 2 : index
    %c0_72 = arith.constant 0 : index
    %c0_73 = arith.constant 0 : index
    %c0_74 = arith.constant 0 : index
    %67 = vector.load %arg6[%c2_71, %c0_72, %c0_73, %c0_74] : memref<3x3x128x128xbf16, #tpu.memory_space<vmem>>, vector<1x1x128x128xbf16>
    %68 = vector.shape_cast %67 : vector<1x1x128x128xbf16> to vector<128x128xbf16>
    %cst_75 = arith.constant dense<0.000000e+00> : vector<256x128xf32>
    %69 = tpu.matmul %66, %68, %cst_75 {dimension_numbers = #tpu.dot_dimension_numbers<[1], [0], [0], [1], [0, 0, 1, 1], [], []>} : vector<256x128xbf16>, vector<128x128xbf16>, vector<256x128xf32> -> vector<256x128xf32>
    %70 = arith.addf %64, %69 : vector<256x128xf32>
    %c2_76 = arith.constant 2 : index
    %c1_77 = arith.constant 1 : index
    %c0_78 = arith.constant 0 : index
    %71 = vector.load %arg13[%c2_76, %c1_77, %c0_78] : memref<18x32x128xbf16, #tpu.memory_space<vmem>>, vector<16x16x128xbf16>
    %72 = vector.shape_cast %71 : vector<16x16x128xbf16> to vector<256x128xbf16>
    %c2_79 = arith.constant 2 : index
    %c1_80 = arith.constant 1 : index
    %c0_81 = arith.constant 0 : index
    %c0_82 = arith.constant 0 : index
    %73 = vector.load %arg6[%c2_79, %c1_80, %c0_81, %c0_82] : memref<3x3x128x128xbf16, #tpu.memory_space<vmem>>, vector<1x1x128x128xbf16>
    %74 = vector.shape_cast %73 : vector<1x1x128x128xbf16> to vector<128x128xbf16>
    %cst_83 = arith.constant dense<0.000000e+00> : vector<256x128xf32>
    %75 = tpu.matmul %72, %74, %cst_83 {dimension_numbers = #tpu.dot_dimension_numbers<[1], [0], [0], [1], [0, 0, 1, 1], [], []>} : vector<256x128xbf16>, vector<128x128xbf16>, vector<256x128xf32> -> vector<256x128xf32>
    %76 = arith.addf %70, %75 : vector<256x128xf32>
    %c2_84 = arith.constant 2 : index
    %c2_85 = arith.constant 2 : index
    %c0_86 = arith.constant 0 : index
    %77 = vector.load %arg13[%c2_84, %c2_85, %c0_86] : memref<18x32x128xbf16, #tpu.memory_space<vmem>>, vector<16x16x128xbf16>
    %78 = vector.shape_cast %77 : vector<16x16x128xbf16> to vector<256x128xbf16>
    %c2_87 = arith.constant 2 : index
    %c2_88 = arith.constant 2 : index
    %c0_89 = arith.constant 0 : index
    %c0_90 = arith.constant 0 : index
    %79 = vector.load %arg6[%c2_87, %c2_88, %c0_89, %c0_90] : memref<3x3x128x128xbf16, #tpu.memory_space<vmem>>, vector<1x1x128x128xbf16>
    %80 = vector.shape_cast %79 : vector<1x1x128x128xbf16> to vector<128x128xbf16>
    %cst_91 = arith.constant dense<0.000000e+00> : vector<256x128xf32>
    %81 = tpu.matmul %78, %80, %cst_91 {dimension_numbers = #tpu.dot_dimension_numbers<[1], [0], [0], [1], [0, 0, 1, 1], [], []>} : vector<256x128xbf16>, vector<128x128xbf16>, vector<256x128xf32> -> vector<256x128xf32>
    %82 = arith.addf %76, %81 : vector<256x128xf32>
    %c0_92 = arith.constant 0 : index
    %c0_93 = arith.constant 0 : index
    %83 = vector.load %arg7[%c0_92, %c0_93] : memref<1x128xf32, #tpu.memory_space<vmem>>, vector<1x128xf32>
    %84 = vector.broadcast %83 : vector<1x128xf32> to vector<256x128xf32>
    %85 = arith.mulf %82, %84 : vector<256x128xf32>
    %c0_94 = arith.constant 0 : index
    %c0_95 = arith.constant 0 : index
    %86 = vector.load %arg8[%c0_94, %c0_95] : memref<1x128xf32, #tpu.memory_space<vmem>>, vector<1x128xf32>
    %87 = vector.broadcast %86 : vector<1x128xf32> to vector<256x128xf32>
    %88 = arith.addf %85, %87 : vector<256x128xf32>
    %cst_96 = arith.constant 0.000000e+00 : f32
    %89 = vector.broadcast %cst_96 : f32 to vector<256x128xf32>
    %90 = arith.maximumf %88, %89 : vector<256x128xf32>
    %91 = arith.truncf %90 : vector<256x128xf32> to vector<256x128xbf16>
    %c0_97 = arith.constant 0 : index
    %c0_98 = arith.constant 0 : index
    %92 = vector.load %arg9[%c0_97, %c0_98] : memref<128x128xbf16, #tpu.memory_space<vmem>>, vector<128x128xbf16>
    %cst_99 = arith.constant dense<0.000000e+00> : vector<256x128xf32>
    %93 = tpu.matmul %91, %92, %cst_99 {dimension_numbers = #tpu.dot_dimension_numbers<[1], [0], [0], [1], [0, 0, 1, 1], [], []>} : vector<256x128xbf16>, vector<128x128xbf16>, vector<256x128xf32> -> vector<256x128xf32>
    %c1_i32 = arith.constant 1 : i32
    %94 = arith.addi %1, %c1_i32 : i32
    %c0_100 = arith.constant 0 : index
    %95 = arith.index_cast %94 : i32 to index
    %c0_101 = arith.constant 0 : index
    %c0_102 = arith.constant 0 : index
    %96 = vector.load %arg2[%c0_100, %95, %c0_101, %c0_102] : memref<1x18x16x128xbf16, #tpu.memory_space<vmem>>, vector<1x16x16x128xbf16>
    %97 = vector.shape_cast %96 : vector<1x16x16x128xbf16> to vector<16x16x128xbf16>
    %98 = vector.shape_cast %97 : vector<16x16x128xbf16> to vector<256x128xbf16>
    %c0_103 = arith.constant 0 : index
    %c0_104 = arith.constant 0 : index
    %99 = vector.load %arg10[%c0_103, %c0_104] : memref<1x128xf32, #tpu.memory_space<vmem>>, vector<1x128xf32>
    %100 = vector.broadcast %99 : vector<1x128xf32> to vector<256x128xf32>
    %101 = arith.mulf %93, %100 : vector<256x128xf32>
    %c0_105 = arith.constant 0 : index
    %c0_106 = arith.constant 0 : index
    %102 = vector.load %arg11[%c0_105, %c0_106] : memref<1x128xf32, #tpu.memory_space<vmem>>, vector<1x128xf32>
    %103 = vector.broadcast %102 : vector<1x128xf32> to vector<256x128xf32>
    %104 = arith.addf %101, %103 : vector<256x128xf32>
    %105 = arith.extf %98 : vector<256x128xbf16> to vector<256x128xf32>
    %106 = arith.addf %104, %105 : vector<256x128xf32>
    %cst_107 = arith.constant 0.000000e+00 : f32
    %107 = vector.broadcast %cst_107 : f32 to vector<256x128xf32>
    %108 = arith.maximumf %106, %107 : vector<256x128xf32>
    %109 = vector.shape_cast %108 : vector<256x128xf32> to vector<16x16x128xf32>
    %c0_108 = arith.constant 0 : index
    %c0_109 = arith.constant 0 : index
    %c0_110 = arith.constant 0 : index
    %c0_111 = arith.constant 0 : index
    %110 = vector.load %arg12[%c0_108, %c0_109, %c0_110, %c0_111] : memref<1x16x16x128xf32, #tpu.memory_space<vmem>>, vector<1x16x16x128xf32>
    %111 = vector.shape_cast %110 : vector<1x16x16x128xf32> to vector<16x16x128xf32>
    %112 = vector.shape_cast %109 : vector<16x16x128xf32> to vector<1x16x16x128xf32>
    tpu.vector_store %arg12[%c0_108, %c0_109, %c0_110, %c0_111], %112 {strides = array<i32>} : memref<1x16x16x128xf32, #tpu.memory_space<vmem>>, vector<1x16x16x128xf32>,
    return
  }
  func.func @transform_0(%arg0: i32, %arg1: i32) -> (i32, i32, i32, i32) {
    %c0_i32 = arith.constant 0 : i32
    %c0_i32_0 = arith.constant 0 : i32
    %c0_i32_1 = arith.constant 0 : i32
    %c0_i32_2 = arith.constant 0 : i32
    return %arg0, %c0_i32, %c0_i32_0, %c0_i32_1 : i32, i32, i32, i32
  }
  func.func @transform_1(%arg0: i32, %arg1: i32) -> (i32, i32) {
    %c0_i32 = arith.constant 0 : i32
    %c0_i32_0 = arith.constant 0 : i32
    %c0_i32_1 = arith.constant 0 : i32
    return %c0_i32, %c0_i32_0 : i32, i32
  }
  func.func @transform_2(%arg0: i32, %arg1: i32) -> (i32, i32) {
    %c0_i32 = arith.constant 0 : i32
    %c0_i32_0 = arith.constant 0 : i32
    %c0_i32_1 = arith.constant 0 : i32
    return %c0_i32, %c0_i32_0 : i32, i32
  }
  func.func @transform_3(%arg0: i32, %arg1: i32) -> (i32, i32) {
    %c0_i32 = arith.constant 0 : i32
    %c0_i32_0 = arith.constant 0 : i32
    %c0_i32_1 = arith.constant 0 : i32
    return %c0_i32, %c0_i32_0 : i32, i32
  }
  func.func @transform_4(%arg0: i32, %arg1: i32) -> (i32, i32, i32, i32) {
    %c0_i32 = arith.constant 0 : i32
    %c0_i32_0 = arith.constant 0 : i32
    %c0_i32_1 = arith.constant 0 : i32
    %c0_i32_2 = arith.constant 0 : i32
    %c0_i32_3 = arith.constant 0 : i32
    return %c0_i32, %c0_i32_0, %c0_i32_1, %c0_i32_2 : i32, i32, i32, i32
  }
  func.func @transform_5(%arg0: i32, %arg1: i32) -> (i32, i32) {
    %c0_i32 = arith.constant 0 : i32
    %c0_i32_0 = arith.constant 0 : i32
    %c0_i32_1 = arith.constant 0 : i32
    return %c0_i32, %c0_i32_0 : i32, i32
  }
  func.func @transform_6(%arg0: i32, %arg1: i32) -> (i32, i32) {
    %c0_i32 = arith.constant 0 : i32
    %c0_i32_0 = arith.constant 0 : i32
    %c0_i32_1 = arith.constant 0 : i32
    return %c0_i32, %c0_i32_0 : i32, i32
  }
  func.func @transform_7(%arg0: i32, %arg1: i32) -> (i32, i32) {
    %c0_i32 = arith.constant 0 : i32
    %c0_i32_0 = arith.constant 0 : i32
    %c0_i32_1 = arith.constant 0 : i32
    return %c0_i32, %c0_i32_0 : i32, i32
  }
  func.func @transform_8(%arg0: i32, %arg1: i32) -> (i32, i32) {
    %c0_i32 = arith.constant 0 : i32
    %c0_i32_0 = arith.constant 0 : i32
    %c0_i32_1 = arith.constant 0 : i32
    return %c0_i32, %c0_i32_0 : i32, i32
  }
  func.func @transform_9(%arg0: i32, %arg1: i32) -> (i32, i32) {
    %c0_i32 = arith.constant 0 : i32
    %c0_i32_0 = arith.constant 0 : i32
    %c0_i32_1 = arith.constant 0 : i32
    return %c0_i32, %c0_i32_0 : i32, i32
  }
  func.func @transform_10(%arg0: i32, %arg1: i32) -> (i32, i32, i32, i32) {
    %c0_i32 = arith.constant 0 : i32
    %c0_i32_0 = arith.constant 0 : i32
    %c0_i32_1 = arith.constant 0 : i32
    return %arg0, %arg1, %c0_i32, %c0_i32_0 : i32, i32, i32, i32
  }
}

</mosaic_0001>

<bundles_post_ra>
// kernel: block_forward_pallas.1
= control target key start
LH: loop header
LB: loop body
LE: loop exit
PB: predicated region body
PF: predicated region fallthrough
CT: control target
= control target key end

     0   :  { %15 = vsyncpa [#allocation4], 0  ;;  %s11929_s0 = inlined_call_operand.vmem [shape: bf16[2,18,16,128], index: 0, kind: input, shape index: {}]   ;;  %s11930_s1 = inlined_call_operand.vmem [shape: bf16[128,128], index: 1, kind: input, shape index: {}]   ;;  %s11931_s2 = inlined_call_operand.vmem [shape: f32[1,128], index: 2, kind: input, shape index: {}]   ;;  %s11932_s3 = inlined_call_operand.vmem [shape: f32[1,128], index: 3, kind: input, shape index: {}]   ;;  %s11933_s4 = inlined_call_operand.vmem [shape: bf16[3,3,128,128], index: 4, kind: input, shape index: {}]   ;;  %s11934_s5 = inlined_call_operand.vmem [shape: f32[1,128], index: 5, kind: input, shape index: {}]   ;;  %s11935_s6 = inlined_call_operand.vmem [shape: f32[1,128], index: 6, kind: input, shape index: {}]   ;;  %s11936_s7 = inlined_call_operand.vmem [shape: bf16[128,128], index: 7, kind: input, shape index: {}]   ;;  %s11937_s8 = inlined_call_operand.vmem [shape: f32[1,128], index: 8, kind: input, shape index: {}]   ;;  %s11938_s9 = inlined_call_operand.vmem [shape: f32[1,128], index: 9, kind: input, shape index: {}]   ;;  %s11939_s10 = inlined_call_operand.hbm [shape: f32[2,16,16,128], index: 10, kind: output, shape index: {}]  }
   0x1   :  { %17 = vsyncpa [#allocation4 + $0x1], 0  ;;  %s8930_s13 = smov 0   ;;  %s8932_s14 = smov 0  }
   0x2   :  { %s8934_s15 = smov 0   ;;  %s8936_s16 = smov 0  }
   0x3   :  { %s8938_s17 = smov 0   ;;  %s8940_s18 = smov 0  }
   0x4 LB: > { %s7113_s19 = sadd.s32 4294967295, %s8869_s18   ;;  %s7114_s20 = sadd.s32 4294967294, %s8869_s18   ;;  %s8869_s18 = sphi %s8940_s18, %s23_s18   ;;  %s8865_s17 = sphi %s8938_s17, %s12175_s17   ;;  %s8861_s16 = sphi %s8936_s16, %s12174_s16   ;;  %s8857_s15 = sphi %s8934_s15, %s12173_s15   ;;  %s8853_s14 = sphi %s8932_s14, %s12172_s14   ;;  %s8849_s13 = sphi %s8930_s13, %s12171_s13  }
   0x5   : > { %s35_s21 = sadd.s32 1, %s8865_s17  ;;  %s259_s22 = sadd.s32 1, %s8857_s15 }
   0x6   : > { %p37_p0 = scmp.ge.s32.totalorder %s35_s21, 2  ;;  %p269_p1 = scmp.ne.s32.totalorder %s8857_s15, %s8853_s14 }
   0x7   : > { %p270_p2 = scmp.eq.s32.totalorder %s7113_s19, 1  ;;  %p275_p3 = scmp.ne.s32.totalorder %s8853_s14, %s8849_s13 }
   0x8   : > { %s12177_s21 = smov (%p37_p0, %s35_s21), 0  ;;  %p276_p5 = scmp.eq.s32.totalorder %s7114_s20, 1 }
   0x9   : > { %11966 = sst [smem:[#allocation6_spill]] %s12177_s21  ;;  %p8970_p4 = por %p270_p2, %p269_p1 }
   0xa   : > { %s254_s24 = ssub.s32 %s8865_s17, %s12177_s21  ;;  %p7117_p6 = scmp.ge.s32.totalorder %s8869_s18, 1 }
   0xb   : > { %p257_p7 = scmp.eq.s32.totalorder %s254_s24, 0  ;;  %p8977_p8 = por %p276_p5, %p275_p3 }
   0xc   : > { %p329_p9 = scmp.lt.s32.totalorder %s8869_s18, 3 }
   0xd   : > { %s8983_s26 = scalar_select %p257_p7, %s8857_s15, %s259_s22  }
   0xe   : > { %p330_p10 = pnand %p7117_p6, %p329_p9 }
  0x10   : > { %333 = sbr.rel (%p330_p10) target bundleno = 1124 (0x464), region = 60 }
  0x15   : > { %v8615_v0 = vld [vmem:[%s11930_s1 + $0x38] sm:$0xff]   ;;  %p367_p11 = scmp.lt.s32.totalorder %s8861_s16, 1  ;;  %v8616_v1 = vld [vmem:[%s11930_s1 + $0x30] sm:$0xff]   ;;  %v8617_v2 = vld [vmem:[%s11930_s1 + $0x28] sm:$0xff]   ;;  %vm993_vm0 = vsmask.f32 256 }
  0x16   : > { %8008 = vmatprep.subr.bf16.mxu0 %v8615_v0  ;;  %v8618_v3 = vld [vmem:[%s11930_s1 + $0x20] sm:$0xff]   ;;  %v8619_v5 = vld [vmem:[%s11930_s1 + $0x18] sm:$0xff]   ;;  %v8620_v6 = vld [vmem:[%s11930_s1 + $0x10] sm:$0xff]   ;;  %vm1356_vm1 = vcmask 1043456   ;;  %vm1357_vm2 = vsmask.f32 7938 }
  0x17   : > { %s368_s11 = scalar_select %p367_p11, %s8861_s16, 1  ;;  %8009 = vmatpush3.bf16.msra.mxu0 %v8615_v0  ;;  %v8621_v7 = vld [vmem:[%s11930_s1 + $0x8] sm:$0xff]   ;;  %v8622_v8 = vld [vmem:[%s11930_s1] sm:$0xff]   ;;  %v8641_v26 = vld [vmem:[%s11933_s4 + $0x78] sm:$0xff]   ;;  %vm1363_vm3 = vcmask 1040384   ;;  %v11969_v62 = vmov 0 }
  0x18   : > { %8010 = vmatprep.subr.bf16.mxu0 %v8616_v1  ;;  %8540 = vmatprep.subr.bf16.mxu1 %v8641_v26  ;;  %v8642_v27 = vld [vmem:[%s11933_s4 + $0x70] sm:$0xff]   ;;  %v8643_v28 = vld [vmem:[%s11933_s4 + $0x68] sm:$0xff]   ;;  %v8644_v29 = vld [vmem:[%s11933_s4 + $0x60] sm:$0xff]   ;;  %vm994_vm4 = vsmask.f32 4368  ;;  %vm2709_vm12 = vcmask 1042432  }
  0x19   : > { %s8556_s20 = smul.u32 144, %s368_s11  ;;  %8548 = vmatpush3.bf16.msra.mxu1 %v8641_v26  ;;  %v8645_v30 = vld [vmem:[%s11933_s4 + $0x58] sm:$0xff]   ;;  %v8646_v31 = vld [vmem:[%s11933_s4 + $0x50] sm:$0xff]   ;;  %v8647_v32 = vld [vmem:[%s11933_s4 + $0x48] sm:$0xff]   ;;  %vm1679_vm9 = vsmask.f32 3328 }
  0x1a   : > { %8541 = vmatprep.subr.bf16.mxu1 %v8642_v27  ;;  %v8648_v33 = vld [vmem:[%s11933_s4 + $0x40] sm:$0xff]   ;;  %v8649_v34 = vld [vmem:[%s11933_s4 + $0xb8] sm:$0xff]   ;;  %vm9082_vm5 = vmand %vm1356_vm1, %vm1357_vm2  ;;  %vm1680_vm10 = vsmask.f32 7440  ;;  %vm2710_vm13 = vcmask 1046532   ;;  %s364_s29 = sand.u32 1, %s8853_s14  }
  0x1b   : > { %s8999_s27 = scalar_lea.vmem %s11929_s0, %s8556_s20  ;;  %8011 = vmatpush3.bf16.msra.mxu0 %v8616_v1  ;;  %v9064_v35 = vld [vmem:[%s11931_s2] ss:$0 sm:$0xff]  ;;  %v11970_v62 = vsel %vm9082_vm5, 4294967295, %v11969_v62  ;;  %v1368_v63 = vld [vmem:[#allocation2 + $0x10] sm:$0xf]  ;;  %vm9094_vm6 = vmand %vm1363_vm3, %vm993_vm0  ;;  %s7118_s12 = sshll.u32 %s364_s29, 8 }
  0x1c   : > { %8012 = vmatprep.subr.bf16.mxu0 %v8617_v2  ;;  %v8623_v4 = vld [vmem:[%s8999_s27] sm:$0xff]   ;;  %v8624_v9 = vld [vmem:[%s8999_s27 + $0x8] sm:$0xff]   ;;  %v8625_v10 = vld [vmem:[%s8999_s27 + $0x10] sm:$0xff]   ;;  %11971 = vst [vmem:[#allocation7_spill] sm:$0xff] %v11970_v62  ;;  %s11770_s21 = scalar_lea.vmem [#allocation3], %s7118_s12  ;;  %s11884_s28 = scalar_lea.sflag [#allocation4], %s364_s29 }
  0x1d   : > { %8024 = vmatprep.mubr.bf16.mxu0 %v8623_v4  ;;  %v8626_v11 = vld [vmem:[%s8999_s27 + $0x18] sm:$0xff]   ;;  %v8627_v12 = vld [vmem:[%s8999_s27 + $0x20] sm:$0xff]   ;;  %v8628_v13 = vld [vmem:[%s8999_s27 + $0x28] sm:$0xff]   ;;  %8549 = vmatpush3.bf16.msra.mxu1 %v8642_v27  ;;  %s7034_s19 = sshll.u32 %s11770_s21, 4  ;;  %s8872_s30 = smov [#allocation3]   ;;  %s11878_s19 = int_to_ptr.vmem [resolvable:$true] %s7034_s19 }
  0x1e   : > { %v8629_v14 = vld [vmem:[%s8999_s27 + $0x30] sm:$0xff]   ;;  %v8630_v15 = vld [vmem:[%s8999_s27 + $0x38] sm:$0xff]   ;;  %v8631_v16 = vld [vmem:[%s8999_s27 + $0x40] sm:$0xff]   ;;  %8542 = vmatprep.subr.bf16.mxu1 %v8643_v28  ;;  %s8797_s11 = sshll.u32 %s8872_s30, 4  ;;  %s8798_s11 = int_to_ptr.vmem [resolvable:$false] %s8797_s11 }
  0x1f   : > { %8013 = vmatpush3.bf16.msra.mxu0 %v8617_v2  ;;  %v8632_v17 = vld [vmem:[%s8999_s27 + $0x48] sm:$0xff]   ;;  %v8633_v18 = vld [vmem:[%s8999_s27 + $0x50] sm:$0xff]   ;;  %v8634_v19 = vld [vmem:[%s8999_s27 + $0x58] sm:$0xff]   ;;  %s8799_s12 = scalar_lea.vmem %s8798_s11, 8192  ;;  %p8800_p1 = scmp.lt.s32.totalorder %s11878_s19, %s8798_s11 }
  0x20   : > { %8014 = vmatprep.subr.bf16.mxu0 %v8618_v3  ;;  %v8635_v20 = vld [vmem:[%s8999_s27 + $0x60] sm:$0xff]   ;;  %v8636_v21 = vld [vmem:[%s8999_s27 + $0x68] sm:$0xff]   ;;  %v8637_v22 = vld [vmem:[%s8999_s27 + $0x70] sm:$0xff]  }
  0x21   : > { %v8638_v23 = vld [vmem:[%s8999_s27 + $0x78] sm:$0xff]   ;;  %v8639_v24 = vld [vmem:[%s8999_s27 + $0x80] sm:$0xff]   ;;  %v8640_v25 = vld [vmem:[%s8999_s27 + $0x88] sm:$0xff]   ;;  %8550 = vmatpush3.bf16.msra.mxu1 %v8643_v28 }
  0x22   : > { %8543 = vmatprep.subr.bf16.mxu1 %v8644_v29  ;;  %v9069_v37 = vld [vmem:[%s11932_s3] ss:$0 sm:$0xff]  ;;  %vm9102_vm7 = vmor %vm993_vm0, %vm994_vm4 }
  0x23   : > { %8015 = vmatpush3.bf16.msra.mxu0 %v8618_v3  ;;  %vm9139_vm8 = vmand %vm1363_vm3, %vm1357_vm2 }
  0x24   : > { %8016 = vmatprep.subr.bf16.mxu0 %v8619_v5  ;;  %vm9348_vm11 = vmor %vm1679_vm9, %vm1680_vm10 }
  0x25   : > { %8551 = vmatpush3.bf16.msra.mxu1 %v8644_v29  ;;  %vm9555_vm14 = vmor %vm2709_vm12, %vm2710_vm13 }
  0x26   : > { %8544 = vmatprep.subr.bf16.mxu1 %v8645_v30 }
  0x27   : > { %8017 = vmatpush3.bf16.msra.mxu0 %v8619_v5  ;;  %v8655_v5 = vld [vmem:[%s11933_s4 + $0x38] sm:$0xff]  }
  0x28   : > { %8018 = vmatprep.subr.bf16.mxu0 %v8620_v6 }
  0x29   : > { %8552 = vmatpush3.bf16.msra.mxu1 %v8645_v30 }
  0x2a   : > { %8545 = vmatprep.subr.bf16.mxu1 %v8646_v31 }
  0x2b   : > { %8019 = vmatpush3.bf16.msra.mxu0 %v8620_v6 }
  0x2c   : > { %8020 = vmatprep.subr.bf16.mxu0 %v8621_v7 }
  0x2d   : > { %8553 = vmatpush3.bf16.msra.mxu1 %v8646_v31 }
  0x2e   : > { %8546 = vmatprep.subr.bf16.mxu1 %v8647_v32 }
  0x2f   : > { %8021 = vmatpush3.bf16.msra.mxu0 %v8621_v7 }
  0x30   : > { %8022 = vmatprep.subr.bf16.mxu0 %v8622_v8 }
  0x31   : > { %8554 = vmatpush3.bf16.msra.mxu1 %v8647_v32 }
  0x32   : > { %8547 = vmatprep.subr.bf16.mxu1 %v8648_v33 }
  0x33   : > { %8023 = vmatpush3.bf16.msra.mxu0 %v8622_v8 }
  0x34   : > { %8060 = vmatprep.subr.bf16.mxu0 %v8641_v26 }
  0x35   : > { %8555 = vmatpush3.bf16.msra.mxu1 %v8648_v33 }
  0x36   : > { %8025 = vmatmul.mubr.bf16.vlgmr.msra.gmra.mxu0 %v8624_v9  ;;  %8108 = vmatprep.subr.bf16.mxu1 %v8655_v5 }
  0x37   : > { %8028 = vmatprep.mubr.bf16.mxu0 %v8625_v10  ;;  %8061 = vmatpush3.bf16.msra.mxu0 %v8641_v26  ;;  %v1359_v10 = vld [vmem:[#allocation2] sm:$0xf] }
  0x38   : > { %8062 = vmatprep.subr.bf16.mxu0 %v8642_v27 }
  0x3b   : > { %8063 = vmatpush3.bf16.msra.mxu0 %v8642_v27 }
  0x3c   : > { %8064 = vmatprep.subr.bf16.mxu0 %v8643_v28 }
  0x3e   : > { %8029 = vmatmul.mubr.bf16.gmra.mxu0 %v8626_v11 }
  0x3f   : > { %8032 = vmatprep.mubr.bf16.mxu0 %v8627_v12  ;;  %8065 = vmatpush3.bf16.msra.mxu0 %v8643_v28 }
  0x40   : > { %8066 = vmatprep.subr.bf16.mxu0 %v8644_v29 }
  0x43   : > { %8067 = vmatpush3.bf16.msra.mxu0 %v8644_v29 }
  0x44   : > { %8068 = vmatprep.subr.bf16.mxu0 %v8645_v30 }
  0x46   : > { %8033 = vmatmul.mubr.bf16.gmra.mxu0 %v8628_v13 }
  0x47   : > { %8036 = vmatprep.mubr.bf16.mxu0 %v8629_v14  ;;  %8069 = vmatpush3.bf16.msra.mxu0 %v8645_v30 }
  0x48   : > { %8070 = vmatprep.subr.bf16.mxu0 %v8646_v31 }
  0x4b   : > { %8071 = vmatpush3.bf16.msra.mxu0 %v8646_v31 }
  0x4c   : > { %8072 = vmatprep.subr.bf16.mxu0 %v8647_v32 }
  0x4e   : > { %8037 = vmatmul.mubr.bf16.gmra.mxu0 %v8630_v15 }
  0x4f   : > { %8040 = vmatprep.mubr.bf16.mxu0 %v8631_v16  ;;  %8073 = vmatpush3.bf16.msra.mxu0 %v8647_v32  ;;  %v11972_v16 = vmov 0 }
  0x50   : > { %8074 = vmatprep.subr.bf16.mxu0 %v8648_v33  ;;  %v11973_v16 = vsel %vm9094_vm6, 4294967295, %v11972_v16 }
  0x51   : > { %11974 = vst [vmem:[#allocation8_spill] sm:$0xff] %v11973_v16 }
  0x53   : > { %8075 = vmatpush3.bf16.msra.mxu0 %v8648_v33 }
  0x54   : > { %8156 = vmatprep.subr.bf16.mxu0 %v8649_v34 }
  0x56   : > { %8041 = vmatmul.mubr.bf16.gmra.mxu0 %v8632_v17 }
  0x57   : > { %8044 = vmatprep.mubr.bf16.mxu0 %v8633_v18 }
  0x5e   : > { %8045 = vmatmul.mubr.bf16.gmra.mxu0 %v8634_v19 }
  0x5f   : > { %8048 = vmatprep.mubr.bf16.mxu0 %v8635_v20 }
  0x66   : > { %8049 = vmatmul.mubr.bf16.gmra.mxu0 %v8636_v21  ;;  %v11975_v21 = vmov 0 }
  0x67   : > { %8052 = vmatprep.mubr.bf16.mxu0 %v8637_v22  ;;  %v11976_v21 = vsel %vm9102_vm7, 4294967295, %v11975_v21  ;;  %v1372_v22 = vld [vmem:[#allocation2 + $0x18] sm:$0x1] }
  0x68   : > { %11977 = vst [vmem:[#allocation9_spill] sm:$0xff] %v11976_v21 }
  0x6e   : > { %8053 = vmatmul.mubr.bf16.gmra.mxu0 %v8638_v23 }
  0x6f   : > { %8056 = vmatprep.mubr.bf16.mxu0 %v8639_v24 }
  0x76   : > { %8057 = vmatmul.mubr.bf16.gmra.mxu0 %v8640_v25 }
  0xf6   : > { %v8026_v36 = vpop.f32.mrf.mxu0 }
  0xf7   : > { %v772_v38 = vmul.f32 %v8026_v36, %v9064_v35 }
  0xf8   : > { %v620_v39 = vpop.f32.mrf.mxu0 }
  0xf9   : > { %v815_v40 = vadd.f32 %v9069_v37, %v772_v38  ;;  %v770_v41 = vmul.f32 %v9064_v35, %v620_v39 }
  0xfa   : > { %v8027_v42 = vpop.f32.mrf.mxu0 }
  0xfb   : > { %v851_v43 = vmax.f32 %v815_v40, 0.0  ;;  %v813_v44 = vadd.f32 %v9069_v37, %v770_v41  ;;  %v773_v45 = vmul.f32 %v8027_v42, %v9064_v35  ;;  %v1365_v41 = vld [vmem:[#allocation2 + $0x8] sm:$0x1] }
  0xfc   : > { %v623_v46 = vpop.f32.mrf.mxu0 }
  0xfd   : > { %v7627_v47 = vpack.c.bf16 %v851_v43, %v851_v43  ;;  %v849_v48 = vmax.f32 %v813_v44, 0.0  ;;  %v816_v49 = vadd.f32 %v9069_v37, %v773_v45  ;;  %v771_v50 = vmul.f32 %v9064_v35, %v623_v46 }
  0xfe   : > { %v8030_v51 = vpop.f32.mrf.mxu0 }
  0xff   : > { %v1014_v52 = vshrl.u32 %v7627_v47, 16  ;;  %v7625_v53 = vpack.c.bf16 %v849_v48, %v849_v48  ;;  %v852_v54 = vmax.f32 %v816_v49, 0.0  ;;  %v814_v55 = vadd.f32 %v9069_v37, %v771_v50  ;;  %v1382_v49 = vld [vmem:[#allocation2 + $0x30] sm:$0xf] }
 0x100   : > { %v776_v56 = vmul.f32 %v8030_v51, %v9064_v35  ;;  %v636_v57 = vpop.f32.mrf.mxu0  ;;  %v1017_v59 = vshll.u32 %v7627_v47, 16 }
 0x101   : > { %v1016_v58 = vrot.slane %v1014_v52, 7  ;;  %v997_v60 = vshrl.u32 %v7625_v53, 16  ;;  %v7628_v61 = vpack.c.bf16 %v852_v54, %v852_v54  ;;  %v1000_v0 = vshll.u32 %v7625_v53, 16 }
 0x102   : > { %v850_v1 = vmax.f32 %v814_v55, 0.0  ;;  %v819_v2 = vadd.f32 %v9069_v37, %v776_v56  ;;  %v774_v3 = vmul.f32 %v9064_v35, %v636_v57  ;;  %v8031_v4 = vpop.f32.mrf.mxu0 }
 0x103   : > { %v1019_v6 = vor.u32 %v1017_v59, %v1016_v58  ;;  %v1020_v7 = vrot.slane %v1016_v58, 4  ;;  %v999_v8 = vrot.slane %v997_v60, 7  ;;  %v1022_v9 = vshrl.u32 %v7628_v61, 16 }
 0x104   : > { %v1025_v11 = vshll.u32 %v7628_v61, 16  ;;  %v7626_v12 = vpack.c.bf16 %v850_v1, %v850_v1  ;;  %v855_v13 = vmax.f32 %v819_v2, 0.0  ;;  %v817_v14 = vadd.f32 %v9069_v37, %v774_v3  ;;  %v639_v15 = vpop.f32.mrf.mxu0 }
 0x105   : > { %v1369_v17 = vsel %vm9082_vm5, %v1019_v6, %v1368_v63  ;;  %v1002_v18 = vor.u32 %v1000_v0, %v999_v8  ;;  %v1003_v19 = vrot.slane %v999_v8, 4  ;;  %v1024_v20 = vrot.slane %v1022_v9, 7 }
 0x106   : > { %1370 = vst [vmem:[#allocation2 + $0x10] sm:$0xf] %v1369_v17  ;;  %v1005_v23 = vshrl.u32 %v7626_v12, 16  ;;  %v1008_v24 = vshll.u32 %v7626_v12, 16  ;;  %v7631_v25 = vpack.c.bf16 %v855_v13, %v855_v13  ;;  %v853_v26 = vmax.f32 %v817_v14, 0.0  ;;  %v8034_v27 = vpop.f32.mrf.mxu0 }
 0x107   : > { %v1360_v28 = vsel %vm9082_vm5, %v1002_v18, %v1359_v10  ;;  %v1027_v29 = vor.u32 %v1025_v11, %v1024_v20  ;;  %v1029_v30 = vrot.slane %v1024_v20, 4  ;;  %v777_v31 = vmul.f32 %v8031_v4, %v9064_v35  ;;  %v1375_v4 = vld [vmem:[#allocation2 + $0x20] sm:$0xf] }
 0x108   : > { %1361 = vst [vmem:[#allocation2] sm:$0xf] %v1360_v28  ;;  %v1007_v32 = vrot.slane %v1005_v23, 7  ;;  %v1048_v33 = vshrl.u32 %v7631_v25, 16  ;;  %v1051_v34 = vshll.u32 %v7631_v25, 16  ;;  %v7629_v36 = vpack.c.bf16 %v853_v26, %v853_v26  ;;  %v652_v38 = vpop.f32.mrf.mxu0 }
 0x109   : > { %v1028_v39 = vsel %vm9102_vm7, %v1020_v7, %v1027_v29  ;;  %v1373_v40 = vsel %vm9094_vm6, %v1029_v30, %v1372_v22  ;;  %v820_v42 = vadd.f32 %v9069_v37, %v777_v31  ;;  %v775_v43 = vmul.f32 %v9064_v35, %v639_v15 }
 0x10a   : > { %1371 = vst [vmem:[#allocation2 + $0x14] sm:$0xf] %v1028_v39  ;;  %1374 = vst [vmem:[#allocation2 + $0x18] sm:$0x1] %v1373_v40  ;;  %v1010_v44 = vor.u32 %v1008_v24, %v1007_v32  ;;  %v1012_v45 = vrot.slane %v1007_v32, 4  ;;  %v9115_v46 = vrot.slane %v1048_v33, 7  ;;  %v8035_v48 = vpop.f32.mrf.mxu0  ;;  %v780_v53 = vmul.f32 %v8034_v27, %v9064_v35 }
 0x10b   : > { %v1031_v47 = vshrl.u32 %v7629_v36, 16  ;;  %v1034_v50 = vshll.u32 %v7629_v36, 16  ;;  %v856_v51 = vmax.f32 %v820_v42, 0.0  ;;  %v818_v52 = vadd.f32 %v9069_v37, %v775_v43  ;;  %v1386_v24 = vld [vmem:[#allocation2 + $0x38] sm:$0x1] }
 0x10c   : > { %v1011_v54 = vsel %vm9102_vm7, %v1003_v19, %v1010_v44  ;;  %v1366_v55 = vsel %vm9094_vm6, %v1012_v45, %v1365_v41  ;;  %v1053_v56 = vor.u32 %v1051_v34, %v9115_v46  ;;  %v1054_v57 = vrot.slane %v9115_v46, 4  ;;  %v655_v58 = vpop.f32.mrf.mxu0 }
 0x10d   : > { %v1490_v59 = vld [vmem:[#allocation2 + $0x10] sm:$0x1]  ;;  %1362 = vst [vmem:[#allocation2 + $0x4] sm:$0xf] %v1011_v54  ;;  %1367 = vst [vmem:[#allocation2 + $0x8] sm:$0x1] %v1366_v55  ;;  %v7632_v61 = vpack.c.bf16 %v856_v51, %v856_v51  ;;  %v823_v0 = vadd.f32 %v9069_v37, %v780_v53  ;;  %v778_v5 = vmul.f32 %v9064_v35, %v652_v38 }
 0x10e   : > { %v9125_v60 = vrot.slane %v1031_v47, 7  ;;  %v854_v63 = vmax.f32 %v818_v52, 0.0  ;;  %v1491_v1 = vsel %vm9094_vm6, 0, %v1490_v59  ;;  %v11941_v2 = vmov 0   ;;  %v9135_v7 = vpop.f32.mrf.mxu0  ;;  %v1379_v47 = vld [vmem:[#allocation2 + $0x28] sm:$0x1] }
 0x10f   : > { %1603 = vst [vmem:[#allocation2 + $0x4] sm:$0xf] %v11941_v2  ;;  %v1383_v3 = vsel %vm9082_vm5, %v1053_v56, %v1382_v49  ;;  %v781_v6 = vmul.f32 %v8035_v48, %v9064_v35  ;;  %1492 = vst [vmem:[#allocation2 + $0x10] sm:$0x1] %v1491_v1  ;;  %v1487_v8 = vld [vmem:[#allocation2] sm:$0x1]  ;;  %v821_v18 = vadd.f32 %v9069_v37, %v778_v5 }
 0x110   : > { %v11978_v9 = vmov 0  ;;  %1384 = vst [vmem:[#allocation2 + $0x30] sm:$0xf] %v1383_v3  ;;  %v1036_v10 = vor.u32 %v1034_v50, %v9125_v60  ;;  %v1037_v11 = vrot.slane %v9125_v60, 4  ;;  %v1056_v12 = vshrl.u32 %v7632_v61, 16  ;;  %v9148_v19 = vpop.f32.mrf.mxu0 }
 0x111   : > { %v11979_v9 = vsel %vm9139_vm8, 4294967295, %v11978_v9  ;;  %v1059_v13 = vshll.u32 %v7632_v61, 16  ;;  %v1488_v14 = vsel %vm9094_vm6, 0, %v1487_v8  ;;  %v7630_v15 = vpack.c.bf16 %v854_v63, %v854_v63  ;;  %v1545_v20 = vld [vmem:[#allocation2 + $0x18] sm:$0x1] }
 0x112   : > { %11980 = vst [vmem:[#allocation10_spill] sm:$0xff] %v11979_v9  ;;  %v859_v17 = vmax.f32 %v823_v0, 0.0  ;;  %1489 = vst [vmem:[#allocation2] sm:$0x1] %v1488_v14  ;;  %v1376_v22 = vsel %vm9082_vm5, %v1036_v10, %v1375_v4  ;;  %v1058_v23 = vrot.slane %v1056_v12, 7  ;;  %v824_v25 = vadd.f32 %v9069_v37, %v781_v6  ;;  %v8039_v31 = vpop.f32.mrf.mxu0 }
 0x113   : > { %v779_v26 = vmul.f32 %v9064_v35, %v655_v58  ;;  %v1546_v27 = vsel %vm9139_vm8, 0, %v1545_v20  ;;  %1377 = vst [vmem:[#allocation2 + $0x20] sm:$0xf] %v1376_v22  ;;  %v1039_v28 = vshrl.u32 %v7630_v15, 16  ;;  %v1042_v29 = vshll.u32 %v7630_v15, 16 }
 0x114   : > { %v7635_v30 = vpack.c.bf16 %v859_v17, %v859_v17  ;;  %1547 = vst [vmem:[#allocation2 + $0x18] sm:$0x1] %v1546_v27  ;;  %v1061_v32 = vor.u32 %v1059_v13, %v1058_v23  ;;  %v1063_v33 = vrot.slane %v1058_v23, 4  ;;  %v857_v34 = vmax.f32 %v821_v18, 0.0  ;;  %v1542_v38 = vld [vmem:[#allocation2 + $0x8] sm:$0x1]  ;;  %v9157_v43 = vpop.f32.mrf.mxu0 }
 0x115   : > { %v860_v36 = vmax.f32 %v824_v25, 0.0  ;;  %v1041_v39 = vrot.slane %v1039_v28, 7  ;;  %v822_v42 = vadd.f32 %v9069_v37, %v779_v26  ;;  %v1543_v44 = vsel %vm9139_vm8, 0, %v1542_v38  ;;  %v1396_v56 = vld [vmem:[#allocation2 + $0x50] sm:$0xf] }
 0x116   : > { %v1082_v40 = vshrl.u32 %v7635_v30, 16  ;;  %v1085_v41 = vshll.u32 %v7635_v30, 16  ;;  %v1062_v45 = vsel %vm9102_vm7, %v1054_v57, %v1061_v32  ;;  %v1387_v46 = vsel %vm9094_vm6, %v1063_v33, %v1386_v24  ;;  %1544 = vst [vmem:[#allocation2 + $0x8] sm:$0x1] %v1543_v44  ;;  %v9165_v54 = vpop.f32.mrf.mxu0  ;;  %v1389_v13 = vld [vmem:[#allocation2 + $0x40] sm:$0xf] }
 0x117   : > { %v7633_v48 = vpack.c.bf16 %v857_v34, %v857_v34  ;;  %v1496_v49 = vld [vmem:[#allocation2 + $0x30] sm:$0x1]  ;;  %1385 = vst [vmem:[#allocation2 + $0x34] sm:$0xf] %v1062_v45  ;;  %1388 = vst [vmem:[#allocation2 + $0x38] sm:$0x1] %v1387_v46  ;;  %v1044_v50 = vor.u32 %v1042_v29, %v1041_v39  ;;  %v7636_v53 = vpack.c.bf16 %v860_v36, %v860_v36 }
 0x118   : > { %v1046_v51 = vrot.slane %v1041_v39, 4  ;;  %v1084_v52 = vrot.slane %v1082_v40, 7  ;;  %v1497_v55 = vsel %vm9094_vm6, 0, %v1496_v49  ;;  %v858_v59 = vmax.f32 %v822_v42, 0.0  ;;  %v9173_v3 = vpop.f32.mrf.mxu0  ;;  %v1400_v24 = vld [vmem:[#allocation2 + $0x58] sm:$0x1] }
 0x119   : > { %v1065_v57 = vshrl.u32 %v7633_v48, 16  ;;  %v1068_v58 = vshll.u32 %v7633_v48, 16  ;;  %v1600_v60 = vld [vmem:[#allocation2] sm:$0xf]  ;;  %1498 = vst [vmem:[#allocation2 + $0x30] sm:$0x1] %v1497_v55  ;;  %v1045_v61 = vsel %vm9102_vm7, %v1037_v11, %v1044_v50  ;;  %v784_v15 = vmul.f32 %v9135_v7, %v9064_v35 }
 0x11a   : > { %v1380_v63 = vsel %vm9094_vm6, %v1046_v51, %v1379_v47  ;;  %v1087_v0 = vor.u32 %v1085_v41, %v1084_v52  ;;  %v1088_v1 = vrot.slane %v1084_v52, 4  ;;  %v1601_v4 = vsel %vm9082_vm5, 0, %v1600_v60  ;;  %v1493_v5 = vld [vmem:[#allocation2 + $0x20] sm:$0x1]  ;;  %1378 = vst [vmem:[#allocation2 + $0x24] sm:$0xf] %v1045_v61  ;;  %v9183_v17 = vpop.f32.mrf.mxu0 }
 0x11b   : > { %1381 = vst [vmem:[#allocation2 + $0x28] sm:$0x1] %v1380_v63  ;;  %v1067_v6 = vrot.slane %v1065_v57, 7  ;;  %v1090_v8 = vshrl.u32 %v7636_v53, 16  ;;  %v1093_v10 = vshll.u32 %v7636_v53, 16  ;;  %v1494_v11 = vsel %vm9094_vm6, 0, %v1493_v5 }
 0x11c   : > { %1602 = vst [vmem:[#allocation2] sm:$0xf] %v1601_v4  ;;  %v1397_v12 = vsel %vm9082_vm5, %v1087_v0, %v1396_v56  ;;  %v7634_v14 = vpack.c.bf16 %v858_v59, %v858_v59  ;;  %1495 = vst [vmem:[#allocation2 + $0x20] sm:$0x1] %v1494_v11  ;;  %v782_v23 = vmul.f32 %v9064_v35, %v9148_v19  ;;  %v9192_v36 = vpop.f32.mrf.mxu0  ;;  %v1393_v42 = vld [vmem:[#allocation2 + $0x48] sm:$0x1] }
 0x11d   : > { %1398 = vst [vmem:[#allocation2 + $0x50] sm:$0xf] %v1397_v12  ;;  %v1070_v18 = vor.u32 %v1068_v58, %v1067_v6  ;;  %v1071_v20 = vrot.slane %v1067_v6, 4  ;;  %v1092_v22 = vrot.slane %v1090_v8, 7  ;;  %v827_v27 = vadd.f32 %v9069_v37, %v784_v15  ;;  %v1604_v29 = vld [vmem:[#allocation2 + $0x8] sm:$0x1] }
 0x11e   : > { %v1073_v25 = vshrl.u32 %v7634_v14, 16  ;;  %v1076_v26 = vshll.u32 %v7634_v14, 16  ;;  %v785_v28 = vmul.f32 %v8039_v31, %v9064_v35  ;;  %v1551_v30 = vld [vmem:[#allocation2 + $0x38] sm:$0x1]  ;;  %v825_v34 = vadd.f32 %v9069_v37, %v782_v23  ;;  %v9209_v56 = vpop.f32.mrf.mxu0  ;;  %v1410_v4 = vld [vmem:[#allocation2 + $0x70] sm:$0xf] }
 0x11f   : > { %v1390_v7 = vsel %vm9082_vm5, %v1070_v18, %v1389_v13  ;;  %v1095_v32 = vor.u32 %v1093_v10, %v1092_v22  ;;  %v1097_v33 = vrot.slane %v1092_v22, 4  ;;  %v1605_v19 = vsel %vm9094_vm6, 0, %v1604_v29  ;;  %v1403_v23 = vld [vmem:[#allocation2 + $0x60] sm:$0xf] }
 0x120   : > { %v1552_v38 = vsel %vm9139_vm8, 0, %v1551_v30  ;;  %1391 = vst [vmem:[#allocation2 + $0x40] sm:$0xf] %v1390_v7  ;;  %v1075_v39 = vrot.slane %v1073_v25, 7  ;;  %v863_v31 = vmax.f32 %v827_v27, 0.0  ;;  %v861_v44 = vmax.f32 %v825_v34, 0.0  ;;  %v700_v15 = vpop.f32.mrf.mxu0 }
 0x121   : > { %1606 = vst [vmem:[#allocation2 + $0x8] sm:$0x1] %v1605_v19  ;;  %1553 = vst [vmem:[#allocation2 + $0x38] sm:$0x1] %v1552_v38  ;;  %v1096_v40 = vsel %vm9102_vm7, %v1088_v1, %v1095_v32  ;;  %v1401_v41 = vsel %vm9094_vm6, %v1097_v33, %v1400_v24  ;;  %v828_v45 = vadd.f32 %v9069_v37, %v785_v28  ;;  %v1414_v30 = vld [vmem:[#allocation2 + $0x78] sm:$0x1] }
 0x122   : > { %v1548_v46 = vld [vmem:[#allocation2 + $0x28] sm:$0x1]  ;;  %1399 = vst [vmem:[#allocation2 + $0x54] sm:$0xf] %v1096_v40  ;;  %1402 = vst [vmem:[#allocation2 + $0x58] sm:$0x1] %v1401_v41  ;;  %v1078_v47 = vor.u32 %v1076_v26, %v1075_v39  ;;  %v7639_v49 = vpack.c.bf16 %v863_v31, %v863_v31  ;;  %v783_v50 = vmul.f32 %v9064_v35, %v9157_v43 }
 0x123   : > { %v1080_v48 = vrot.slane %v1075_v39, 4  ;;  %v1549_v51 = vsel %vm9139_vm8, 0, %v1548_v46  ;;  %v7637_v52 = vpack.c.bf16 %v861_v44, %v861_v44  ;;  %v864_v53 = vmax.f32 %v828_v45, 0.0  ;;  %v8047_v39 = vpop.f32.mrf.mxu0 }
 0x124   : > { %v788_v55 = vmul.f32 %v9165_v54, %v9064_v35  ;;  %1550 = vst [vmem:[#allocation2 + $0x28] sm:$0x1] %v1549_v51  ;;  %v1502_v57 = vld [vmem:[#allocation2 + $0x50] sm:$0x1]  ;;  %v1079_v58 = vsel %vm9102_vm7, %v1071_v20, %v1078_v47  ;;  %v1116_v60 = vshrl.u32 %v7639_v49, 16  ;;  %v1119_v43 = vshll.u32 %v7639_v49, 16 }
 0x125   : > { %v1394_v59 = vsel %vm9094_vm6, %v1080_v48, %v1393_v42  ;;  %v1503_v61 = vsel %vm9094_vm6, 0, %v1502_v57  ;;  %1392 = vst [vmem:[#allocation2 + $0x44] sm:$0xf] %v1079_v58  ;;  %v1099_v63 = vshrl.u32 %v7637_v52, 16  ;;  %v1102_v0 = vshll.u32 %v7637_v52, 16 }
 0x126   : > { %1395 = vst [vmem:[#allocation2 + $0x48] sm:$0x1] %v1394_v59  ;;  %v7640_v54 = vpack.c.bf16 %v864_v53, %v864_v53  ;;  %1504 = vst [vmem:[#allocation2 + $0x50] sm:$0x1] %v1503_v61  ;;  %v1118_v1 = vrot.slane %v1116_v60, 7  ;;  %v826_v5 = vadd.f32 %v9069_v37, %v783_v50  ;;  %v831_v6 = vadd.f32 %v9069_v37, %v788_v55  ;;  %v703_v60 = vpop.f32.mrf.mxu0 }
 0x127   : > { %v786_v8 = vmul.f32 %v9064_v35, %v9173_v3  ;;  %v1499_v10 = vld [vmem:[#allocation2 + $0x40] sm:$0x1]  ;;  %v9221_v11 = vrot.slane %v1099_v63, 7  ;;  %v789_v14 = vmul.f32 %v9183_v17, %v9064_v35  ;;  %v1407_v53 = vld [vmem:[#allocation2 + $0x68] sm:$0x1]  ;;  %v787_v57 = vmul.f32 %v9064_v35, %v9192_v36 }
 0x128   : > { %v1124_v12 = vshrl.u32 %v7640_v54, 16  ;;  %v1127_v13 = vshll.u32 %v7640_v54, 16  ;;  %v1500_v18 = vsel %vm9094_vm6, 0, %v1499_v10  ;;  %v1121_v20 = vor.u32 %v1119_v43, %v1118_v1  ;;  %v1424_v63 = vld [vmem:[#allocation2 + $0x90] sm:$0xf] }
 0x129   : > { %v1122_v22 = vrot.slane %v1118_v1, 4  ;;  %v862_v24 = vmax.f32 %v826_v5, 0.0  ;;  %1501 = vst [vmem:[#allocation2 + $0x40] sm:$0x1] %v1500_v18  ;;  %v1557_v25 = vld [vmem:[#allocation2 + $0x58] sm:$0x1]  ;;  %v1104_v3 = vor.u32 %v1102_v0, %v9221_v11  ;;  %v829_v32 = vadd.f32 %v9069_v37, %v786_v8 }
 0x12a   : > { %v1105_v26 = vrot.slane %v9221_v11, 4  ;;  %v1126_v27 = vrot.slane %v1124_v12, 7  ;;  %v867_v28 = vmax.f32 %v831_v6, 0.0  ;;  %v1558_v29 = vsel %vm9139_vm8, 0, %v1557_v25  ;;  %v1417_v11 = vld [vmem:[#allocation2 + $0x80] sm:$0xf] }
 0x12b   : > { %v1411_v17 = vsel %vm9082_vm5, %v1121_v20, %v1410_v4  ;;  %v7638_v7 = vpack.c.bf16 %v862_v24, %v862_v24  ;;  %1559 = vst [vmem:[#allocation2 + $0x58] sm:$0x1] %v1558_v29  ;;  %v1404_v33 = vsel %vm9082_vm5, %v1104_v3, %v1403_v23  ;;  %v865_v42 = vmax.f32 %v829_v32, 0.0  ;;  %v1428_v32 = vld [vmem:[#allocation2 + $0x98] sm:$0x1] }
 0x12c   : > { %1412 = vst [vmem:[#allocation2 + $0x70] sm:$0xf] %v1411_v17  ;;  %v1129_v34 = vor.u32 %v1127_v13, %v1126_v27  ;;  %v1131_v19 = vrot.slane %v1126_v27, 4  ;;  %v7643_v38 = vpack.c.bf16 %v867_v28, %v867_v28  ;;  %1405 = vst [vmem:[#allocation2 + $0x60] sm:$0xf] %v1404_v33  ;;  %v832_v44 = vadd.f32 %v9069_v37, %v789_v14 }
 0x12d   : > { %v1554_v31 = vld [vmem:[#allocation2 + $0x48] sm:$0x1]  ;;  %v1107_v40 = vshrl.u32 %v7638_v7, 16  ;;  %v1110_v41 = vshll.u32 %v7638_v7, 16  ;;  %v7641_v51 = vpack.c.bf16 %v865_v42, %v865_v42  ;;  %v792_v58 = vmul.f32 %v9209_v56, %v9064_v35 }
 0x12e   : > { %v1555_v45 = vsel %vm9139_vm8, 0, %v1554_v31  ;;  %v1130_v46 = vsel %vm9102_vm7, %v1122_v22, %v1129_v34  ;;  %v1415_v47 = vsel %vm9094_vm6, %v1131_v19, %v1414_v30  ;;  %v1150_v48 = vshrl.u32 %v7643_v38, 16  ;;  %v8050_v22 = vpop.f32.mrf.mxu0 }
 0x12f   : > { %1556 = vst [vmem:[#allocation2 + $0x48] sm:$0x1] %v1555_v45  ;;  %1413 = vst [vmem:[#allocation2 + $0x74] sm:$0xf] %v1130_v46  ;;  %v1109_v49 = vrot.slane %v1107_v40, 7  ;;  %v1153_v50 = vshll.u32 %v7643_v38, 16  ;;  %v790_v59 = vmul.f32 %v9064_v35, %v700_v15  ;;  %v830_v6 = vadd.f32 %v9069_v37, %v787_v57 }
 0x130   : > { %1416 = vst [vmem:[#allocation2 + $0x78] sm:$0x1] %v1415_v47  ;;  %v868_v52 = vmax.f32 %v832_v44, 0.0  ;;  %v1152_v55 = vrot.slane %v1150_v48, 7  ;;  %v1133_v0 = vshrl.u32 %v7641_v51, 16  ;;  %v1136_v54 = vshll.u32 %v7641_v51, 16 }
 0x131   : > { %v1112_v43 = vor.u32 %v1110_v41, %v1109_v49  ;;  %v1114_v61 = vrot.slane %v1109_v49, 4  ;;  %v835_v12 = vadd.f32 %v9069_v37, %v792_v58  ;;  %v866_v3 = vmax.f32 %v830_v6, 0.0  ;;  %v716_v41 = vpop.f32.mrf.mxu0 }
 0x132   : > { %v1155_v1 = vor.u32 %v1153_v50, %v1152_v55  ;;  %v1156_v4 = vrot.slane %v1152_v55, 4  ;;  %v7644_v5 = vpack.c.bf16 %v868_v52, %v868_v52  ;;  %v9253_v10 = vrot.slane %v1133_v0, 7 }
 0x133   : > { %v1508_v8 = vld [vmem:[#allocation2 + $0x70] sm:$0x1]  ;;  %v1113_v36 = vsel %vm9102_vm7, %v1105_v26, %v1112_v43  ;;  %v1408_v56 = vsel %vm9094_vm6, %v1114_v61, %v1407_v53  ;;  %v1505_v14 = vld [vmem:[#allocation2 + $0x60] sm:$0x1]  ;;  %v871_v28 = vmax.f32 %v835_v12, 0.0  ;;  %v833_v29 = vadd.f32 %v9069_v37, %v790_v59 }
 0x134   : > { %v1509_v13 = vsel %vm9094_vm6, 0, %v1508_v8  ;;  %1406 = vst [vmem:[#allocation2 + $0x64] sm:$0xf] %v1113_v36  ;;  %1409 = vst [vmem:[#allocation2 + $0x68] sm:$0x1] %v1408_v56  ;;  %v1425_v15 = vsel %vm9082_vm5, %v1155_v1, %v1424_v63  ;;  %v1158_v18 = vshrl.u32 %v7644_v5, 16  ;;  %v1138_v24 = vor.u32 %v1136_v54, %v9253_v10  ;;  %v8051_v63 = vpop.f32.mrf.mxu0 }
 0x135   : > { %v1161_v20 = vshll.u32 %v7644_v5, 16  ;;  %1510 = vst [vmem:[#allocation2 + $0x70] sm:$0x1] %v1509_v13  ;;  %v1506_v23 = vsel %vm9094_vm6, 0, %v1505_v14  ;;  %1426 = vst [vmem:[#allocation2 + $0x90] sm:$0xf] %v1425_v15  ;;  %v793_v17 = vmul.f32 %v8047_v39, %v9064_v35  ;;  %v7642_v33 = vpack.c.bf16 %v866_v3, %v866_v3 }
 0x136   : > { %v1139_v25 = vrot.slane %v9253_v10, 4  ;;  %1507 = vst [vmem:[#allocation2 + $0x60] sm:$0x1] %v1506_v23  ;;  %v1160_v27 = vrot.slane %v1158_v18, 7  ;;  %v1418_v7 = vsel %vm9082_vm5, %v1138_v24, %v1417_v11  ;;  %v791_v34 = vmul.f32 %v9064_v35, %v703_v60  ;;  %v1421_v59 = vld [vmem:[#allocation2 + $0x88] sm:$0x1]  ;;  %v719_v24 = vpop.f32.mrf.mxu0 }
 0x137   : > { %v1563_v26 = vld [vmem:[#allocation2 + $0x78] sm:$0x1]  ;;  %1419 = vst [vmem:[#allocation2 + $0x80] sm:$0xf] %v1418_v7  ;;  %v7647_v31 = vpack.c.bf16 %v871_v28, %v871_v28  ;;  %v869_v40 = vmax.f32 %v833_v29, 0.0  ;;  %v1141_v42 = vshrl.u32 %v7642_v33, 16  ;;  %v836_v39 = vadd.f32 %v9069_v37, %v793_v17 }
 0x138   : > { %v1564_v30 = vsel %vm9139_vm8, 0, %v1563_v26  ;;  %v1163_v19 = vor.u32 %v1161_v20, %v1160_v27  ;;  %v1165_v38 = vrot.slane %v1160_v27, 4  ;;  %v1144_v44 = vshll.u32 %v7642_v33, 16  ;;  %v1431_v20 = vld [vmem:[#allocation2 + $0xa0] sm:$0xf] }
 0x139   : > { %1565 = vst [vmem:[#allocation2 + $0x78] sm:$0x1] %v1564_v30  ;;  %v834_v45 = vadd.f32 %v9069_v37, %v791_v34  ;;  %v1184_v48 = vshrl.u32 %v7647_v31, 16  ;;  %v1187_v49 = vshll.u32 %v7647_v31, 16  ;;  %v1143_v51 = vrot.slane %v1141_v42, 7 }
 0x13a   : > { %v1164_v46 = vsel %vm9102_vm7, %v1156_v4, %v1163_v19  ;;  %v1429_v47 = vsel %vm9094_vm6, %v1165_v38, %v1428_v32  ;;  %v7645_v52 = vpack.c.bf16 %v869_v40, %v869_v40  ;;  %v872_v53 = vmax.f32 %v836_v39, 0.0  ;;  %v1438_v4 = vld [vmem:[#allocation2 + $0xb0] sm:$0xf]  ;;  %v1442_v17 = vld [vmem:[#allocation2 + $0xb8] sm:$0x1] }
 0x13b   : > { %v1560_v50 = vld [vmem:[#allocation2 + $0x68] sm:$0x1]  ;;  %1427 = vst [vmem:[#allocation2 + $0x94] sm:$0xf] %v1164_v46  ;;  %1430 = vst [vmem:[#allocation2 + $0x98] sm:$0x1] %v1429_v47  ;;  %v796_v43 = vmul.f32 %v8050_v22, %v9064_v35  ;;  %v794_v61 = vmul.f32 %v9064_v35, %v716_v41  ;;  %v1146_v54 = vor.u32 %v1144_v44, %v1143_v51 }
 0x13c   : > { %v870_v55 = vmax.f32 %v834_v45, 0.0  ;;  %v1561_v57 = vsel %vm9139_vm8, 0, %v1560_v50  ;;  %v1514_v58 = vld [vmem:[#allocation2 + $0x90] sm:$0x1]  ;;  %v1186_v60 = vrot.slane %v1184_v48, 7  ;;  %v1148_v1 = vrot.slane %v1143_v51, 4 }
 0x13d   : > { %1562 = vst [vmem:[#allocation2 + $0x68] sm:$0x1] %v1561_v57  ;;  %v1515_v0 = vsel %vm9094_vm6, 0, %v1514_v58  ;;  %v1167_v5 = vshrl.u32 %v7645_v52, 16  ;;  %v1170_v36 = vshll.u32 %v7645_v52, 16  ;;  %v7648_v56 = vpack.c.bf16 %v872_v53, %v872_v53 }
 0x13e   : > { %1516 = vst [vmem:[#allocation2 + $0x90] sm:$0x1] %v1515_v0  ;;  %v1189_v6 = vor.u32 %v1187_v49, %v1186_v60  ;;  %v1190_v8 = vrot.slane %v1186_v60, 4  ;;  %v1511_v10 = vld [vmem:[#allocation2 + $0x80] sm:$0x1]  ;;  %v1147_v11 = vsel %vm9102_vm7, %v1139_v25, %v1146_v54  ;;  %v1422_v12 = vsel %vm9094_vm6, %v1148_v1, %v1421_v59 }
 0x13f   : > { %v1169_v13 = vrot.slane %v1167_v5, 7  ;;  %v7646_v14 = vpack.c.bf16 %v870_v55, %v870_v55  ;;  %v1512_v15 = vsel %vm9094_vm6, 0, %v1511_v10  ;;  %1420 = vst [vmem:[#allocation2 + $0x84] sm:$0xf] %v1147_v11  ;;  %1423 = vst [vmem:[#allocation2 + $0x88] sm:$0x1] %v1422_v12  ;;  %v839_v30 = vadd.f32 %v9069_v37, %v796_v43 }
 0x140   : > { %v1439_v18 = vsel %vm9082_vm5, %v1189_v6, %v1438_v4  ;;  %v1192_v22 = vshrl.u32 %v7648_v56, 16  ;;  %v1195_v23 = vshll.u32 %v7648_v56, 16  ;;  %1513 = vst [vmem:[#allocation2 + $0x80] sm:$0x1] %v1512_v15  ;;  %v837_v7 = vadd.f32 %v9069_v37, %v794_v61  ;;  %v1435_v41 = vld [vmem:[#allocation2 + $0xa8] sm:$0x1] }
 0x141   : > { %1440 = vst [vmem:[#allocation2 + $0xb0] sm:$0xf] %v1439_v18  ;;  %v1172_v25 = vor.u32 %v1170_v36, %v1169_v13  ;;  %v1173_v3 = vrot.slane %v1169_v13, 4  ;;  %v1175_v26 = vshrl.u32 %v7646_v14, 16  ;;  %v1178_v27 = vshll.u32 %v7646_v14, 16  ;;  %v8054_v18 = vpop.f32.mrf.mxu0 }
 0x142   : > { %v1569_v28 = vld [vmem:[#allocation2 + $0x98] sm:$0x1]  ;;  %v1194_v29 = vrot.slane %v1192_v22, 7  ;;  %v797_v32 = vmul.f32 %v8051_v63, %v9064_v35  ;;  %v795_v38 = vmul.f32 %v9064_v35, %v719_v24  ;;  %v875_v42 = vmax.f32 %v839_v30, 0.0  ;;  %v1452_v0 = vld [vmem:[#allocation2 + $0xd0] sm:$0xf] }
 0x143   : > { %v1570_v33 = vsel %vm9139_vm8, 0, %v1569_v28  ;;  %v1432_v34 = vsel %vm9082_vm5, %v1172_v25, %v1431_v20  ;;  %v1177_v19 = vrot.slane %v1175_v26, 7  ;;  %v873_v44 = vmax.f32 %v837_v7, 0.0  ;;  %v1445_v1 = vld [vmem:[#allocation2 + $0xc0] sm:$0xf] }
 0x144   : > { %1571 = vst [vmem:[#allocation2 + $0x98] sm:$0x1] %v1570_v33  ;;  %1433 = vst [vmem:[#allocation2 + $0xa0] sm:$0xf] %v1432_v34  ;;  %v1197_v31 = vor.u32 %v1195_v23, %v1194_v29  ;;  %v1199_v40 = vrot.slane %v1194_v29, 4  ;;  %v840_v46 = vadd.f32 %v9069_v37, %v797_v32  ;;  %v838_v47 = vadd.f32 %v9069_v37, %v795_v38 }
 0x145   : > { %v1180_v39 = vor.u32 %v1178_v27, %v1177_v19  ;;  %v1182_v45 = vrot.slane %v1177_v19, 4  ;;  %v7651_v35 = vpack.c.bf16 %v875_v42, %v875_v42  ;;  %v7649_v50 = vpack.c.bf16 %v873_v44, %v873_v44  ;;  %v1615_v37 = vld [vmem:[#allocation2] sm:$0xf]  ;;  %v9313_v36 = vld [vmem:[#allocation2 + $0x4] sm:$0xf]  ;;  %v732_v44 = vpop.f32.mrf.mxu0 }
 0x146   : > { %v1198_v48 = vsel %vm9102_vm7, %v1190_v8, %v1197_v31  ;;  %v1443_v49 = vsel %vm9094_vm6, %v1199_v40, %v1442_v17  ;;  %v1566_v51 = vld [vmem:[#allocation2 + $0x88] sm:$0x1]  ;;  %v876_v55 = vmax.f32 %v840_v46, 0.0  ;;  %v874_v57 = vmax.f32 %v838_v47, 0.0  ;;  %v1456_v25 = vld [vmem:[#allocation2 + $0xd8] sm:$0x1] }
 0x147   : > { %1441 = vst [vmem:[#allocation2 + $0xb4] sm:$0xf] %v1198_v48  ;;  %1444 = vst [vmem:[#allocation2 + $0xb8] sm:$0x1] %v1443_v49  ;;  %v1181_v52 = vsel %vm9102_vm7, %v1173_v3, %v1180_v39  ;;  %v1436_v53 = vsel %vm9094_vm6, %v1182_v45, %v1435_v41  ;;  %v1567_v58 = vsel %vm9139_vm8, 0, %v1566_v51  ;;  %v1218_v60 = vshrl.u32 %v7651_v35, 16 }
 0x148   : > { %v1520_v59 = vld [vmem:[#allocation2 + $0xb0] sm:$0x1]  ;;  %1434 = vst [vmem:[#allocation2 + $0xa4] sm:$0xf] %v1181_v52  ;;  %1437 = vst [vmem:[#allocation2 + $0xa8] sm:$0x1] %v1436_v53  ;;  %v7652_v4 = vpack.c.bf16 %v876_v55, %v876_v55  ;;  %v7650_v5 = vpack.c.bf16 %v874_v57, %v874_v57 }
 0x149   : > { %v1221_v43 = vshll.u32 %v7651_v35, 16  ;;  %v1201_v61 = vshrl.u32 %v7649_v50, 16  ;;  %1568 = vst [vmem:[#allocation2 + $0x88] sm:$0x1] %v1567_v58  ;;  %v1521_v63 = vsel %vm9094_vm6, 0, %v1520_v59  ;;  %v1204_v54 = vshll.u32 %v7649_v50, 16 }
 0x14a   : > { %1522 = vst [vmem:[#allocation2 + $0xb0] sm:$0x1] %v1521_v63  ;;  %v1220_v6 = vrot.slane %v1218_v60, 7  ;;  %v1683_v56 = vshrl.u32 %v1615_v37, 16  ;;  %v1686_v10 = vshll.u32 %v1615_v37, 16  ;;  %v1226_v12 = vshrl.u32 %v7652_v4, 16  ;;  %v8055_v63 = vpop.f32.mrf.mxu0 }
 0x14b   : > { %v1203_v8 = vrot.slane %v1201_v61, 7  ;;  %v1517_v11 = vld [vmem:[#allocation2 + $0xa0] sm:$0x1]  ;;  %v1229_v13 = vshll.u32 %v7652_v4, 16  ;;  %v1209_v14 = vshrl.u32 %v7650_v5, 16  ;;  %v1212_v15 = vshll.u32 %v7650_v5, 16 }
 0x14c   : > { %v1518_v20 = vsel %vm9094_vm6, 0, %v1517_v11  ;;  %v1223_v22 = vor.u32 %v1221_v43, %v1220_v6  ;;  %v1224_v23 = vrot.slane %v1220_v6, 4  ;;  %v1228_v26 = vrot.slane %v1226_v12, 7  ;;  %v1449_v28 = vld [vmem:[#allocation2 + $0xc8] sm:$0x1] }
 0x14d   : > { %v1206_v24 = vor.u32 %v1204_v54, %v1203_v8  ;;  %1519 = vst [vmem:[#allocation2 + $0xa0] sm:$0x1] %v1518_v20  ;;  %v1207_v3 = vrot.slane %v1203_v8, 4  ;;  %v1211_v27 = vrot.slane %v1209_v14, 7  ;;  %v1685_v29 = vrot.slane %v1683_v56, 4 }
 0x14e   : > { %v1575_v17 = vld [vmem:[#allocation2 + $0xb8] sm:$0x1]  ;;  %v1453_v30 = vsel %vm9082_vm5, %v1223_v22, %v1452_v0  ;;  %v1688_v32 = vrot.slane %v1686_v10, 5  ;;  %v1692_v33 = vshll.u32 %v9313_v36, 16  ;;  %v9322_v34 = vld [vmem:[#allocation2 + $0x14] sm:$0xf]  ;;  %v1231_v31 = vor.u32 %v1229_v13, %v1228_v26 }
 0x14f   : > { %v1446_v7 = vsel %vm9082_vm5, %v1206_v24, %v1445_v1  ;;  %v1576_v19 = vsel %vm9139_vm8, 0, %v1575_v17  ;;  %v1572_v38 = vld [vmem:[#allocation2 + $0xa8] sm:$0x1]  ;;  %1454 = vst [vmem:[#allocation2 + $0xd0] sm:$0xf] %v1453_v30  ;;  %v1233_v40 = vrot.slane %v1228_v26, 4  ;;  %v1214_v41 = vor.u32 %v1212_v15, %v1211_v27 }
 0x150   : > { %1447 = vst [vmem:[#allocation2 + $0xc0] sm:$0xf] %v1446_v7  ;;  %v9326_v42 = vld [vmem:[#allocation2 + $0x8] sm:$0x1]  ;;  %1577 = vst [vmem:[#allocation2 + $0xb8] sm:$0x1] %v1576_v19  ;;  %v1689_v46 = vor.u32 %v1688_v32, %v1685_v29  ;;  %v1232_v49 = vsel %vm9102_vm7, %v1224_v23, %v1231_v31 }
 0x151   : > { %v1573_v39 = vsel %vm9139_vm8, 0, %v1572_v38  ;;  %v1216_v45 = vrot.slane %v1211_v27, 4  ;;  %v1694_v47 = vrot.slane %v1692_v33, 5  ;;  %v1617_v48 = vld [vmem:[#allocation2 + $0x10] sm:$0xf]  ;;  %v1457_v35 = vsel %vm9094_vm6, %v1233_v40, %v1456_v25 }
 0x152   : > { %1574 = vst [vmem:[#allocation2 + $0xa8] sm:$0x1] %v1573_v39  ;;  %v1215_v50 = vsel %vm9102_vm7, %v1207_v3, %v1214_v41  ;;  %v1696_v51 = vshrl.u32 %v9313_v36, 16  ;;  %1455 = vst [vmem:[#allocation2 + $0xd4] sm:$0xf] %v1232_v49  ;;  %v1690_v53 = vrot.slane %v1689_v46, 4 }
 0x153   : > { %1458 = vst [vmem:[#allocation2 + $0xd8] sm:$0x1] %v1457_v35  ;;  %1448 = vst [vmem:[#allocation2 + $0xc4] sm:$0xf] %v1215_v50  ;;  %v1450_v52 = vsel %vm9094_vm6, %v1216_v45, %v1449_v28  ;;  %v1702_v55 = vshll.u32 %v9326_v42, 16  ;;  %v1707_v60 = vshrl.u32 %v1617_v48, 16 }
 0x154   : > { %v9343_v57 = vld [vmem:[%s11931_s2] ss:$0 sm:$0xff]  ;;  %1451 = vst [vmem:[#allocation2 + $0xc8] sm:$0x1] %v1450_v52  ;;  %v1698_v59 = vrot.slane %v1696_v51, 4  ;;  %v1710_v43 = vshll.u32 %v1617_v48, 16  ;;  %v1695_v0 = vsel %vm9348_vm11, %v1690_v53, %v1694_v47 }
 0x155   : > { %v800_v37 = vmul.f32 %v9343_v57, %v8054_v18  ;;  %v1716_v61 = vshll.u32 %v9322_v34, 16  ;;  %v1704_v54 = vrot.slane %v1702_v55, 5  ;;  %v9358_v1 = vld [vmem:[%s11932_s3] ss:$0 sm:$0xff]  ;;  %v9361_v5 = vld [vmem:[#allocation2 + $0x18] sm:$0x1]  ;;  %v798_v22 = vmul.f32 %v9343_v57, %v732_v44 }
 0x156   : > { %v1720_v6 = vshrl.u32 %v9322_v34, 16  ;;  %v9364_v8 = vld [vmem:[#allocation2 + $0x24] sm:$0xf]  ;;  %v1699_v56 = vor.u32 %v1698_v59, %v1694_v47  ;;  %v1709_v10 = vrot.slane %v1707_v60, 4  ;;  %v1712_v11 = vrot.slane %v1710_v43, 5  ;;  %v735_v60 = vpop.f32.mrf.mxu0 }
 0x157   : > { %v843_v4 = vadd.f32 %v9358_v1, %v800_v37  ;;  %v1718_v12 = vrot.slane %v1716_v61, 5  ;;  %v1619_v13 = vld [vmem:[#allocation2 + $0x20] sm:$0xf]  ;;  %v1526_v14 = vld [vmem:[#allocation2 + $0xd0] sm:$0x1]  ;;  %v801_v23 = vmul.f32 %v9343_v57, %v8055_v63  ;;  %v1726_v29 = vshll.u32 %v9361_v5, 16 }
 0x158   : > { %v1523_v15 = vld [vmem:[#allocation2 + $0xc0] sm:$0x1]  ;;  %v1722_v20 = vrot.slane %v1720_v6, 4  ;;  %v1527_v24 = vsel %vm9094_vm6, 0, %v1526_v14  ;;  %v1700_v3 = vrot.slane %v1699_v56, 4  ;;  %v1713_v26 = vor.u32 %v1712_v11, %v1709_v10 }
 0x159   : > { %v879_v18 = vmax.f32 %v843_v4, 0.0  ;;  %v1524_v25 = vsel %vm9094_vm6, 0, %v1523_v15  ;;  %1528 = vst [vmem:[#allocation2 + $0xd0] sm:$0x1] %v1527_v24  ;;  %v9373_v17 = vld [vmem:[#allocation2 + $0x28] sm:$0x1]  ;;  %v841_v59 = vadd.f32 %v9358_v1, %v798_v22  ;;  %v844_v11 = vadd.f32 %v9358_v1, %v801_v23 }
 0x15a   : > { %1525 = vst [vmem:[#allocation2 + $0xc0] sm:$0x1] %v1524_v25  ;;  %v1723_v28 = vor.u32 %v1722_v20, %v1718_v12  ;;  %v1731_v30 = vshrl.u32 %v1619_v13, 16  ;;  %v1581_v7 = vld [vmem:[#allocation2 + $0xd8] sm:$0x1]  ;;  %v1705_v32 = vsel %vm9348_vm11, %v1700_v3, %v1704_v54  ;;  %v1714_v33 = vrot.slane %v1713_v26, 4 }
 0x15b   : > { %v7655_v27 = vpack.c.bf16 %v879_v18, %v879_v18  ;;  %v1734_v19 = vshll.u32 %v1619_v13, 16  ;;  %v1740_v38 = vshll.u32 %v9364_v8, 16  ;;  %v1582_v31 = vsel %vm9139_vm8, 0, %v1581_v7  ;;  %v1578_v40 = vld [vmem:[#allocation2 + $0xc8] sm:$0x1]  ;;  %v8650_v4 = vld [vmem:[%s11933_s4 + $0xb0] sm:$0xff]  }
 0x15c   : > { %v7200_v41 = vcombine.low %v1695_v0, %v1705_v32  ;;  %1583 = vst [vmem:[#allocation2 + $0xd8] sm:$0x1] %v1582_v31  ;;  %v1579_v45 = vsel %vm9139_vm8, 0, %v1578_v40  ;;  %v1719_v46 = vsel %vm9348_vm11, %v1714_v33, %v1718_v12  ;;  %v1724_v47 = vrot.slane %v1723_v28, 4  ;;  %v1466_v52 = vld [vmem:[#allocation2 + $0xf0] sm:$0xf] }
 0x15d   : > { %v1252_v44 = vshrl.u32 %v7655_v27, 16  ;;  %v1255_v39 = vshll.u32 %v7655_v27, 16  ;;  %v1728_v48 = vrot.slane %v1726_v29, 5  ;;  %1580 = vst [vmem:[#allocation2 + $0xc8] sm:$0x1] %v1579_v45  ;;  %v1733_v35 = vrot.slane %v1731_v30, 4 }
 0x15e   : > { %8076 = vmatprep.mubr.bf16.mxu0 %v7200_v41  ;;  %v1736_v50 = vrot.slane %v1734_v19, 5  ;;  %v1742_v51 = vrot.slane %v1740_v38, 5  ;;  %v1744_v55 = vshrl.u32 %v9364_v8, 16  ;;  %v1750_v37 = vshll.u32 %v9373_v17, 16  ;;  %v1621_v43 = vld [vmem:[#allocation2 + $0x30] sm:$0xf] }
 0x15f   : > { %v9384_v49 = vrot.slane %v1252_v44, 7  ;;  %v1729_v53 = vsel %vm9348_vm11, %v1724_v47, %v1728_v48  ;;  %v877_v10 = vmax.f32 %v841_v59, 0.0  ;;  %v9397_v12 = vld [vmem:[#allocation2 + $0x34] sm:$0xf]  ;;  %v799_v15 = vmul.f32 %v9343_v57, %v735_v60  ;;  %v8771_v22 = vld [vmem:[%s11933_s4 + $0xb8] sm:$0xff]   ;;  %v8651_v28 = vld [vmem:[%s11933_s4 + $0xa8] sm:$0xff]  }
 0x160   : > { %v7201_v0 = vcombine.low %v1719_v46, %v1729_v53  ;;  %v1737_v54 = vor.u32 %v1736_v50, %v1733_v35  ;;  %v1746_v6 = vrot.slane %v1744_v55, 4  ;;  %v1752_v56 = vrot.slane %v1750_v37, 5  ;;  %v9412_v19 = vld [vmem:[#allocation2 + $0x38] sm:$0x1]  ;;  %v1459_v46 = vld [vmem:[#allocation2 + $0xe0] sm:$0xf] }
 0x161   : > { %v1257_v61 = vor.u32 %v1255_v39, %v9384_v49  ;;  %v1258_v63 = vrot.slane %v9384_v49, 4  ;;  %v1755_v18 = vshrl.u32 %v1621_v43, 16  ;;  %v7653_v24 = vpack.c.bf16 %v877_v10, %v877_v10  ;;  %v1470_v47 = vld [vmem:[#allocation2 + $0xf8] sm:$0x1]  ;;  %v9421_v59 = vld [vmem:[#allocation2 + $0x40] sm:$0xf] }
 0x162   : > { %8077 = vmatmul.mubr.bf16.vlgmr.msra.gmra.mxu0 %v7201_v0  ;;  %v1738_v14 = vrot.slane %v1737_v54, 4  ;;  %v1747_v20 = vor.u32 %v1746_v6, %v1742_v51  ;;  %v880_v25 = vmax.f32 %v844_v11, 0.0  ;;  %v1758_v23 = vshll.u32 %v1621_v43, 16  ;;  %v9427_v11 = vld [vmem:[#allocation2 + $0x44] sm:$0xf] }
 0x163   : > { %v1467_v13 = vsel %vm9082_vm5, %v1257_v61, %v1466_v52  ;;  %8157 = vmatpush3.bf16.msra.mxu0 %v8771_v22  ;;  %v842_v26 = vadd.f32 %v9358_v1, %v799_v15  ;;  %v1757_v27 = vrot.slane %v1755_v18, 4  ;;  %v1764_v57 = vshll.u32 %v9397_v12, 16  ;;  %v8653_v22 = vld [vmem:[%s11933_s4 + $0x98] sm:$0xff]   ;;  %v2667_v21 = vld [vmem:[#allocation2 + $0x60] sm:$0xe] }
 0x164   : > { %1468 = vst [vmem:[#allocation2 + $0xf0] sm:$0xf] %v1467_v13  ;;  %v1743_v3 = vsel %vm9348_vm11, %v1738_v14, %v1742_v51  ;;  %8158 = vmatprep.subr.bf16.mxu0 %v8650_v4  ;;  %v1748_v29 = vrot.slane %v1747_v20, 4  ;;  %v1235_v30 = vshrl.u32 %v7653_v24, 16  ;;  %v1238_v7 = vshll.u32 %v7653_v24, 16  ;;  %v8652_v51 = vld [vmem:[%s11933_s4 + $0xa0] sm:$0xff]  }
 0x165   : > { %v7656_v32 = vpack.c.bf16 %v880_v25, %v880_v25  ;;  %v878_v33 = vmax.f32 %v842_v26, 0.0  ;;  %v1760_v38 = vrot.slane %v1758_v23, 5  ;;  %v1766_v31 = vrot.slane %v1764_v57, 5  ;;  %v1463_v14 = vld [vmem:[#allocation2 + $0xe8] sm:$0x1] }
 0x166   : > { %v1768_v40 = vshrl.u32 %v9397_v12, 16  ;;  %v1753_v1 = vsel %vm9348_vm11, %v1748_v29, %v1752_v56  ;;  %v1237_v41 = vrot.slane %v1235_v30, 7  ;;  %v1774_v37 = vshll.u32 %v9412_v19, 16  ;;  %v9440_v23 = vld [vmem:[#allocation2 + $0x48] sm:$0x1] }
 0x167   : > { %v1260_v44 = vshrl.u32 %v7656_v32, 16  ;;  %v1263_v39 = vshll.u32 %v7656_v32, 16  ;;  %8159 = vmatpush3.bf16.msra.mxu0 %v8650_v4  ;;  %v7202_v45 = vcombine.low %v1743_v3, %v1753_v1  ;;  %v7654_v48 = vpack.c.bf16 %v878_v33, %v878_v33  ;;  %v9449_v29 = vld [vmem:[#allocation2 + $0x50] sm:$0xf] }
 0x168   : > { %v1761_v35 = vor.u32 %v1760_v38, %v1757_v27  ;;  %v1770_v50 = vrot.slane %v1768_v40, 4  ;;  %8160 = vmatprep.subr.bf16.mxu0 %v8651_v28  ;;  %v1240_v52 = vor.u32 %v1238_v7, %v1237_v41  ;;  %v1241_v53 = vrot.slane %v1237_v41, 4  ;;  %v9444_v27 = vld [vmem:[#allocation2 + $0x54] sm:$0xf]  ;;  %v9452_v38 = vld [vmem:[#allocation2 + $0x58] sm:$0x1] }
 0x169   : > { %v1262_v55 = vrot.slane %v1260_v44, 7  ;;  %8080 = vmatprep.mubr.bf16.mxu0 %v7202_v45  ;;  %v1243_v43 = vshrl.u32 %v7654_v48, 16  ;;  %v1246_v61 = vshll.u32 %v7654_v48, 16  ;;  %v1776_v20 = vrot.slane %v1774_v37, 5  ;;  %v9464_v48 = vld [vmem:[#allocation2 + $0x64] sm:$0xf] }
 0x16a   : > { %v1762_v0 = vrot.slane %v1761_v35, 4  ;;  %v1771_v54 = vor.u32 %v1770_v50, %v1766_v31  ;;  %v1460_v6 = vsel %vm9082_vm5, %v1240_v52, %v1459_v46  ;;  %v1779_v3 = vshrl.u32 %v9421_v59, 16 }
 0x16b   : > { %v1532_v60 = vld [vmem:[#allocation2 + $0xf0] sm:$0x1]  ;;  %v1265_v56 = vor.u32 %v1263_v39, %v1262_v55  ;;  %v1267_v10 = vrot.slane %v1262_v55, 4  ;;  %8161 = vmatpush3.bf16.msra.mxu0 %v8651_v28  ;;  %1461 = vst [vmem:[#allocation2 + $0xe0] sm:$0xf] %v1460_v6  ;;  %v1245_v13 = vrot.slane %v1243_v43, 7 }
 0x16c   : > { %v1533_v4 = vsel %vm9094_vm6, 0, %v1532_v60  ;;  %v1767_v15 = vsel %vm9348_vm11, %v1762_v0, %v1766_v31  ;;  %v1772_v18 = vrot.slane %v1771_v54, 4  ;;  %8162 = vmatprep.subr.bf16.mxu0 %v8652_v51  ;;  %v1782_v26 = vshll.u32 %v9421_v59, 16  ;;  %v8654_v31 = vld [vmem:[%s11933_s4 + $0x90] sm:$0xff]  }
 0x16d   : > { %1534 = vst [vmem:[#allocation2 + $0xf0] sm:$0x1] %v1533_v4  ;;  %v1266_v24 = vsel %vm9102_vm7, %v1258_v63, %v1265_v56  ;;  %v1471_v25 = vsel %vm9094_vm6, %v1267_v10, %v1470_v47  ;;  %v1248_v57 = vor.u32 %v1246_v61, %v1245_v13  ;;  %v1250_v28 = vrot.slane %v1245_v13, 4  ;;  %v8656_v56 = vld [vmem:[%s11933_s4 + $0x88] sm:$0xff]  }
 0x16e   : > { %1469 = vst [vmem:[#allocation2 + $0xf4] sm:$0xf] %v1266_v24  ;;  %1472 = vst [vmem:[#allocation2 + $0xf8] sm:$0x1] %v1471_v25  ;;  %v1777_v49 = vsel %vm9348_vm11, %v1772_v18, %v1776_v20  ;;  %v1788_v63 = vshll.u32 %v9427_v11, 16  ;;  %v1781_v7 = vrot.slane %v1779_v3, 4 }
 0x16f   : > { %v7203_v30 = vcombine.low %v1767_v15, %v1777_v49  ;;  %v1784_v32 = vrot.slane %v1782_v26, 5  ;;  %v1792_v33 = vshrl.u32 %v9427_v11, 16  ;;  %8163 = vmatpush3.bf16.msra.mxu0 %v8652_v51  ;;  %v1249_v40 = vsel %vm9102_vm7, %v1241_v53, %v1248_v57  ;;  %v9469_v53 = vld [vmem:[#allocation2 + $0x60] sm:$0xf]  ;;  %v9478_v18 = vld [vmem:[#allocation2 + $0x68] sm:$0x1] }
 0x170   : > { %v1464_v1 = vsel %vm9094_vm6, %v1250_v28, %v1463_v14  ;;  %v1790_v41 = vrot.slane %v1788_v63, 5  ;;  %v1798_v44 = vshll.u32 %v9440_v23, 16  ;;  %8164 = vmatprep.subr.bf16.mxu0 %v8653_v22  ;;  %1462 = vst [vmem:[#allocation2 + $0xe4] sm:$0xf] %v1249_v40  ;;  %v1803_v46 = vshrl.u32 %v9449_v29, 16 }
 0x171   : > { %1465 = vst [vmem:[#allocation2 + $0xe8] sm:$0x1] %v1464_v1  ;;  %8081 = vmatmul.mubr.bf16.gmra.mxu0 %v7203_v30  ;;  %v1785_v39 = vor.u32 %v1784_v32, %v1781_v7  ;;  %v1794_v45 = vrot.slane %v1792_v33, 4  ;;  %v1806_v47 = vshll.u32 %v9449_v29, 16  ;;  %v1812_v50 = vshll.u32 %v9444_v27, 16 }
 0x172   : > { %v1800_v35 = vrot.slane %v1798_v44, 5  ;;  %v1816_v51 = vshrl.u32 %v9444_v27, 16  ;;  %v1822_v52 = vshll.u32 %v9452_v38, 16  ;;  %v1529_v55 = vld [vmem:[#allocation2 + $0xe0] sm:$0x1]  ;;  %v1805_v43 = vrot.slane %v1803_v46, 4 }
 0x173   : > { %v1786_v37 = vrot.slane %v1785_v39, 4  ;;  %v1795_v60 = vor.u32 %v1794_v45, %v1790_v41  ;;  %v1808_v61 = vrot.slane %v1806_v47, 5  ;;  %8165 = vmatpush3.bf16.msra.mxu0 %v8653_v22  ;;  %v1530_v0 = vsel %vm9094_vm6, 0, %v1529_v55  ;;  %v9485_v26 = vld [vmem:[#allocation2 + $0x84] sm:$0xf] }
 0x174   : > { %v1814_v54 = vrot.slane %v1812_v50, 5  ;;  %v1818_v4 = vrot.slane %v1816_v51, 4  ;;  %v1824_v6 = vrot.slane %v1822_v52, 5  ;;  %8166 = vmatprep.subr.bf16.mxu0 %v8654_v31  ;;  %1531 = vst [vmem:[#allocation2 + $0xe0] sm:$0x1] %v1530_v0  ;;  %v1827_v20 = vshrl.u32 %v9469_v53, 16 }
 0x175   : > { %v1587_v10 = vld [vmem:[#allocation2 + $0xf8] sm:$0x1]  ;;  %v1791_v13 = vsel %vm9348_vm11, %v1786_v37, %v1790_v41  ;;  %v1796_v14 = vrot.slane %v1795_v60, 4  ;;  %v1809_v15 = vor.u32 %v1808_v61, %v1805_v43  ;;  %v1830_v25 = vshll.u32 %v9469_v53, 16  ;;  %v9490_v30 = vld [vmem:[#allocation2 + $0x80] sm:$0xf] }
 0x176   : > { %v1588_v22 = vsel %vm9139_vm8, 0, %v1587_v10  ;;  %v1819_v24 = vor.u32 %v1818_v4, %v1814_v54  ;;  %v1836_v3 = vshll.u32 %v9464_v48, 16  ;;  %v1829_v49 = vrot.slane %v1827_v20, 4  ;;  %v8658_v41 = vld [vmem:[%s11933_s4 + $0x80] sm:$0xff]   ;;  %v9507_v43 = vld [vmem:[#allocation2 + $0x90] sm:$0xf] }
 0x177   : > { %1589 = vst [vmem:[#allocation2 + $0xf8] sm:$0x1] %v1588_v22  ;;  %v1801_v57 = vsel %vm9348_vm11, %v1796_v14, %v1800_v35  ;;  %v1810_v28 = vrot.slane %v1809_v15, 4  ;;  %v1840_v63 = vshrl.u32 %v9464_v48, 16  ;;  %8167 = vmatpush3.bf16.msra.mxu0 %v8654_v31  ;;  %v1832_v40 = vrot.slane %v1830_v25, 5  ;;  %v9512_v61 = vld [vmem:[%s11933_s4 + $0x138] sm:$0xff]  }
 0x178   : > { %v1584_v7 = vld [vmem:[#allocation2 + $0xe8] sm:$0x1]  ;;  %v7204_v32 = vcombine.low %v1791_v13, %v1801_v57  ;;  %v1820_v33 = vrot.slane %v1819_v24, 4  ;;  %v1838_v1 = vrot.slane %v1836_v3, 5  ;;  %8168 = vmatprep.subr.bf16.mxu0 %v8656_v56  ;;  %v1846_v31 = vshll.u32 %v9478_v18, 16 }
 0x179   : > { %v1585_v44 = vsel %vm9139_vm8, 0, %v1584_v7  ;;  %v1815_v39 = vsel %vm9348_vm11, %v1810_v28, %v1814_v54  ;;  %v1842_v45 = vrot.slane %v1840_v63, 4  ;;  %v1833_v47 = vor.u32 %v1832_v40, %v1829_v49  ;;  %v9502_v35 = vld [vmem:[#allocation2 + $0x88] sm:$0x1]  ;;  %v9515_v10 = vld [vmem:[#allocation2 + $0x94] sm:$0xf] }
 0x17a   : > { %1586 = vst [vmem:[#allocation2 + $0xe8] sm:$0x1] %v1585_v44  ;;  %8084 = vmatprep.mubr.bf16.mxu0 %v7204_v32  ;;  %v1825_v46 = vsel %vm9348_vm11, %v1820_v33, %v1824_v6  ;;  %v1875_v50 = vshrl.u32 %v9490_v30, 16  ;;  %v1878_v51 = vshll.u32 %v9490_v30, 16  ;;  %v1848_v37 = vrot.slane %v1846_v31, 5 }
 0x17b   : > { %v7205_v52 = vcombine.low %v1815_v39, %v1825_v46  ;;  %v1843_v55 = vor.u32 %v1842_v45, %v1838_v1  ;;  %v1884_v60 = vshll.u32 %v9485_v26, 16  ;;  %8169 = vmatpush3.bf16.msra.mxu0 %v8656_v56  ;;  %v1834_v0 = vrot.slane %v1833_v47, 4  ;;  %v9520_v24 = vld [vmem:[#allocation2 + $0x98] sm:$0x1]  ;;  %v9527_v63 = vld [vmem:[#allocation2 + $0x70] sm:$0xf] }
 0x17c   : > { %v1877_v54 = vrot.slane %v1875_v50, 4  ;;  %v1880_v4 = vrot.slane %v1878_v51, 5  ;;  %v1888_v6 = vshrl.u32 %v9485_v26, 16  ;;  %8170 = vmatprep.subr.bf16.mxu0 %v8658_v41  ;;  %v1894_v15 = vshll.u32 %v9502_v35, 16  ;;  %v2661_v51 = vld [vmem:[#allocation2] sm:$0xe] }
 0x17d   : > { %8085 = vmatmul.mubr.bf16.gmra.mxu0 %v7205_v52  ;;  %v1844_v13 = vrot.slane %v1843_v55, 4  ;;  %v1886_v14 = vrot.slane %v1884_v60, 5  ;;  %v1839_v56 = vsel %vm9348_vm11, %v1834_v0, %v1838_v1  ;;  %v1899_v25 = vshrl.u32 %v9507_v43, 16  ;;  %v9529_v1 = vld [vmem:[#allocation2 + $0x74] sm:$0xf] }
 0x17e   : > { %v1881_v20 = vor.u32 %v1880_v4, %v1877_v54  ;;  %v1890_v22 = vrot.slane %v1888_v6, 4  ;;  %v1896_v57 = vrot.slane %v1894_v15, 5  ;;  %v1902_v28 = vshll.u32 %v9507_v43, 16  ;;  %v9538_v60 = vld [vmem:[#allocation2 + $0x78] sm:$0x1] }
 0x17f   : > { %v1849_v3 = vsel %vm9348_vm11, %v1844_v13, %v1848_v37  ;;  %v1908_v49 = vshll.u32 %v9515_v10, 16  ;;  %8171 = vmatpush3.bf16.msra.mxu0 %v8658_v41  ;;  %v1901_v40 = vrot.slane %v1899_v25, 4  ;;  %v1912_v45 = vshrl.u32 %v9515_v10, 16 }
 0x180   : > { %v7206_v7 = vcombine.low %v1839_v56, %v1849_v3  ;;  %v1882_v32 = vrot.slane %v1881_v20, 4  ;;  %v1891_v33 = vor.u32 %v1890_v22, %v1886_v14  ;;  %8252 = vmatprep.subr.bf16.mxu0 %v9512_v61  ;;  %v1904_v44 = vrot.slane %v1902_v28, 5  ;;  %v9544_v22 = vld [vmem:[#allocation2 + $0xa0] sm:$0xf] }
 0x181   : > { %v1910_v39 = vrot.slane %v1908_v49, 5  ;;  %v1918_v31 = vshll.u32 %v9520_v24, 16  ;;  %v1851_v41 = vshrl.u32 %v9527_v63, 16  ;;  %v1854_v50 = vshll.u32 %v9527_v63, 16 }
 0x182   : > { %8088 = vmatprep.mubr.bf16.mxu0 %v7206_v7  ;;  %v1887_v46 = vsel %vm9348_vm11, %v1882_v32, %v1886_v14  ;;  %v1892_v47 = vrot.slane %v1891_v33, 4  ;;  %v1905_v52 = vor.u32 %v1904_v44, %v1901_v40  ;;  %v1914_v55 = vrot.slane %v1912_v45, 4  ;;  %v9551_v40 = vld [vmem:[#allocation2 + $0xa4] sm:$0xf] }
 0x183   : > { %v1920_v37 = vrot.slane %v1918_v31, 5  ;;  %v1860_v0 = vshll.u32 %v9529_v1, 16  ;;  %v1853_v4 = vrot.slane %v1851_v41, 4  ;;  %v1856_v6 = vrot.slane %v1854_v50, 5  ;;  %v9560_v41 = vld [vmem:[#allocation2 + $0xb0] sm:$0xf] }
 0x184   : > { %v1897_v54 = vsel %vm9348_vm11, %v1892_v47, %v1896_v57  ;;  %v1864_v13 = vshrl.u32 %v9529_v1, 16  ;;  %v1906_v15 = vrot.slane %v1905_v52, 4  ;;  %v1915_v56 = vor.u32 %v1914_v55, %v1910_v39  ;;  %v9566_v50 = vld [vmem:[#allocation2 + $0xa8] sm:$0x1] }
 0x185   : > { %v7208_v14 = vcombine.low %v1887_v46, %v1897_v54  ;;  %v1862_v20 = vrot.slane %v1860_v0, 5  ;;  %v1857_v25 = vor.u32 %v1856_v6, %v1853_v4  ;;  %v1870_v28 = vshll.u32 %v9538_v60, 16  ;;  %v8657_v54 = vld [vmem:[%s11933_s4 + $0x30] sm:$0xff]  }
 0x186   : > { %v1866_v3 = vrot.slane %v1864_v13, 4  ;;  %v7248_v49 = vrot.slane %v2661_v51, 9  ;;  %v1911_v7 = vsel %vm9348_vm11, %v1906_v15, %v1910_v39  ;;  %v1916_v57 = vrot.slane %v1915_v56, 4  ;;  %v9574_v6 = vld [vmem:[#allocation2 + $0xb4] sm:$0xf] }
 0x187   : > { %8092 = vmatprep.mubr.bf16.mxu1 %v7208_v14  ;;  %v2714_v32 = vrot.slane %v9313_v36, 5  ;;  %v2717_v33 = vrot.slane %v9326_v42, 5  ;;  %v1858_v44 = vrot.slane %v1857_v25, 4  ;;  %v1872_v31 = vrot.slane %v1870_v28, 5  ;;  %v9580_v56 = vld [vmem:[#allocation2 + $0xb8] sm:$0x1] }
 0x188   : > { %v1867_v45 = vor.u32 %v1866_v3, %v1862_v20  ;;  %v1923_v47 = vshrl.u32 %v9544_v22, 16  ;;  %v1921_v36 = vsel %vm9348_vm11, %v1916_v57, %v1920_v37  ;;  %v1926_v51 = vshll.u32 %v9544_v22, 16 }
 0x189   : > { %v2715_v42 = vsel %vm9555_vm14, %v7248_v49, %v2714_v32  ;;  %v2716_v39 = vrot.slane %v2714_v32, 4  ;;  %v7209_v52 = vcombine.low %v1911_v7, %v1921_v36  ;;  %v1863_v55 = vsel %vm9348_vm11, %v1858_v44, %v1862_v20  ;;  %v8772_v49 = vld [vmem:[%s11933_s4 + $0x38] sm:$0xff]   ;;  %v2662_v44 = vld [vmem:[#allocation2 + $0x10] sm:$0xe] }
 0x18a   : > { %v1868_v0 = vrot.slane %v1867_v45, 4  ;;  %v1925_v4 = vrot.slane %v1923_v47, 4  ;;  %v1928_v13 = vrot.slane %v1926_v51, 5  ;;  %v1932_v14 = vshll.u32 %v9551_v40, 16 }
 0x18b   : > { %v2718_v37 = vsel %vm9555_vm14, %v2716_v39, %v2717_v33  ;;  %v1936_v15 = vshrl.u32 %v9551_v40, 16  ;;  %8093 = vmatmul.mubr.bf16.vlgmr.msra.gmra.mxu1 %v7209_v52  ;;  %v1942_v3 = vshll.u32 %v9566_v50, 16  ;;  %v1947_v28 = vshrl.u32 %v9560_v41, 16 }
 0x18c   : > { %v1873_v20 = vsel %vm9348_vm11, %v1868_v0, %v1872_v31  ;;  %v7280_v25 = vcombine.low %v2715_v42, %v2718_v37  ;;  %8109 = vmatpush3.bf16.msra.mxu1 %v8772_v49  ;;  %v1929_v57 = vor.u32 %v1928_v13, %v1925_v4  ;;  %v1934_v32 = vrot.slane %v1932_v14, 5  ;;  %v8659_v31 = vld [vmem:[%s11933_s4 + $0x28] sm:$0xff]   ;;  %v2663_v14 = vld [vmem:[#allocation2 + $0x20] sm:$0xe] }
 0x18d   : > { %v7207_v7 = vcombine.low %v1863_v55, %v1873_v20  ;;  %v1938_v33 = vrot.slane %v1936_v15, 4  ;;  %8110 = vmatprep.subr.bf16.mxu1 %v8657_v54  ;;  %v1944_v45 = vrot.slane %v1942_v3, 5  ;;  %v1949_v47 = vrot.slane %v1947_v28, 4  ;;  %v8660_v49 = vld [vmem:[%s11933_s4 + $0x20] sm:$0xff]  }
 0x18e   : > { %v1950_v36 = vshll.u32 %v9560_v41, 16  ;;  %v1956_v42 = vshll.u32 %v9574_v6, 16  ;;  %v1930_v39 = vrot.slane %v1929_v57, 4  ;;  %v1960_v52 = vshrl.u32 %v9574_v6, 16 }
 0x18f   : > { %8089 = vmatmul.mubr.bf16.gmra.mxu0 %v7207_v7  ;;  %v1939_v51 = vor.u32 %v1938_v33, %v1934_v32  ;;  %v1966_v55 = vshll.u32 %v9580_v56, 16  ;;  %v7249_v37 = vrot.slane %v2662_v44, 9  ;;  %v2721_v13 = vrot.slane %v9322_v34, 5  ;;  %v9605_v33 = vld [vmem:[#allocation2 + $0xc0] sm:$0xf] }
 0x190   : > { %8172 = vmatprep.mubr.bf16.mxu0 %v7280_v25  ;;  %v1952_v0 = vrot.slane %v1950_v36, 5  ;;  %v1958_v4 = vrot.slane %v1956_v42, 5  ;;  %8111 = vmatpush3.bf16.msra.mxu1 %v8657_v54  ;;  %v1935_v15 = vsel %vm9348_vm11, %v1930_v39, %v1934_v32  ;;  %v1962_v3 = vrot.slane %v1960_v52, 4  ;;  %v9607_v54 = vld [vmem:[#allocation2 + $0xc4] sm:$0xf] }
 0x191   : > { %v1940_v20 = vrot.slane %v1939_v51, 4  ;;  %v1968_v28 = vrot.slane %v1966_v55, 5  ;;  %8112 = vmatprep.subr.bf16.mxu1 %v8659_v31  ;;  %v2722_v25 = vsel %vm9555_vm14, %v7249_v37, %v2721_v13  ;;  %v2723_v57 = vrot.slane %v2721_v13, 4  ;;  %v9612_v39 = vld [vmem:[#allocation2 + $0xc8] sm:$0x1] }
 0x192   : > { %v1953_v7 = vor.u32 %v1952_v0, %v1949_v47  ;;  %v2724_v34 = vrot.slane %v9361_v5, 5  ;;  %v1963_v44 = vor.u32 %v1962_v3, %v1958_v4  ;;  %v7250_v36 = vrot.slane %v2663_v14, 9  ;;  %v8673_v47 = vld [vmem:[%s11933_s4 + $0x130] sm:$0xff]   ;;  %v8661_v3 = vld [vmem:[%s11933_s4 + $0x18] sm:$0xff]  }
 0x193   : > { %v1945_v32 = vsel %vm9348_vm11, %v1940_v20, %v1944_v45  ;;  %v2728_v42 = vrot.slane %v9364_v8, 5  ;;  %v2731_v55 = vrot.slane %v9373_v17, 5  ;;  %v9622_v13 = vld [vmem:[#allocation2 + $0xd0] sm:$0xf]  ;;  %v9624_v14 = vld [vmem:[#allocation2 + $0xd4] sm:$0xf] }
 0x194   : > { %v7210_v51 = vcombine.low %v1935_v15, %v1945_v32  ;;  %v1954_v52 = vrot.slane %v1953_v7, 4  ;;  %v2725_v5 = vsel %vm9555_vm14, %v2723_v57, %v2724_v34  ;;  %v1964_v0 = vrot.slane %v1963_v44, 4  ;;  %8113 = vmatpush3.bf16.msra.mxu1 %v8659_v31  ;;  %v9634_v7 = vld [vmem:[#allocation2 + $0xd8] sm:$0x1]  ;;  %v8677_v44 = vld [vmem:[%s11933_s4 + $0x128] sm:$0xff]  }
 0x195   : > { %v7281_v45 = vcombine.low %v2722_v25, %v2725_v5  ;;  %v2729_v37 = vsel %vm9555_vm14, %v7250_v36, %v2728_v42  ;;  %v2730_v8 = vrot.slane %v2728_v42, 4  ;;  %8114 = vmatprep.subr.bf16.mxu1 %v8660_v49  ;;  %v1971_v20 = vshrl.u32 %v9605_v33, 16  ;;  %v2664_v25 = vld [vmem:[#allocation2 + $0x30] sm:$0xe] }
 0x196   : > { %8096 = vmatprep.mubr.bf16.mxu1 %v7210_v51  ;;  %v1959_v15 = vsel %vm9348_vm11, %v1954_v52, %v1958_v4  ;;  %v1974_v17 = vshll.u32 %v9605_v33, 16  ;;  %v1980_v31 = vshll.u32 %v9607_v54, 16  ;;  %v1969_v57 = vsel %vm9348_vm11, %v1964_v0, %v1968_v28 }
 0x197   : > { %8173 = vmatmul.mubr.bf16.vlgmr.msra.gmra.mxu0 %v7281_v45  ;;  %v2732_v4 = vsel %vm9555_vm14, %v2730_v8, %v2731_v55  ;;  %v1984_v34 = vshrl.u32 %v9607_v54, 16  ;;  %v1990_v32 = vshll.u32 %v9612_v39, 16  ;;  %v7211_v36 = vcombine.low %v1959_v15, %v1969_v57  ;;  %v8678_v57 = vld [vmem:[%s11933_s4 + $0x120] sm:$0xff]  }
 0x198   : > { %v7282_v42 = vcombine.low %v2729_v37, %v2732_v4  ;;  %v1973_v51 = vrot.slane %v1971_v20, 4  ;;  %v1976_v52 = vrot.slane %v1974_v17, 5  ;;  %8253 = vmatpush3.bf16.msra.mxu0 %v9512_v61  ;;  %8115 = vmatpush3.bf16.msra.mxu1 %v8660_v49  ;;  %v1982_v28 = vrot.slane %v1980_v31, 5  ;;  %v8662_v61 = vld [vmem:[%s11933_s4 + $0x10] sm:$0xff]   ;;  %v2665_v31 = vld [vmem:[#allocation2 + $0x40] sm:$0xe] }
 0x199   : > { %v1986_v5 = vrot.slane %v1984_v34, 4  ;;  %v1992_v0 = vrot.slane %v1990_v32, 5  ;;  %v1995_v55 = vshrl.u32 %v9622_v13, 16  ;;  %8254 = vmatprep.subr.bf16.mxu0 %v8673_v47  ;;  %8097 = vmatmul.mubr.bf16.gmra.mxu1 %v7211_v36  ;;  %v1998_v8 = vshll.u32 %v9622_v13, 16 }
 0x19a   : > { %8176 = vmatprep.mubr.bf16.mxu0 %v7282_v42  ;;  %v1977_v45 = vor.u32 %v1976_v52, %v1973_v51  ;;  %v2004_v2 = vshll.u32 %v9624_v14, 16  ;;  %v2008_v37 = vshrl.u32 %v9624_v14, 16  ;;  %8116 = vmatprep.subr.bf16.mxu1 %v8661_v3  ;;  %v2014_v20 = vshll.u32 %v9634_v7, 16  ;;  %v9657_v42 = vld [vmem:[#allocation2 + $0xe0] sm:$0xf] }
 0x19b   : > { %v1987_v49 = vor.u32 %v1986_v5, %v1982_v28  ;;  %v1997_v15 = vrot.slane %v1995_v55, 4  ;;  %v7251_v17 = vrot.slane %v2664_v25, 9  ;;  %v2000_v34 = vrot.slane %v1998_v8, 5  ;;  %v9671_v8 = vld [vmem:[#allocation2 + $0xe4] sm:$0xf] }
 0x19c   : > { %v1978_v4 = vrot.slane %v1977_v45, 4  ;;  %v2006_v32 = vrot.slane %v2004_v2, 5  ;;  %v2010_v36 = vrot.slane %v2008_v37, 4  ;;  %8255 = vmatpush3.bf16.msra.mxu0 %v8673_v47  ;;  %v2016_v52 = vrot.slane %v2014_v20, 5  ;;  %8117 = vmatpush3.bf16.msra.mxu1 %v8661_v3  ;;  %v8663_v2 = vld [vmem:[%s11933_s4 + $0x8] sm:$0xff]  }
 0x19d   : > { %v1988_v51 = vrot.slane %v1987_v49, 4  ;;  %v2735_v5 = vrot.slane %v9397_v12, 5  ;;  %v2738_v55 = vrot.slane %v9412_v19, 5  ;;  %8256 = vmatprep.subr.bf16.mxu0 %v8677_v44  ;;  %v2001_v9 = vor.u32 %v2000_v34, %v1997_v15  ;;  %8118 = vmatprep.subr.bf16.mxu1 %v8662_v61  ;;  %v9674_v20 = vld [vmem:[#allocation2 + $0xe8] sm:$0x1] }
 0x19e   : > { %v1983_v25 = vsel %vm9348_vm11, %v1978_v4, %v1982_v28  ;;  %v2011_v16 = vor.u32 %v2010_v36, %v2006_v32  ;;  %v7252_v45 = vrot.slane %v2665_v31, 9  ;;  %v2742_v19 = vrot.slane %v9427_v11, 5  ;;  %v9676_v31 = vld [vmem:[#allocation2 + $0xf0] sm:$0xf]  ;;  %v9678_v4 = vld [vmem:[#allocation2 + $0xf4] sm:$0xf] }
 0x19f   : > { %v1993_v47 = vsel %vm9348_vm11, %v1988_v51, %v1992_v0  ;;  %v2736_v12 = vsel %vm9555_vm14, %v7251_v17, %v2735_v5  ;;  %v2737_v3 = vrot.slane %v2735_v5, 4  ;;  %v2002_v37 = vrot.slane %v2001_v9, 4 }
 0x1a0   : > { %v7212_v28 = vcombine.low %v1983_v25, %v1993_v47  ;;  %v2012_v49 = vrot.slane %v2011_v16, 4  ;;  %v2745_v15 = vrot.slane %v9440_v23, 5  ;;  %8257 = vmatpush3.bf16.msra.mxu0 %v8677_v44  ;;  %v2743_v17 = vsel %vm9555_vm14, %v7252_v45, %v2742_v19  ;;  %8119 = vmatpush3.bf16.msra.mxu1 %v8662_v61  ;;  %v8665_v25 = vld [vmem:[%s11933_s4] sm:$0xff]  }
 0x1a1   : > { %v2739_v0 = vsel %vm9555_vm14, %v2737_v3, %v2738_v55  ;;  %v2744_v34 = vrot.slane %v2742_v19, 4  ;;  %v2019_v9 = vshrl.u32 %v9657_v42, 16  ;;  %8258 = vmatprep.subr.bf16.mxu0 %v8678_v57  ;;  %v2007_v16 = vsel %vm9348_vm11, %v2002_v37, %v2006_v32  ;;  %8120 = vmatprep.subr.bf16.mxu1 %v8663_v2  ;;  %v8682_v32 = vld [vmem:[%s11933_s4 + $0x118] sm:$0xff]   ;;  %v2666_v19 = vld [vmem:[#allocation2 + $0x50] sm:$0xe] }
 0x1a2   : > { %8100 = vmatprep.mubr.bf16.mxu1 %v7212_v28  ;;  %v2017_v23 = vsel %vm9348_vm11, %v2012_v49, %v2016_v52  ;;  %v7283_v36 = vcombine.low %v2736_v12, %v2739_v0  ;;  %v2022_v44 = vshll.u32 %v9657_v42, 16  ;;  %v2028_v61 = vshll.u32 %v9671_v8, 16  ;;  %v9701_v3 = vld [vmem:[#allocation2 + $0xf8] sm:$0x1] }
 0x1a3   : > { %v7213_v51 = vcombine.low %v2007_v16, %v2017_v23  ;;  %v2746_v5 = vsel %vm9555_vm14, %v2744_v34, %v2745_v15  ;;  %v2021_v55 = vrot.slane %v2019_v9, 4  ;;  %v2032_v47 = vshrl.u32 %v9671_v8, 16  ;;  %v9709_v0 = vld [vmem:[%s11933_s4 + $0xf8] sm:$0xff]   ;;  %v8683_v23 = vld [vmem:[%s11933_s4 + $0x110] sm:$0xff]  }
 0x1a4   : > { %8177 = vmatmul.mubr.bf16.gmra.mxu0 %v7283_v36  ;;  %v7284_v52 = vcombine.low %v2743_v17, %v2746_v5  ;;  %v2024_v45 = vrot.slane %v2022_v44, 5  ;;  %v2038_v12 = vshll.u32 %v9674_v20, 16  ;;  %v2030_v28 = vrot.slane %v2028_v61, 5  ;;  %8121 = vmatpush3.bf16.msra.mxu1 %v8663_v2 }
 0x1a5   : > { %8101 = vmatmul.mubr.bf16.gmra.mxu1 %v7213_v51  ;;  %v2043_v37 = vshrl.u32 %v9676_v31, 16  ;;  %v2046_v49 = vshll.u32 %v9676_v31, 16  ;;  %v2052_v15 = vshll.u32 %v9678_v4, 16  ;;  %8259 = vmatpush3.bf16.msra.mxu0 %v8678_v57  ;;  %v2034_v9 = vrot.slane %v2032_v47, 4 }
 0x1a6   : > { %8180 = vmatprep.mubr.bf16.mxu0 %v7284_v52  ;;  %v2025_v34 = vor.u32 %v2024_v45, %v2021_v55  ;;  %v2056_v16 = vshrl.u32 %v9678_v4, 16  ;;  %v2062_v5 = vshll.u32 %v9701_v3, 16  ;;  %8122 = vmatprep.subr.bf16.mxu1 %v8665_v25  ;;  %v2040_v17 = vrot.slane %v2038_v12, 5  ;;  %v2668_v12 = vld [vmem:[#allocation2 + $0x70] sm:$0xe] }
 0x1a7   : > { %v2045_v36 = vrot.slane %v2043_v37, 4  ;;  %v2048_v44 = vrot.slane %v2046_v49, 5  ;;  %v2054_v51 = vrot.slane %v2052_v15, 5  ;;  %8260 = vmatprep.subr.bf16.mxu0 %v8682_v32  ;;  %v2035_v61 = vor.u32 %v2034_v9, %v2030_v28  ;;  %v8687_v37 = vld [vmem:[%s11933_s4 + $0x108] sm:$0xff]  }
 0x1a8   : > { %v2026_v57 = vrot.slane %v2025_v34, 4  ;;  %v2058_v52 = vrot.slane %v2056_v16, 4  ;;  %v2064_v45 = vrot.slane %v2062_v5, 5  ;;  %v7253_v47 = vrot.slane %v2666_v19, 9  ;;  %8123 = vmatpush3.bf16.msra.mxu1 %v8665_v25  ;;  %v8773_v19 = vld [vmem:[#allocation2] sm:$0xf] }
 0x1a9   : > { %v2049_v55 = vor.u32 %v2048_v44, %v2045_v36  ;;  %v2749_v2 = vrot.slane %v9444_v27, 5  ;;  %8261 = vmatpush3.bf16.msra.mxu0 %v8682_v32  ;;  %v2036_v15 = vrot.slane %v2035_v61, 4  ;;  %v2752_v34 = vrot.slane %v9452_v38, 5  ;;  %v8774_v16 = vld [vmem:[#allocation2 + $0x4] sm:$0xf]  ;;  %8204 = vmatprep.subr.bf16.mxu1 %v9709_v0 }
 0x1aa   : > { %v2031_v49 = vsel %vm9348_vm11, %v2026_v57, %v2030_v28  ;;  %v2059_v62 = vor.u32 %v2058_v52, %v2054_v51  ;;  %8262 = vmatprep.subr.bf16.mxu0 %v8683_v23  ;;  %v7224_v36 = vcombine.low %v8773_v19, %v8774_v16  ;;  %v2669_v5 = vld [vmem:[#allocation2 + $0x80] sm:$0xe]  ;;  %v2756_v38 = vrot.slane %v9464_v48, 5 }
 0x1ab   : > { %v2050_v9 = vrot.slane %v2049_v55, 4  ;;  %v2750_v32 = vsel %vm9555_vm14, %v7253_v47, %v2749_v2  ;;  %v2751_v44 = vrot.slane %v2749_v2, 4  ;;  %v2041_v28 = vsel %vm9348_vm11, %v2036_v15, %v2040_v17  ;;  %v9737_v17 = vld [vmem:[#allocation2 + $0x14] sm:$0xf] }
 0x1ac   : > { %v2060_v57 = vrot.slane %v2059_v62, 4  ;;  %v2759_v25 = vrot.slane %v9478_v18, 5  ;;  %v7214_v61 = vcombine.low %v2031_v49, %v2041_v28  ;;  %v7254_v47 = vrot.slane %v2667_v21, 9  ;;  %v9739_v62 = vld [vmem:[#allocation2 + $0x10] sm:$0xf] }
 0x1ad   : > { %v2055_v52 = vsel %vm9348_vm11, %v2050_v9, %v2054_v51  ;;  %v2753_v55 = vsel %vm9555_vm14, %v2751_v44, %v2752_v34  ;;  %8263 = vmatpush3.bf16.msra.mxu0 %v8683_v23  ;;  %v2758_v16 = vrot.slane %v2756_v38, 4  ;;  %v7225_v18 = vcombine.low %v9739_v62, %v9737_v17  ;;  %v8688_v51 = vld [vmem:[%s11933_s4 + $0x100] sm:$0xff]   ;;  %v2670_v44 = vld [vmem:[#allocation2 + $0x90] sm:$0xe] }
 0x1ae   : > { %v2065_v2 = vsel %vm9348_vm11, %v2060_v57, %v2064_v45  ;;  %v7285_v19 = vcombine.low %v2750_v32, %v2753_v55  ;;  %8264 = vmatprep.subr.bf16.mxu0 %v8687_v37  ;;  %8104 = vmatprep.mubr.bf16.mxu1 %v7214_v61  ;;  %v2757_v23 = vsel %vm9555_vm14, %v7254_v47, %v2756_v38  ;;  %v7255_v45 = vrot.slane %v2668_v12, 9  ;;  %v8777_v57 = vld [vmem:[#allocation2 + $0x24] sm:$0xf]  ;;  %v8778_v61 = vld [vmem:[#allocation2 + $0x20] sm:$0xf] }
 0x1af   : > { %v7215_v21 = vcombine.low %v2055_v52, %v2065_v2  ;;  %v2763_v49 = vrot.slane %v9529_v1, 5  ;;  %v2760_v15 = vsel %vm9555_vm14, %v2758_v16, %v2759_v25  ;;  %v2766_v34 = vrot.slane %v9538_v60, 5  ;;  %v2671_v55 = vld [vmem:[#allocation2 + $0xa0] sm:$0xe]  ;;  %v9759_v47 = vld [vmem:[#allocation2 + $0x34] sm:$0xf] }
 0x1b0   : > { %8181 = vmatmul.mubr.bf16.gmra.mxu0 %v7285_v19  ;;  %v7256_v9 = vrot.slane %v2669_v5, 9  ;;  %v2770_v32 = vrot.slane %v9485_v26, 5  ;;  %v7286_v28 = vcombine.low %v2757_v23, %v2760_v15  ;;  %v7226_v52 = vcombine.low %v8778_v61, %v8777_v57  ;;  %v9757_v5 = vld [vmem:[#allocation2 + $0x30] sm:$0xf] }
 0x1b1   : > { %8105 = vmatmul.mubr.bf16.gmra.mxu1 %v7215_v21  ;;  %v2764_v12 = vsel %vm9555_vm14, %v7255_v45, %v2763_v49  ;;  %v2765_v38 = vrot.slane %v2763_v49, 4  ;;  %8265 = vmatpush3.bf16.msra.mxu0 %v8687_v37  ;;  %v7227_v2 = vcombine.low %v9757_v5, %v9759_v47  ;;  %v7228_v19 = vcombine.low %v9421_v59, %v9427_v11  ;;  %v9768_v37 = vld [vmem:[%s11933_s4 + $0x1b8] sm:$0xff]   ;;  %v2672_v57 = vld [vmem:[#allocation2 + $0xb0] sm:$0xe]  ;;  %v3537_v5 = vld [vmem:[#allocation2 + $0x24] sm:$0xf] }
 0x1b2   : > { %8124 = vmatprep.mubr.bf16.mxu1 %v7224_v36  ;;  %v2771_v25 = vsel %vm9555_vm14, %v7256_v9, %v2770_v32  ;;  %v2772_v60 = vrot.slane %v2770_v32, 4  ;;  %8266 = vmatprep.subr.bf16.mxu0 %v8688_v51  ;;  %v7257_v16 = vrot.slane %v2670_v44, 9  ;;  %v2777_v21 = vrot.slane %v9515_v10, 5  ;;  %v8684_v47 = vld [vmem:[%s11933_s4 + $0xd8] sm:$0xff]   ;;  %v3538_v11 = vld [vmem:[#allocation2 + $0x28] sm:$0x1] }
 0x1b3   : > { %8184 = vmatprep.mubr.bf16.mxu0 %v7286_v28  ;;  %v2767_v36 = vsel %vm9555_vm14, %v2765_v38, %v2766_v34  ;;  %v2780_v23 = vrot.slane %v9520_v24, 5  ;;  %v11985_v45 = vrot.slane %v9502_v35, 5  ;;  %v7258_v15 = vrot.slane %v2671_v55, 9  ;;  %v2673_v38 = vld [vmem:[#allocation2 + $0xc0] sm:$0xe]  ;;  %v8689_v59 = vld [vmem:[%s11933_s4 + $0xd0] sm:$0xff]  }
 0x1b4   : > { %v2784_v9 = vrot.slane %v9551_v40, 5  ;;  %v2787_v32 = vrot.slane %v9566_v50, 5  ;;  %v7287_v28 = vcombine.low %v2764_v12, %v2767_v36  ;;  %v2778_v34 = vsel %vm9555_vm14, %v7257_v16, %v2777_v21  ;;  %v8670_v12 = vld [vmem:[%s11933_s4 + $0xf0] sm:$0xff]  }
 0x1b5   : > { %v2774_v49 = vsel %vm9555_vm14, %v2772_v60, %v11985_v45  ;;  %v2779_v44 = vrot.slane %v2777_v21, 4  ;;  %8267 = vmatpush3.bf16.msra.mxu0 %v8688_v51  ;;  %v7229_v55 = vcombine.low %v9449_v29, %v9444_v27  ;;  %v2791_v60 = vrot.slane %v9574_v6, 5  ;;  %v3540_v50 = vld [vmem:[#allocation2 + $0x34] sm:$0xf]  ;;  %v3542_v29 = vld [vmem:[#allocation2 + $0x40] sm:$0xf] }
 0x1b6   : > { %v7288_v61 = vcombine.low %v2771_v25, %v2774_v49  ;;  %v9784_v35 = vsel %vm9555_vm14, %v7258_v15, %v2784_v9  ;;  %v2786_v24 = vrot.slane %v2784_v9, 4  ;;  %8348 = vmatprep.subr.bf16.mxu0 %v9768_v37  ;;  %v7259_v25 = vrot.slane %v2672_v57, 9  ;;  %v2674_v15 = vld [vmem:[#allocation2 + $0xd0] sm:$0xe] }
 0x1b7   : > { %v2781_v51 = vsel %vm9555_vm14, %v2779_v44, %v2780_v23  ;;  %v2794_v36 = vrot.slane %v9580_v56, 5  ;;  %v7260_v21 = vrot.slane %v2673_v38, 9  ;;  %v2798_v45 = vrot.slane %v9607_v54, 5  ;;  %v3533_v44 = vld [vmem:[#allocation2 + $0x10] sm:$0xf] }
 0x1b8   : > { %8185 = vmatmul.mubr.bf16.gmra.mxu0 %v7287_v28  ;;  %v2788_v16 = vsel %vm9555_vm14, %v2786_v24, %v2787_v32  ;;  %v2801_v49 = vrot.slane %v9612_v39, 5  ;;  %v7289_v23 = vcombine.low %v2778_v34, %v2781_v51  ;;  %v2793_v57 = vrot.slane %v2791_v60, 4  ;;  %v2675_v28 = vld [vmem:[#allocation2 + $0xe0] sm:$0xe]  ;;  %v8674_v32 = vld [vmem:[%s11933_s4 + $0xe8] sm:$0xff]  }
 0x1b9   : > { %8125 = vmatmul.mubr.bf16.vlgmr.msra.gmra.mxu1 %v7225_v18  ;;  %8188 = vmatprep.mubr.bf16.mxu0 %v7288_v61  ;;  %v7290_v9 = vcombine.low %v9784_v35, %v2788_v16  ;;  %v9811_v39 = vsel %vm9555_vm14, %v7259_v25, %v2791_v60  ;;  %v9815_v17 = vsel %vm9555_vm14, %v7260_v21, %v2798_v45  ;;  %v2800_v62 = vrot.slane %v2798_v45, 4  ;;  %v2676_v25 = vld [vmem:[#allocation2 + $0xf0] sm:$0xe]  ;;  %v3534_v21 = vld [vmem:[#allocation2 + $0x14] sm:$0xf] }
 0x1ba   : > { %8205 = vmatpush3.bf16.msra.mxu1 %v9709_v0  ;;  %8128 = vmatprep.mubr.bf16.mxu1 %v7226_v52  ;;  %v9824_v0 = vsel %vm9555_vm14, %v2793_v57, %v2794_v36  ;;  %v7261_v52 = vrot.slane %v2674_v15, 9  ;;  %v2805_v61 = vrot.slane %v9624_v14, 5  ;;  %v2808_v34 = vrot.slane %v9634_v7, 5  ;;  %v8679_v57 = vld [vmem:[%s11933_s4 + $0xe0] sm:$0xff]  }
 0x1bb   : > { %8206 = vmatprep.subr.bf16.mxu1 %v8670_v12  ;;  %v9830_v38 = vsel %vm9555_vm14, %v2800_v62, %v2801_v49  ;;  %v7262_v35 = vrot.slane %v2675_v28, 9  ;;  %v2812_v24 = vrot.slane %v9671_v8, 5  ;;  %v2815_v51 = vrot.slane %v9674_v20, 5  ;;  %v3536_v18 = vld [vmem:[#allocation2 + $0x20] sm:$0xf] }
 0x1bc   : > { %v7291_v60 = vcombine.low %v9811_v39, %v9824_v0  ;;  %v2807_v16 = vrot.slane %v2805_v61, 4  ;;  %v9842_v45 = vsel %vm9555_vm14, %v7261_v52, %v2805_v61  ;;  %v7263_v28 = vrot.slane %v2676_v25, 9  ;;  %v3535_v52 = vld [vmem:[#allocation2 + $0x18] sm:$0x1] }
 0x1bd   : > { %v9846_v20 = vsel %vm9555_vm14, %v7262_v35, %v2812_v24  ;;  %v2814_v49 = vrot.slane %v2812_v24, 4  ;;  %v2819_v62 = vrot.slane %v9678_v4, 5  ;;  %v3582_v61 = vshrl.u32 %v3533_v44, 16 }
 0x1be   : > { %8207 = vmatpush3.bf16.msra.mxu1 %v8670_v12  ;;  %v9855_v12 = vsel %vm9555_vm14, %v2807_v16, %v2808_v34  ;;  %v2822_v24 = vrot.slane %v9701_v3, 5  ;;  %v3585_v15 = vshll.u32 %v3533_v44, 16  ;;  %v3591_v7 = vshll.u32 %v3534_v21, 16 }
 0x1bf   : > { %8208 = vmatprep.subr.bf16.mxu1 %v8674_v32  ;;  %v9860_v35 = vsel %vm9555_vm14, %v2814_v49, %v2815_v51  ;;  %v2821_v25 = vrot.slane %v2819_v62, 4  ;;  %v3584_v16 = vrot.slane %v3582_v61, 4  ;;  %v3595_v51 = vshrl.u32 %v3534_v21, 16 }
 0x1c0   : > { %8189 = vmatmul.mubr.bf16.gmra.mxu0 %v7289_v23  ;;  %v3587_v3 = vrot.slane %v3585_v15, 5  ;;  %v3593_v44 = vrot.slane %v3591_v7, 5  ;;  %v3601_v49 = vshll.u32 %v3535_v52, 16  ;;  %v3609_v23 = vshll.u32 %v3536_v18, 16 }
 0x1c1   : > { %8129 = vmatmul.mubr.bf16.gmra.mxu1 %v7227_v2  ;;  %8192 = vmatprep.mubr.bf16.mxu0 %v7290_v9  ;;  %v9878_v2 = vsel %vm9555_vm14, %v7263_v28, %v2819_v62  ;;  %v9886_v7 = vsel %vm9555_vm14, %v2821_v25, %v2822_v24  ;;  %v3597_v15 = vrot.slane %v3595_v51, 4  ;;  %v3615_v28 = vshll.u32 %v3537_v5, 16 }
 0x1c2   : > { %8132 = vmatprep.mubr.bf16.mxu1 %v7228_v19  ;;  %8209 = vmatpush3.bf16.msra.mxu1 %v8674_v32  ;;  %v3606_v19 = vshrl.u32 %v3536_v18, 16  ;;  %v3539_v32 = vld [vmem:[#allocation2 + $0x30] sm:$0xf]  ;;  %v3588_v21 = vor.u32 %v3587_v3, %v3584_v16  ;;  %v3603_v52 = vrot.slane %v3601_v49, 5  ;;  %v3619_v62 = vshrl.u32 %v3537_v5, 16 }
 0x1c3   : > { %8210 = vmatprep.subr.bf16.mxu1 %v8679_v57  ;;  %v3598_v9 = vor.u32 %v3597_v15, %v3593_v44  ;;  %v3625_v34 = vshll.u32 %v3538_v11, 16  ;;  %v3630_v36 = vshrl.u32 %v3539_v32, 16  ;;  %v3611_v24 = vrot.slane %v3609_v23, 5  ;;  %v3541_v3 = vld [vmem:[#allocation2 + $0x38] sm:$0x1] }
 0x1c4   : > { %v3608_v61 = vrot.slane %v3606_v19, 4  ;;  %v3589_v56 = vrot.slane %v3588_v21, 4  ;;  %v3617_v25 = vrot.slane %v3615_v28, 5  ;;  %v3621_v16 = vrot.slane %v3619_v62, 4  ;;  %v3544_v15 = vld [vmem:[#allocation2 + $0x48] sm:$0x1] }
 0x1c5   : > { %v3633_v51 = vshll.u32 %v3539_v32, 16  ;;  %v3627_v49 = vrot.slane %v3625_v34, 5  ;;  %v3632_v5 = vrot.slane %v3630_v36, 4  ;;  %v11986_v23 = vcombine.low %v9815_v17, %v9830_v38 }
 0x1c6   : > { %8211 = vmatpush3.bf16.msra.mxu1 %v8679_v57  ;;  %v3594_v18 = vsel %vm9348_vm11, %v3589_v56, %v3593_v44  ;;  %v3599_v57 = vrot.slane %v3598_v9, 4  ;;  %v3612_v11 = vor.u32 %v3611_v24, %v3608_v61  ;;  %v3622_v19 = vor.u32 %v3621_v16, %v3617_v25  ;;  %v3545_v24 = vld [vmem:[#allocation2 + $0x50] sm:$0xf] }
 0x1c7   : > { %8212 = vmatprep.subr.bf16.mxu1 %v8684_v47  ;;  %v3635_v32 = vrot.slane %v3633_v51, 5  ;;  %v3639_v21 = vshll.u32 %v3540_v50, 16  ;;  %v11987_v39 = vcombine.low %v9469_v53, %v9464_v48  ;;  %v3643_v0 = vshrl.u32 %v3540_v50, 16  ;;  %v8692_v48 = vld [vmem:[%s11933_s4 + $0xc8] sm:$0xff]   ;;  %v3543_v53 = vld [vmem:[#allocation2 + $0x44] sm:$0xf] }
 0x1c8   : > { %8193 = vmatmul.mubr.bf16.gmra.mxu0 %v7291_v60  ;;  %v3604_v56 = vsel %vm9348_vm11, %v3599_v57, %v3603_v52  ;;  %v3649_v60 = vshll.u32 %v3541_v3, 16  ;;  %v7237_v27 = vcombine.low %v9622_v13, %v9624_v14  ;;  %v7295_v17 = vcombine.low %v9878_v2, %v9886_v7  ;;  %v3546_v57 = vld [vmem:[#allocation2 + $0x54] sm:$0xf] }
 0x1c9   : > { %8133 = vmatmul.mubr.bf16.gmra.mxu1 %v7229_v55  ;;  %8196 = vmatprep.mubr.bf16.mxu0 %v11986_v23  ;;  %v8058_v55 = vpop.f32.mrf.mxu0  ;;  %v3613_v38 = vrot.slane %v3612_v11, 4  ;;  %v3623_v36 = vrot.slane %v3622_v19, 4  ;;  %v3636_v34 = vor.u32 %v3635_v32, %v3632_v5  ;;  %v9914_v44 = vcombine.low %v3594_v18, %v3604_v56 }
 0x1ca   : > { %8136 = vmatprep.mubr.bf16.mxu1 %v11987_v39  ;;  %8213 = vmatpush3.bf16.msra.mxu1 %v8684_v47  ;;  %v9916_v50 = vrot.slane %v3639_v21, 5  ;;  %v3645_v47 = vrot.slane %v3643_v0, 4  ;;  %v7238_v9 = vcombine.low %v9657_v42, %v9671_v8  ;;  %v3654_v62 = vshrl.u32 %v3542_v29, 16  ;;  %v8699_v8 = vld [vmem:[#allocation2 + $0x20] sm:$0xff]  }
 0x1cb   : > { %8214 = vmatprep.subr.bf16.mxu1 %v8689_v59  ;;  %v3618_v52 = vsel %vm9348_vm11, %v3613_v38, %v3617_v25  ;;  %v3628_v61 = vsel %vm9348_vm11, %v3623_v36, %v3627_v49  ;;  %v9924_v28 = vrot.slane %v3636_v34, 4  ;;  %v3651_v3 = vrot.slane %v3649_v60, 5  ;;  %v748_v5 = vpop.f32.mrf.mxu0  ;;  %v8695_v49 = vld [vmem:[%s11933_s4 + $0xc0] sm:$0xff]  }
 0x1cc   : > { %v3646_v16 = vor.u32 %v3645_v47, %v9916_v50  ;;  %v3657_v51 = vshll.u32 %v3542_v29, 16  ;;  %v3663_v18 = vshll.u32 %v3543_v53, 16  ;;  %v9927_v23 = vcombine.low %v3618_v52, %v3628_v61  ;;  %v9953_v61 = vld [vmem:[%s11933_s4 + $0x178] sm:$0xff]  }
 0x1cd   : > { %v3656_v11 = vrot.slane %v3654_v62, 4  ;;  %v3667_v25 = vshrl.u32 %v3543_v53, 16  ;;  %v3673_v19 = vshll.u32 %v3544_v15, 16  ;;  %v3642_v32 = vsel %vm9348_vm11, %v9924_v28, %v9916_v50  ;;  %v8781_v28 = vld [vmem:[%s11931_s2] ss:$0 sm:$0xff] }
 0x1ce   : > { %8215 = vmatpush3.bf16.msra.mxu1 %v8689_v59  ;;  %v11988_v59 = vcombine.low %v9842_v45, %v9855_v12  ;;  %v3659_v21 = vrot.slane %v3657_v51, 5  ;;  %v3665_v39 = vrot.slane %v3663_v18, 5  ;;  %v3678_v56 = vshrl.u32 %v3545_v24, 16  ;;  %v3547_v45 = vld [vmem:[#allocation2 + $0x58] sm:$0x1] }
 0x1cf   : > { %8216 = vmatprep.subr.bf16.mxu1 %v8692_v48  ;;  %v11989_v0 = vcombine.low %v9527_v63, %v9529_v1  ;;  %v11990_v60 = vcombine.low %v9846_v20, %v9860_v35  ;;  %v3647_v29 = vrot.slane %v3646_v16, 4  ;;  %v3669_v38 = vrot.slane %v3667_v25, 4  ;;  %v8059_v63 = vpop.f32.mrf.mxu0  ;;  %v8782_v25 = vld [vmem:[%s11932_s3] ss:$0 sm:$0xff] }
 0x1d0   : > { %8197 = vmatmul.mubr.bf16.gmra.mxu0 %v11988_v59  ;;  %v3681_v12 = vshll.u32 %v3545_v24, 16  ;;  %v3687_v36 = vshll.u32 %v3546_v57, 16  ;;  %v11991_v34 = vcombine.low %v9490_v30, %v9485_v26  ;;  %v3660_v53 = vor.u32 %v3659_v21, %v3656_v11 }
 0x1d1   : > { %8137 = vmatmul.mubr.bf16.gmra.mxu1 %v11989_v0  ;;  %8200 = vmatprep.mubr.bf16.mxu0 %v11990_v60  ;;  %v3675_v50 = vrot.slane %v3673_v19, 5  ;;  %v3680_v47 = vrot.slane %v3678_v56, 4  ;;  %v3691_v15 = vshrl.u32 %v3546_v57, 16  ;;  %v3652_v1 = vsel %vm9348_vm11, %v3647_v29, %v3651_v3  ;;  %v751_v59 = vpop.f32.mrf.mxu0 }
 0x1d2   : > { %8140 = vmatprep.mubr.bf16.mxu1 %v11991_v34  ;;  %8217 = vmatpush3.bf16.msra.mxu1 %v8692_v48  ;;  %v3670_v20 = vor.u32 %v3669_v38, %v3665_v39  ;;  %v3683_v35 = vrot.slane %v3681_v12, 5  ;;  %v3689_v52 = vrot.slane %v3687_v36, 5  ;;  %v3661_v26 = vrot.slane %v3660_v53, 4 }
 0x1d3   : > { %8218 = vmatprep.subr.bf16.mxu1 %v8695_v49  ;;  %v3693_v30 = vrot.slane %v3691_v15, 4  ;;  %v3697_v48 = vshll.u32 %v3547_v45, 16  ;;  %v804_v62 = vmul.f32 %v8781_v28, %v8058_v55  ;;  %v802_v3 = vmul.f32 %v8781_v28, %v748_v5  ;;  %v3548_v5 = vld [vmem:[#allocation2 + $0x60] sm:$0xf] }
 0x1d4   : > { %v3671_v24 = vrot.slane %v3670_v20, 4  ;;  %v3684_v16 = vor.u32 %v3683_v35, %v3680_v47  ;;  %v805_v51 = vmul.f32 %v8781_v28, %v8059_v63  ;;  %v3666_v18 = vsel %vm9348_vm11, %v3661_v26, %v3665_v39  ;;  %v9984_v47 = vld [vmem:[#allocation2 + $0x64] sm:$0xf] }
 0x1d5   : > { %v3694_v57 = vor.u32 %v3693_v30, %v3689_v52  ;;  %v3699_v11 = vrot.slane %v3697_v48, 5  ;;  %v847_v19 = vadd.f32 %v8782_v25, %v804_v62  ;;  %v845_v56 = vadd.f32 %v8782_v25, %v802_v3 }
 0x1d6   : > { %8219 = vmatpush3.bf16.msra.mxu1 %v8695_v49  ;;  %v3676_v21 = vsel %vm9348_vm11, %v3671_v24, %v3675_v50  ;;  %v3685_v55 = vrot.slane %v3684_v16, 4  ;;  %v848_v0 = vadd.f32 %v8782_v25, %v805_v51  ;;  %v7362_v39 = vcombine.low %v3642_v32, %v3652_v1  ;;  %v1480_v16 = vld [vmem:[#allocation2 + $0x110] sm:$0xf] }
 0x1d7   : > { %8300 = vmatprep.subr.bf16.mxu1 %v9953_v61  ;;  %v9969_v60 = vcombine.low %v3666_v18, %v3676_v21  ;;  %v883_v29 = vmax.f32 %v847_v19, 0.0  ;;  %v7239_v49 = vcombine.low %v9676_v31, %v9678_v4  ;;  %v11992_v38 = vcombine.low %v9507_v43, %v9515_v10  ;;  %v1473_v19 = vld [vmem:[#allocation2 + $0x100] sm:$0xf]  ;;  %v3563_v31 = vld [vmem:[#allocation2 + $0xb0] sm:$0xf] }
 0x1d8   : > { %8201 = vmatmul.mubr.bf16.gmra.mxu0 %v7295_v17  ;;  %v3695_v45 = vrot.slane %v3694_v57, 4  ;;  %v881_v12 = vmax.f32 %v845_v56, 0.0  ;;  %v884_v36 = vmax.f32 %v848_v0, 0.0  ;;  %v803_v34 = vmul.f32 %v8781_v28, %v751_v59  ;;  %v8705_v57 = vld [vmem:[%s11933_s4 + $0x1b0] sm:$0xff]   ;;  %v1484_v59 = vld [vmem:[#allocation2 + $0x118] sm:$0x1] }
 0x1d9   : > { %8141 = vmatmul.mubr.bf16.gmra.mxu1 %v11992_v38  ;;  %8268 = vmatprep.mubr.bf16.mxu0 %v9914_v44  ;;  %v11993_v2 = vcombine.low %v9544_v22, %v9551_v40  ;;  %v3690_v7 = vsel %vm9348_vm11, %v3685_v55, %v3689_v52  ;;  %v7659_v17 = vpack.c.bf16 %v883_v29, %v883_v29  ;;  %v3702_v32 = vshrl.u32 %v3548_v5, 16  ;;  %v9986_v52 = vld [vmem:[#allocation2 + $0x68] sm:$0x1] }
 0x1da   : > { %v3705_v53 = vshll.u32 %v3548_v5, 16  ;;  %v3700_v43 = vsel %vm9348_vm11, %v3695_v45, %v3699_v11  ;;  %v7657_v10 = vpack.c.bf16 %v881_v12, %v881_v12  ;;  %v7660_v50 = vpack.c.bf16 %v884_v36, %v884_v36  ;;  %v3551_v45 = vld [vmem:[#allocation2 + $0x70] sm:$0xf] }
 0x1db   : > { %8144 = vmatprep.mubr.bf16.mxu1 %v11993_v2  ;;  %v846_v44 = vadd.f32 %v8782_v25, %v803_v34  ;;  %v1286_v15 = vshrl.u32 %v7659_v17, 16  ;;  %v1289_v63 = vshll.u32 %v7659_v17, 16  ;;  %v3704_v1 = vrot.slane %v3702_v32, 4 }
 0x1dc   : > { %v3707_v20 = vrot.slane %v3705_v53, 5  ;;  %v1269_v22 = vshrl.u32 %v7657_v10, 16  ;;  %v1272_v40 = vshll.u32 %v7657_v10, 16  ;;  %v1294_v35 = vshrl.u32 %v7660_v50, 16  ;;  %v10018_v53 = vld [vmem:[#allocation2 + $0x78] sm:$0x1] }
 0x1dd   : > { %v1297_v26 = vshll.u32 %v7660_v50, 16  ;;  %v1288_v30 = vrot.slane %v1286_v15, 7  ;;  %v882_v48 = vmax.f32 %v846_v44, 0.0  ;;  %v3711_v62 = vshll.u32 %v9984_v47, 16  ;;  %v1477_v50 = vld [vmem:[#allocation2 + $0x108] sm:$0x1] }
 0x1de   : > { %v3708_v28 = vor.u32 %v3707_v20, %v3704_v1  ;;  %v9989_v24 = vcombine.low %v3690_v7, %v3700_v43  ;;  %v1271_v3 = vrot.slane %v1269_v22, 7  ;;  %v1296_v51 = vrot.slane %v1294_v35, 7  ;;  %v8709_v43 = vld [vmem:[%s11933_s4 + $0x1a8] sm:$0xff]   ;;  %v3554_v35 = vld [vmem:[#allocation2 + $0x80] sm:$0xf] }
 0x1df   : > { %v3715_v18 = vshrl.u32 %v9984_v47, 16  ;;  %v1291_v11 = vor.u32 %v1289_v63, %v1288_v30  ;;  %v1292_v25 = vrot.slane %v1288_v30, 4  ;;  %v7658_v21 = vpack.c.bf16 %v882_v48, %v882_v48 }
 0x1e0   : > { %8269 = vmatmul.mubr.bf16.vlgmr.msra.gmra.mxu0 %v9927_v23  ;;  %v3721_v55 = vshll.u32 %v9986_v52, 16  ;;  %v11994_v56 = vcombine.low %v9560_v41, %v9574_v6  ;;  %v1274_v0 = vor.u32 %v1272_v40, %v1271_v3  ;;  %v1299_v5 = vor.u32 %v1297_v26, %v1296_v51  ;;  %v10009_v41 = vld [vmem:[#allocation2 + $0x74] sm:$0xf] }
 0x1e1   : > { %8272 = vmatprep.mubr.bf16.mxu0 %v7362_v39  ;;  %v1301_v29 = vrot.slane %v1296_v51, 4  ;;  %v10000_v38 = vrot.slane %v3708_v28, 4  ;;  %v11995_v23 = vcombine.low %v9605_v33, %v9607_v54  ;;  %v1481_v36 = vsel %vm9082_vm5, %v1291_v11, %v1480_v16  ;;  %8349 = vmatpush3.bf16.msra.mxu0 %v9768_v37  ;;  %v8710_v11 = vld [vmem:[%s11933_s4 + $0x1a0] sm:$0xff]   ;;  %v8702_v33 = vld [vmem:[%s11933_s4 + $0x170] sm:$0xff]  }
 0x1e2   : > { %8145 = vmatmul.mubr.bf16.gmra.mxu1 %v11994_v56  ;;  %v1277_v34 = vshrl.u32 %v7658_v21, 16  ;;  %v1280_v2 = vshll.u32 %v7658_v21, 16  ;;  %v10007_v7 = vrot.slane %v3711_v62, 5  ;;  %1482 = vst [vmem:[#allocation2 + $0x110] sm:$0xf] %v1481_v36  ;;  %v1474_v6 = vsel %vm9082_vm5, %v1274_v0, %v1473_v19  ;;  %8350 = vmatprep.subr.bf16.mxu0 %v8705_v57 }
 0x1e3   : > { %8148 = vmatprep.mubr.bf16.mxu1 %v11995_v23  ;;  %v1300_v17 = vsel %vm9102_vm7, %v1292_v25, %v1299_v5  ;;  %v1485_v54 = vsel %vm9094_vm6, %v1301_v29, %v1484_v59  ;;  %v3717_v32 = vrot.slane %v3715_v18, 4  ;;  %v1275_v10 = vrot.slane %v1271_v3, 4  ;;  %1475 = vst [vmem:[#allocation2 + $0x100] sm:$0xf] %v1474_v6  ;;  %v10028_v62 = vld [vmem:[#allocation2 + $0x84] sm:$0xf] }
 0x1e4   : > { %1483 = vst [vmem:[#allocation2 + $0x114] sm:$0xf] %v1300_v17  ;;  %1486 = vst [vmem:[#allocation2 + $0x118] sm:$0x1] %v1485_v54  ;;  %v1279_v37 = vrot.slane %v1277_v34, 7  ;;  %v3723_v44 = vrot.slane %v3721_v55, 5 }
 0x1e5   : > { %v3726_v15 = vshrl.u32 %v3551_v45, 16  ;;  %v11999_v63 = vmov 0   ;;  %v3718_v1 = vor.u32 %v3717_v32, %v10007_v7  ;;  %v3729_v20 = vshll.u32 %v3551_v45, 16  ;;  %8351 = vmatpush3.bf16.msra.mxu0 %v8705_v57  ;;  %v10048_v56 = vld [vmem:[#allocation2 + $0x88] sm:$0x1]  ;;  %v8714_v29 = vld [vmem:[%s11933_s4 + $0x198] sm:$0xff]  }
 0x1e6   : > { %1611 = vst [vmem:[#allocation2 + $0x114] sm:$0xf] %v11999_v63  ;;  %v3735_v22 = vshll.u32 %v10009_v41, 16  ;;  %v3739_v40 = vshrl.u32 %v10009_v41, 16  ;;  %v1282_v26 = vor.u32 %v1280_v2, %v1279_v37  ;;  %v1284_v30 = vrot.slane %v1279_v37, 4  ;;  %8352 = vmatprep.subr.bf16.mxu0 %v8709_v43 }
 0x1e7   : > { %v3728_v48 = vrot.slane %v3726_v15, 4  ;;  %v3745_v28 = vshll.u32 %v10018_v53, 16  ;;  %v3719_v16 = vrot.slane %v3718_v1, 4  ;;  %v3731_v3 = vrot.slane %v3729_v20, 5  ;;  %v3557_v5 = vld [vmem:[#allocation2 + $0x90] sm:$0xf] }
 0x1e8   : > { %v3737_v51 = vrot.slane %v3735_v22, 5  ;;  %v3741_v18 = vrot.slane %v3739_v40, 4  ;;  %8273 = vmatmul.mubr.bf16.gmra.mxu0 %v9969_v60  ;;  %v1283_v25 = vsel %vm9102_vm7, %v1275_v10, %v1282_v26  ;;  %v1478_v19 = vsel %vm9094_vm6, %v1284_v30, %v1477_v50  ;;  %v10058_v45 = vld [vmem:[#allocation2 + $0x94] sm:$0xf]  ;;  %v10071_v50 = vld [vmem:[#allocation2 + $0x98] sm:$0x1] }
 0x1e9   : > { %v3714_v57 = vsel %vm9348_vm11, %v10000_v38, %v10007_v7  ;;  %v3750_v59 = vshrl.u32 %v3554_v35, 16  ;;  %8276 = vmatprep.mubr.bf16.mxu0 %v9989_v24  ;;  %1476 = vst [vmem:[#allocation2 + $0x104] sm:$0xf] %v1283_v25  ;;  %1479 = vst [vmem:[#allocation2 + $0x108] sm:$0x1] %v1478_v19  ;;  %v3724_v60 = vsel %vm9348_vm11, %v3719_v16, %v3723_v44  ;;  %v3753_v0 = vshll.u32 %v3554_v35, 16 }
 0x1ea   : > { %8149 = vmatmul.mubr.bf16.gmra.mxu1 %v7237_v27  ;;  %v3732_v21 = vor.u32 %v3731_v3, %v3728_v48  ;;  %v3742_v55 = vor.u32 %v3741_v18, %v3737_v51  ;;  %v1538_v13 = vld [vmem:[#allocation2 + $0x110] sm:$0x1]  ;;  %v3747_v14 = vrot.slane %v3745_v28, 5  ;;  %v3759_v24 = vshll.u32 %v10028_v62, 16  ;;  %8353 = vmatpush3.bf16.msra.mxu0 %v8709_v43  ;;  %v1535_v36 = vld [vmem:[#allocation2 + $0x100] sm:$0x1] }
 0x1eb   : > { %8152 = vmatprep.mubr.bf16.mxu1 %v7238_v9  ;;  %v3752_v27 = vrot.slane %v3750_v59, 4  ;;  %v3763_v38 = vshrl.u32 %v10028_v62, 16  ;;  %v1539_v23 = vsel %vm9094_vm6, 0, %v1538_v13  ;;  %v1593_v34 = vld [vmem:[#allocation2 + $0x118] sm:$0x1]  ;;  %v7365_v2 = vcombine.low %v3714_v57, %v3724_v60  ;;  %8354 = vmatprep.subr.bf16.mxu0 %v8710_v11  ;;  %v8697_v1 = vld [vmem:[#allocation2 + $0x10] sm:$0xff]  }
 0x1ec   : > { %v3733_v7 = vrot.slane %v3732_v21, 4  ;;  %1540 = vst [vmem:[#allocation2 + $0x110] sm:$0x1] %v1539_v23  ;;  %v1536_v42 = vsel %vm9094_vm6, 0, %v1535_v36  ;;  %v1594_v9 = vsel %vm9139_vm8, 0, %v1593_v34  ;;  %v3743_v6 = vrot.slane %v3742_v55, 4 }
 0x1ed   : > { %v3755_v39 = vrot.slane %v3753_v0, 5  ;;  %1537 = vst [vmem:[#allocation2 + $0x100] sm:$0x1] %v1536_v42  ;;  %1595 = vst [vmem:[#allocation2 + $0x118] sm:$0x1] %v1594_v9  ;;  %v3761_v54 = vrot.slane %v3759_v24, 5 }
 0x1ee   : > { %v3738_v17 = vsel %vm9348_vm11, %v3733_v7, %v3737_v51  ;;  %v3765_v32 = vrot.slane %v3763_v38, 4  ;;  %v3769_v43 = vshll.u32 %v10048_v56, 16  ;;  %v3748_v10 = vsel %vm9348_vm11, %v3743_v6, %v3747_v14  ;;  %v3560_v63 = vld [vmem:[#allocation2 + $0xa0] sm:$0xf]  ;;  %8355 = vmatpush3.bf16.msra.mxu0 %v8710_v11  ;;  %v10074_v26 = vld [vmem:[#allocation2 + $0xa4] sm:$0xf] }
 0x1ef   : > { %v3756_v37 = vor.u32 %v3755_v39, %v3752_v27  ;;  %v3774_v44 = vshrl.u32 %v3557_v5, 16  ;;  %v3777_v15 = vshll.u32 %v3557_v5, 16  ;;  %v7366_v20 = vcombine.low %v3738_v17, %v3748_v10  ;;  %8356 = vmatprep.subr.bf16.mxu0 %v8714_v29  ;;  %v8715_v30 = vld [vmem:[%s11933_s4 + $0x190] sm:$0xff]   ;;  %v10086_v57 = vld [vmem:[#allocation2 + $0xa8] sm:$0x1] }
 0x1f0   : > { %v3766_v22 = vor.u32 %v3765_v32, %v3761_v54  ;;  %v3771_v40 = vrot.slane %v3769_v43, 5  ;;  %v3783_v35 = vshll.u32 %v10058_v45, 16  ;;  %v1590_v48 = vld [vmem:[#allocation2 + $0x108] sm:$0x1]  ;;  %8277 = vmatmul.mubr.bf16.gmra.mxu0 %v7365_v2  ;;  %v3787_v51 = vshrl.u32 %v10058_v45, 16 }
 0x1f1   : > { %v3757_v28 = vrot.slane %v3756_v37, 4  ;;  %v3776_v16 = vrot.slane %v3774_v44, 4  ;;  %v3779_v3 = vrot.slane %v3777_v15, 5  ;;  %v1591_v18 = vsel %vm9139_vm8, 0, %v1590_v48  ;;  %8280 = vmatprep.mubr.bf16.mxu0 %v7366_v20  ;;  %v8719_v14 = vld [vmem:[%s11933_s4 + $0x188] sm:$0xff]   ;;  %v8700_v37 = vld [vmem:[#allocation2 + $0x30] sm:$0xff]  }
 0x1f2   : > { %8153 = vmatmul.mubr.bf16.gmra.mxu1 %v7239_v49  ;;  %v3767_v11 = vrot.slane %v3766_v22, 4  ;;  %v3785_v25 = vrot.slane %v3783_v35, 5  ;;  %v3793_v19 = vshll.u32 %v10071_v50, 16  ;;  %1592 = vst [vmem:[#allocation2 + $0x108] sm:$0x1] %v1591_v18  ;;  %v3789_v21 = vrot.slane %v3787_v51, 4  ;;  %8357 = vmatpush3.bf16.msra.mxu0 %v8714_v29 }
 0x1f3   : > { %8220 = vmatprep.mubr.bf16.mxu1 %v8697_v1  ;;  %v3762_v59 = vsel %vm9348_vm11, %v3757_v28, %v3761_v54  ;;  %v3780_v60 = vor.u32 %v3779_v3, %v3776_v16  ;;  %v3798_v55 = vshrl.u32 %v3560_v63, 16  ;;  %v1608_v4 = vld [vmem:[#allocation2 + $0x110] sm:$0xf]  ;;  %v3801_v5 = vshll.u32 %v3560_v63, 16  ;;  %8358 = vmatprep.subr.bf16.mxu0 %v8715_v30  ;;  %v10098_v36 = vld [vmem:[#allocation2 + $0xb4] sm:$0xf] }
 0x1f4   : > { %v3772_v49 = vsel %vm9348_vm11, %v3767_v11, %v3771_v40  ;;  %v3795_v0 = vrot.slane %v3793_v19, 5  ;;  %v3807_v13 = vshll.u32 %v10074_v26, 16  ;;  %v1609_v27 = vsel %vm9082_vm5, 0, %v1608_v4  ;;  %v1612_v24 = vld [vmem:[#allocation2 + $0x118] sm:$0x1]  ;;  %v8721_v28 = vld [vmem:[%s11933_s4 + $0x180] sm:$0xff]  }
 0x1f5   : > { %v7367_v38 = vcombine.low %v3762_v59, %v3772_v49  ;;  %v3781_v23 = vrot.slane %v3780_v60, 4  ;;  %v3790_v29 = vor.u32 %v3789_v21, %v3785_v25  ;;  %1610 = vst [vmem:[#allocation2 + $0x110] sm:$0xf] %v1609_v27  ;;  %v1613_v34 = vsel %vm9094_vm6, 0, %v1612_v24  ;;  %v10111_v54 = vld [vmem:[#allocation2 + $0xb8] sm:$0x1] }
 0x1f6   : > { %v3800_v2 = vrot.slane %v3798_v55, 4  ;;  %v3803_v7 = vrot.slane %v3801_v5, 5  ;;  %v10102_v42 = vrot.slane %v3807_v13, 5  ;;  %1614 = vst [vmem:[#allocation2 + $0x118] sm:$0x1] %v1613_v34  ;;  %v3811_v6 = vshrl.u32 %v10074_v26, 16  ;;  %8359 = vmatpush3.bf16.msra.mxu0 %v8715_v30 }
 0x1f7   : > { %v3786_v12 = vsel %vm9348_vm11, %v3781_v23, %v3785_v25  ;;  %v3791_v9 = vrot.slane %v3790_v29, 4  ;;  %v3817_v39 = vshll.u32 %v10086_v57, 16  ;;  %v3822_v32 = vshrl.u32 %v3563_v31, 16  ;;  %8360 = vmatprep.subr.bf16.mxu0 %v8719_v14  ;;  %v3566_v20 = vld [vmem:[#allocation2 + $0xc0] sm:$0xf]  ;;  %v8706_v19 = vld [vmem:[%s11933_s4 + $0x168] sm:$0xff]  }
 0x1f8   : > { %v3804_v17 = vor.u32 %v3803_v7, %v3800_v2  ;;  %v3825_v43 = vshll.u32 %v3563_v31, 16  ;;  %v3831_v10 = vshll.u32 %v10098_v36, 16  ;;  %8281 = vmatmul.mubr.bf16.gmra.mxu0 %v7367_v38  ;;  %v3813_v15 = vrot.slane %v3811_v6, 4  ;;  %v10117_v48 = vld [vmem:[#allocation2 + $0xc4] sm:$0xf]  ;;  %v8704_v24 = vld [vmem:[#allocation2 + $0x50] sm:$0xff]  }
 0x1f9   : > { %v3796_v44 = vsel %vm9348_vm11, %v3791_v9, %v3795_v0  ;;  %v3819_v63 = vrot.slane %v3817_v39, 5  ;;  %v3835_v1 = vshrl.u32 %v10098_v36, 16  ;;  %v3824_v35 = vrot.slane %v3822_v32, 4  ;;  %v10131_v59 = vld [vmem:[#allocation2 + $0xc8] sm:$0x1]  ;;  %v8703_v7 = vld [vmem:[#allocation2 + $0x40] sm:$0xff]  }
 0x1fa   : > { %8221 = vmatmul.mubr.bf16.vlgmr.msra.gmra.mxu1 %v8699_v8  ;;  %v7368_v22 = vcombine.low %v3786_v12, %v3796_v44  ;;  %v3805_v40 = vrot.slane %v3804_v17, 4  ;;  %v3827_v30 = vrot.slane %v3825_v43, 5  ;;  %v3814_v16 = vor.u32 %v3813_v15, %v10102_v42  ;;  %8361 = vmatpush3.bf16.msra.mxu0 %v8719_v14  ;;  %v3569_v27 = vld [vmem:[#allocation2 + $0xd0] sm:$0xf]  ;;  %v10138_v2 = vld [vmem:[#allocation2 + $0xd4] sm:$0xf] }
 0x1fb   : > { %8301 = vmatpush3.bf16.msra.mxu1 %v9953_v61  ;;  %8224 = vmatprep.mubr.bf16.mxu1 %v8700_v37  ;;  %v3833_v3 = vrot.slane %v3831_v10, 5  ;;  %v3837_v51 = vrot.slane %v3835_v1, 4  ;;  %v3841_v18 = vshll.u32 %v10111_v54, 16  ;;  %v3846_v61 = vshrl.u32 %v3566_v20, 16  ;;  %v10142_v9 = vld [vmem:[#allocation2 + $0xd8] sm:$0x1] }
 0x1fc   : > { %8284 = vmatprep.mubr.bf16.mxu0 %v7368_v22  ;;  %8302 = vmatprep.subr.bf16.mxu1 %v8702_v33  ;;  %v3810_v11 = vsel %vm9348_vm11, %v3805_v40, %v10102_v42  ;;  %v3828_v25 = vor.u32 %v3827_v30, %v3824_v35  ;;  %v3849_v60 = vshll.u32 %v3566_v20, 16  ;;  %v3815_v21 = vrot.slane %v3814_v16, 4  ;;  %v8711_v6 = vld [vmem:[%s11933_s4 + $0x160] sm:$0xff]   ;;  %v10152_v10 = vld [vmem:[%s11933_s4 + $0x238] sm:$0xff]  }
 0x1fd   : > { %v3838_v55 = vor.u32 %v3837_v51, %v3833_v3  ;;  %v3843_v31 = vrot.slane %v3841_v18, 5  ;;  %v3855_v4 = vshll.u32 %v10117_v48, 16  ;;  %v3848_v0 = vrot.slane %v3846_v61, 4  ;;  %8362 = vmatprep.subr.bf16.mxu0 %v8721_v28  ;;  %v3572_v43 = vld [vmem:[#allocation2 + $0xe0] sm:$0xf]  ;;  %v8716_v18 = vld [vmem:[%s11933_s4 + $0x158] sm:$0xff]  }
 0x1fe   : > { %v3829_v49 = vrot.slane %v3828_v25, 4  ;;  %v3851_v5 = vrot.slane %v3849_v60, 5  ;;  %v3859_v13 = vshrl.u32 %v10117_v48, 16  ;;  %v3820_v38 = vsel %vm9348_vm11, %v3815_v21, %v3819_v63  ;;  %8363 = vmatpush3.bf16.msra.mxu0 %v8721_v28  ;;  %v10157_v35 = vld [vmem:[#allocation2 + $0xe4] sm:$0xf] }
 0x1ff   : > { %8303 = vmatpush3.bf16.msra.mxu1 %v8702_v33  ;;  %v3839_v23 = vrot.slane %v3838_v55, 4  ;;  %v3857_v29 = vrot.slane %v3855_v4, 5  ;;  %v3865_v34 = vshll.u32 %v10131_v59, 16  ;;  %v7369_v14 = vcombine.low %v3810_v11, %v3820_v38  ;;  %v3575_v51 = vld [vmem:[#allocation2 + $0xf0] sm:$0xf]  ;;  %8444 = vmatprep.subr.bf16.mxu0 %v10152_v10 }
 0x200   : > { %v3834_v42 = vsel %vm9348_vm11, %v3829_v49, %v3833_v3  ;;  %8304 = vmatprep.subr.bf16.mxu1 %v8706_v19  ;;  %v3852_v8 = vor.u32 %v3851_v5, %v3848_v0  ;;  %v3861_v12 = vrot.slane %v3859_v13, 4  ;;  %v3870_v17 = vshrl.u32 %v3569_v27, 16  ;;  %v10164_v61 = vld [vmem:[#allocation2 + $0xe8] sm:$0x1] }
 0x201   : > { %v3844_v39 = vsel %vm9348_vm11, %v3839_v23, %v3843_v31  ;;  %v3867_v33 = vrot.slane %v3865_v34, 5  ;;  %v3873_v32 = vshll.u32 %v3569_v27, 16  ;;  %8285 = vmatmul.mubr.bf16.gmra.mxu0 %v7369_v14  ;;  %v3879_v63 = vshll.u32 %v10138_v2, 16  ;;  %v10171_v27 = vld [vmem:[#allocation2 + $0xf4] sm:$0xf] }
 0x202   : > { %8225 = vmatmul.mubr.bf16.gmra.mxu1 %v8703_v7  ;;  %v7370_v37 = vcombine.low %v3834_v42, %v3844_v39  ;;  %v3853_v44 = vrot.slane %v3852_v8, 4  ;;  %v3862_v15 = vor.u32 %v3861_v12, %v3857_v29  ;;  %v3872_v1 = vrot.slane %v3870_v17, 4  ;;  %v8722_v7 = vld [vmem:[%s11933_s4 + $0x150] sm:$0xff]  }
 0x203   : > { %8228 = vmatprep.mubr.bf16.mxu1 %v8704_v24  ;;  %8305 = vmatpush3.bf16.msra.mxu1 %v8706_v19  ;;  %v3875_v20 = vrot.slane %v3873_v32, 5  ;;  %v3883_v22 = vshrl.u32 %v10138_v2, 16  ;;  %v3889_v40 = vshll.u32 %v10142_v9, 16  ;;  %v3881_v16 = vrot.slane %v3879_v63, 5  ;;  %v8707_v24 = vld [vmem:[#allocation2 + $0x60] sm:$0xff]   ;;  %v8708_v14 = vld [vmem:[#allocation2 + $0x70] sm:$0xff]  }
 0x204   : > { %8288 = vmatprep.mubr.bf16.mxu0 %v7370_v37  ;;  %v3858_v30 = vsel %vm9348_vm11, %v3853_v44, %v3857_v29  ;;  %v3863_v28 = vrot.slane %v3862_v15, 4  ;;  %8306 = vmatprep.subr.bf16.mxu1 %v8711_v6  ;;  %v3894_v3 = vshrl.u32 %v3572_v43, 16  ;;  %v3897_v60 = vshll.u32 %v3572_v43, 16  ;;  %v3578_v37 = vld [vmem:[#allocation2 + $0x100] sm:$0xf] }
 0x205   : > { %v3876_v11 = vor.u32 %v3875_v20, %v3872_v1  ;;  %v3885_v25 = vrot.slane %v3883_v22, 4  ;;  %v3891_v19 = vrot.slane %v3889_v40, 5  ;;  %v3903_v31 = vshll.u32 %v10157_v35, 16  ;;  %v10185_v20 = vld [vmem:[#allocation2 + $0x104] sm:$0xf] }
 0x206   : > { %v3868_v21 = vsel %vm9348_vm11, %v3863_v28, %v3867_v33  ;;  %v3896_v55 = vrot.slane %v3894_v3, 4  ;;  %v3907_v4 = vshrl.u32 %v10157_v35, 16  ;;  %v3899_v13 = vrot.slane %v3897_v60, 5 }
 0x207   : > { %v7371_v49 = vcombine.low %v3858_v30, %v3868_v21  ;;  %v3877_v0 = vrot.slane %v3876_v11, 4  ;;  %v3886_v5 = vor.u32 %v3885_v25, %v3881_v16  ;;  %8307 = vmatpush3.bf16.msra.mxu1 %v8711_v6  ;;  %v3905_v38 = vrot.slane %v3903_v31, 5  ;;  %v10179_v6 = vld [vmem:[#allocation2 + $0xf8] sm:$0x1]  ;;  %v10193_v25 = vld [vmem:[#allocation2 + $0x108] sm:$0x1] }
 0x208   : > { %v3909_v23 = vrot.slane %v3907_v4, 4  ;;  %v3913_v29 = vshll.u32 %v10164_v61, 16  ;;  %v3918_v34 = vshrl.u32 %v3575_v51, 16  ;;  %8308 = vmatprep.subr.bf16.mxu1 %v8716_v18  ;;  %v3900_v12 = vor.u32 %v3899_v13, %v3896_v55 }
 0x209   : > { %v3882_v42 = vsel %vm9348_vm11, %v3877_v0, %v3881_v16  ;;  %v3887_v8 = vrot.slane %v3886_v5, 4  ;;  %v3921_v39 = vshll.u32 %v3575_v51, 16  ;;  %8289 = vmatmul.mubr.bf16.gmra.mxu0 %v7371_v49  ;;  %v3927_v43 = vshll.u32 %v10171_v27, 16  ;;  %v8727_v16 = vld [vmem:[%s11933_s4 + $0x148] sm:$0xff]   ;;  %v8712_v5 = vld [vmem:[#allocation2 + $0x80] sm:$0xff]  }
 0x20a   : > { %8229 = vmatmul.mubr.bf16.gmra.mxu1 %v8707_v24  ;;  %v3910_v33 = vor.u32 %v3909_v23, %v3905_v38  ;;  %v3915_v17 = vrot.slane %v3913_v29, 5  ;;  %v3920_v32 = vrot.slane %v3918_v34, 4  ;;  %v3901_v15 = vrot.slane %v3900_v12, 4  ;;  %v8732_v29 = vld [vmem:[%s11933_s4 + $0x140] sm:$0xff]   ;;  %v8713_v34 = vld [vmem:[#allocation2 + $0x90] sm:$0xff]  }
 0x20b   : > { %8232 = vmatprep.mubr.bf16.mxu1 %v8708_v14  ;;  %v3892_v44 = vsel %vm9348_vm11, %v3887_v8, %v3891_v19  ;;  %v3923_v63 = vrot.slane %v3921_v39, 5  ;;  %v3931_v1 = vshrl.u32 %v10171_v27, 16  ;;  %8309 = vmatpush3.bf16.msra.mxu1 %v8716_v18  ;;  %v3929_v30 = vrot.slane %v3927_v43, 5  ;;  %v10210_v43 = vld [vmem:[%s11933_s4 + $0x1f8] sm:$0xff]  }
 0x20c   : > { %v7372_v22 = vcombine.low %v3882_v42, %v3892_v44  ;;  %v3911_v40 = vrot.slane %v3910_v33, 4  ;;  %v3937_v28 = vshll.u32 %v10179_v6, 16  ;;  %8310 = vmatprep.subr.bf16.mxu1 %v8722_v7  ;;  %v3906_v3 = vsel %vm9348_vm11, %v3901_v15, %v3905_v38  ;;  %v8717_v15 = vld [vmem:[#allocation2 + $0xa0] sm:$0xff]  }
 0x20d   : > { %v3924_v51 = vor.u32 %v3923_v63, %v3920_v32  ;;  %v3933_v11 = vrot.slane %v3931_v1, 4  ;;  %v3942_v18 = vshrl.u32 %v3578_v37, 16  ;;  %v3945_v21 = vshll.u32 %v3578_v37, 16  ;;  %v8718_v1 = vld [vmem:[#allocation2 + $0xb0] sm:$0xff]  }
 0x20e   : > { %8292 = vmatprep.mubr.bf16.mxu0 %v7372_v22  ;;  %v3916_v19 = vsel %vm9348_vm11, %v3911_v40, %v3915_v17  ;;  %v3939_v60 = vrot.slane %v3937_v28, 5  ;;  %v3951_v55 = vshll.u32 %v10185_v20, 16  ;;  %v3955_v38 = vshrl.u32 %v10185_v20, 16  ;;  %v8720_v40 = vld [vmem:[#allocation2 + $0x20] sm:$0xff]  }
 0x20f   : > { %v7373_v31 = vcombine.low %v3906_v3, %v3916_v19  ;;  %v3925_v4 = vrot.slane %v3924_v51, 4  ;;  %v3934_v49 = vor.u32 %v3933_v11, %v3929_v30  ;;  %v3944_v0 = vrot.slane %v3942_v18, 4  ;;  %8311 = vmatpush3.bf16.msra.mxu1 %v8722_v7 }
 0x210   : > { %v3947_v13 = vrot.slane %v3945_v21, 5  ;;  %v3953_v24 = vrot.slane %v3951_v55, 5  ;;  %v3961_v23 = vshll.u32 %v10193_v25, 16  ;;  %8312 = vmatprep.subr.bf16.mxu1 %v8727_v16  ;;  %v3957_v8 = vrot.slane %v3955_v38, 4  ;;  %v4294_v55 = vld [vmem:[#allocation2 + $0x80] sm:$0xe] }
 0x211   : > { %v3930_v14 = vsel %vm9348_vm11, %v3925_v4, %v3929_v30  ;;  %v3935_v42 = vrot.slane %v3934_v49, 4  ;;  %8293 = vmatmul.mubr.bf16.gmra.mxu0 %v7373_v31  ;;  %v4292_v30 = vld [vmem:[#allocation2 + $0x60] sm:$0xe]  ;;  %v4388_v28 = vrot.slane %v9984_v47, 5  ;;  %v4391_v3 = vrot.slane %v9986_v52, 5 }
 0x212   : > { %8233 = vmatmul.mubr.bf16.gmra.mxu1 %v8712_v5  ;;  %v3948_v7 = vor.u32 %v3947_v13, %v3944_v0  ;;  %v3958_v17 = vor.u32 %v3957_v8, %v3953_v24  ;;  %v3963_v32 = vrot.slane %v3961_v23, 5  ;;  %v4395_v51 = vrot.slane %v10009_v41, 5  ;;  %v8723_v49 = vld [vmem:[#allocation2 + $0xc0] sm:$0xff]   ;;  %v8725_v0 = vld [vmem:[#allocation2 + $0x30] sm:$0xff]  }
 0x213   : > { %8236 = vmatprep.mubr.bf16.mxu1 %v8713_v34  ;;  %v3940_v12 = vsel %vm9348_vm11, %v3935_v42, %v3939_v60  ;;  %8313 = vmatpush3.bf16.msra.mxu1 %v8727_v16  ;;  %v4293_v16 = vld [vmem:[#allocation2 + $0x70] sm:$0xe]  ;;  %v7389_v11 = vrot.slane %v4292_v30, 9  ;;  %v4390_v18 = vrot.slane %v4388_v28, 4  ;;  %v4398_v21 = vrot.slane %v10018_v53, 5  ;;  %v8726_v34 = vld [vmem:[#allocation2 + $0x40] sm:$0xff]  }
 0x214   : > { %v7374_v39 = vcombine.low %v3930_v14, %v3940_v12  ;;  %v3949_v33 = vrot.slane %v3948_v7, 4  ;;  %8314 = vmatprep.subr.bf16.mxu1 %v8732_v29  ;;  %v3959_v44 = vrot.slane %v3958_v17, 4  ;;  %v7390_v19 = vrot.slane %v4293_v16, 9  ;;  %v8742_v5 = vld [vmem:[%s11933_s4 + $0x230] sm:$0xff]   ;;  %v8728_v16 = vld [vmem:[#allocation2 + $0xe0] sm:$0xff]  }
 0x215   : > { %v4397_v60 = vrot.slane %v4395_v51, 4  ;;  %v4402_v31 = vrot.slane %v10028_v62, 5  ;;  %v4405_v4 = vrot.slane %v10048_v56, 5  ;;  %v10225_v47 = vsel %vm9555_vm14, %v7389_v11, %v4388_v28  ;;  %v4295_v62 = vld [vmem:[#allocation2 + $0x90] sm:$0xe] }
 0x216   : > { %8296 = vmatprep.mubr.bf16.mxu0 %v7374_v39  ;;  %v3954_v37 = vsel %vm9348_vm11, %v3949_v33, %v3953_v24  ;;  %v3964_v63 = vsel %vm9348_vm11, %v3959_v44, %v3963_v32  ;;  %v10229_v52 = vsel %vm9555_vm14, %v4390_v18, %v4391_v3  ;;  %v10233_v41 = vsel %vm9555_vm14, %v7390_v19, %v4395_v51  ;;  %v8724_v56 = vld [vmem:[#allocation2 + $0xd0] sm:$0xff]   ;;  %v8746_v44 = vld [vmem:[%s11933_s4 + $0x228] sm:$0xff]  }
 0x217   : > { %8315 = vmatpush3.bf16.msra.mxu1 %v8732_v29  ;;  %v7375_v22 = vcombine.low %v3954_v37, %v3964_v63  ;;  %v10237_v53 = vsel %vm9555_vm14, %v4397_v60, %v4398_v21  ;;  %v7391_v38 = vrot.slane %v4294_v55, 9  ;;  %v4404_v23 = vrot.slane %v4402_v31, 4  ;;  %v4296_v29 = vld [vmem:[#allocation2 + $0xa0] sm:$0xe]  ;;  %v4297_v8 = vld [vmem:[#allocation2 + $0xb0] sm:$0xe] }
 0x218   : > { %8396 = vmatprep.subr.bf16.mxu1 %v10210_v43  ;;  %v4409_v14 = vrot.slane %v10058_v45, 5  ;;  %v4412_v42 = vrot.slane %v10071_v50, 5  ;;  %v4416_v7 = vrot.slane %v10074_v26, 5  ;;  %v4419_v17 = vrot.slane %v10086_v57, 5  ;;  %v8730_v3 = vld [vmem:[#allocation2 + $0x50] sm:$0xff]  }
 0x219   : > { %8297 = vmatmul.mubr.bf16.gmra.mxu0 %v7375_v22  ;;  %v10253_v39 = vsel %vm9555_vm14, %v7391_v38, %v4402_v31  ;;  %v10257_v33 = vsel %vm9555_vm14, %v4404_v23, %v4405_v4  ;;  %v4423_v45 = vrot.slane %v10098_v36, 5  ;;  %v7392_v26 = vrot.slane %v4295_v62, 9  ;;  %v8783_v36 = vld [vmem:[#allocation2 + $0x14] sm:$0xf]  ;;  %v4287_v19 = vld [vmem:[#allocation2 + $0x10] sm:$0xe] }
 0x21a   : > { %8237 = vmatmul.mubr.bf16.gmra.mxu1 %v8717_v15  ;;  %8364 = vmatprep.mubr.bf16.mxu0 %v8720_v40  ;;  %v4411_v32 = vrot.slane %v4409_v14, 4  ;;  %v7393_v37 = vrot.slane %v4296_v29, 9  ;;  %v4418_v15 = vrot.slane %v4416_v7, 4  ;;  %v7394_v63 = vrot.slane %v4297_v8, 9  ;;  %v4298_v55 = vld [vmem:[#allocation2 + $0xc0] sm:$0xe] }
 0x21b   : > { %8240 = vmatprep.mubr.bf16.mxu1 %v8718_v1  ;;  %v4425_v1 = vrot.slane %v4423_v45, 4  ;;  %v4426_v57 = vrot.slane %v10111_v54, 5  ;;  %v4353_v22 = vrot.slane %v8783_v36, 5  ;;  %v4299_v31 = vld [vmem:[#allocation2 + $0xd0] sm:$0xe]  ;;  %v8748_v62 = vld [vmem:[%s11933_s4 + $0x220] sm:$0xff]  }
 0x21c   : > { %v10276_v30 = vsel %vm9555_vm14, %v4411_v32, %v4412_v42  ;;  %v10280_v28 = vsel %vm9555_vm14, %v7393_v37, %v4416_v7  ;;  %v10286_v51 = vsel %vm9555_vm14, %v4418_v15, %v4419_v17  ;;  %v10290_v11 = vsel %vm9555_vm14, %v7394_v63, %v4423_v45  ;;  %v8729_v4 = vld [vmem:[#allocation2 + $0xf0] sm:$0xff]   ;;  %v8731_v23 = vld [vmem:[#allocation2 + $0x60] sm:$0xff]  }
 0x21d   : > { %v10294_v18 = vsel %vm9555_vm14, %v4425_v1, %v4426_v57  ;;  %v4437_v38 = vrot.slane %v10138_v2, 5  ;;  %v7395_v42 = vrot.slane %v4298_v55, 9  ;;  %v7384_v8 = vrot.slane %v4287_v19, 9  ;;  %v10311_v2 = vld [vmem:[#allocation2 + $0x24] sm:$0xf] }
 0x21e   : > { %v7396_v17 = vrot.slane %v4299_v31, 9  ;;  %v4360_v45 = vrot.slane %v10311_v2, 5  ;;  %v4288_v37 = vld [vmem:[#allocation2 + $0x20] sm:$0xe]  ;;  %v8786_v15 = vld [vmem:[#allocation2 + $0x34] sm:$0xf] }
 0x21f   : > { %v4367_v63 = vrot.slane %v8786_v15, 5  ;;  %v8787_v19 = vld [vmem:[#allocation2 + $0x28] sm:$0x1]  ;;  %v10396_v2 = vld [vmem:[#allocation2 + $0x38] sm:$0x1]  ;;  %v8757_v54 = vld [vmem:[%s11933_s4 + $0x200] sm:$0xff]  }
 0x220   : > { %v10331_v36 = vsel %vm9555_vm14, %v7396_v17, %v4437_v38  ;;  %v4363_v55 = vrot.slane %v8787_v19, 5  ;;  %v4454_v17 = vrot.slane %v10179_v6, 5 }
 0x221   : > { %8365 = vmatmul.mubr.bf16.vlgmr.msra.gmra.mxu0 %v8725_v0 }
 0x222   : > { %8241 = vmatmul.mubr.bf16.gmra.mxu1 %v8723_v49  ;;  %v10249_v12 = vpop.f32.mrf.mxu0  ;;  %8368 = vmatprep.mubr.bf16.mxu0 %v8726_v34  ;;  %v8784_v49 = vld [vmem:[#allocation2 + $0x18] sm:$0x1]  ;;  %v4440_v34 = vrot.slane %v10142_v9, 5 }
 0x223   : > { %8244 = vmatprep.mubr.bf16.mxu1 %v8724_v56  ;;  %12001 = vst [vmem:[#allocation7_spill] sm:$0xff] %v10249_v12  ;;  %8445 = vmatpush3.bf16.msra.mxu0 %v10152_v10  ;;  %v10272_v10 = vsel %vm9555_vm14, %v7392_v26, %v4409_v14  ;;  %v4356_v0 = vrot.slane %v8784_v49, 5  ;;  %v4430_v56 = vrot.slane %v10117_v48, 5  ;;  %v4355_v14 = vrot.slane %v4353_v22, 4  ;;  %v8751_v9 = vld [vmem:[%s11933_s4 + $0x218] sm:$0xff]  }
 0x224   : > { %8446 = vmatprep.subr.bf16.mxu0 %v8742_v5  ;;  %v10268_v40 = vpop.f32.mrf.mxu0  ;;  %v4439_v48 = vrot.slane %v4437_v38, 4  ;;  %v4301_v49 = vld [vmem:[#allocation2 + $0xf0] sm:$0xe]  ;;  %v4444_v38 = vrot.slane %v10157_v35, 5  ;;  %v4369_v35 = vrot.slane %v4367_v63, 4 }
 0x225   : > { %12002 = vst [vmem:[#allocation9_spill] sm:$0xff] %v10268_v40  ;;  %v4432_v7 = vrot.slane %v4430_v56, 4  ;;  %v10319_v26 = vsel %vm9555_vm14, %v7395_v42, %v4430_v56  ;;  %v8788_v56 = vld [vmem:[#allocation2 + $0x38] sm:$0x1]  ;;  %v8734_v42 = vld [vmem:[#allocation2 + $0x70] sm:$0xff]   ;;  %v7398_v19 = vrot.slane %v4301_v49, 9 }
 0x226   : > { %v10306_v29 = vpop.f32.mrf.mxu0  ;;  %v10368_v49 = vld [vmem:[#allocation2 + $0x50] sm:$0xe]  ;;  %v10505_v40 = vld [vmem:[#allocation2 + $0x84] sm:$0xf]  ;;  %v5178_v12 = vld [vmem:[#allocation2 + $0x40] sm:$0xf] }
 0x227   : > { %8447 = vmatpush3.bf16.msra.mxu0 %v8742_v5  ;;  %v4433_v5 = vrot.slane %v10131_v59, 5  ;;  %12003 = vst [vmem:[#allocation8_spill] sm:$0xff] %v10306_v29  ;;  %v4357_v59 = vsel %vm9555_vm14, %v4355_v14, %v4356_v0  ;;  %v8733_v0 = vld [vmem:[#allocation2 + $0x100] sm:$0xff]   ;;  %v10496_v29 = vld [vmem:[#allocation2 + $0x78] sm:$0x1] }
 0x228   : > { %8448 = vmatprep.subr.bf16.mxu0 %v8746_v44  ;;  %v10325_v1 = vpop.f32.mrf.mxu0  ;;  %12017 = vst [vmem:[#allocation22_spill] sm:$0xff] %v10496_v29 }
 0x229   : > { %8369 = vmatmul.mubr.bf16.gmra.mxu0 %v8730_v3  ;;  %v10323_v32 = vsel %vm9555_vm14, %v4432_v7, %v4433_v5  ;;  %12004 = vst [vmem:[#allocation10_spill] sm:$0xff] %v10325_v1  ;;  %v4354_v3 = vsel %vm9555_vm14, %v7384_v8, %v4353_v22  ;;  %v4370_v5 = vrot.slane %v8788_v56, 5  ;;  %v8735_v22 = vld [vmem:[#allocation2 + $0x80] sm:$0xff]   ;;  %v4362_v7 = vrot.slane %v4360_v45, 4  ;;  %v8753_v8 = vld [vmem:[%s11933_s4 + $0x210] sm:$0xff]  }
 0x22a   : > { %8245 = vmatmul.mubr.bf16.gmra.mxu1 %v8728_v16  ;;  %8372 = vmatprep.mubr.bf16.mxu0 %v8731_v23  ;;  %v10335_v16 = vsel %vm9555_vm14, %v4439_v48, %v4440_v34  ;;  %v4447_v23 = vrot.slane %v10164_v61, 5  ;;  %v4451_v34 = vrot.slane %v10171_v27, 5  ;;  %v7416_v14 = vcombine.low %v4354_v3, %v4357_v59  ;;  %v4302_v59 = vld [vmem:[#allocation2 + $0x100] sm:$0xe]  ;;  %v5175_v1 = vld [vmem:[#allocation2 + $0x30] sm:$0xf] }
 0x22b   : > { %8248 = vmatprep.mubr.bf16.mxu1 %v8729_v4  ;;  %8449 = vmatpush3.bf16.msra.mxu0 %v8746_v44  ;;  %v4289_v44 = vld [vmem:[#allocation2 + $0x30] sm:$0xe]  ;;  %v4300_v4 = vld [vmem:[#allocation2 + $0xe0] sm:$0xe]  ;;  %v4446_v27 = vrot.slane %v4444_v38, 4  ;;  %v4364_v15 = vsel %vm9555_vm14, %v4362_v7, %v4363_v55  ;;  %v4371_v6 = vsel %vm9555_vm14, %v4369_v35, %v4370_v5  ;;  %v8756_v5 = vld [vmem:[%s11933_s4 + $0x208] sm:$0xff]  }
 0x22c   : > { %8450 = vmatprep.subr.bf16.mxu0 %v8748_v62  ;;  %v7397_v61 = vrot.slane %v4300_v4, 9  ;;  %v7386_v3 = vrot.slane %v4289_v44, 9  ;;  %v4453_v56 = vrot.slane %v4451_v34, 4  ;;  %v10358_v4 = vld [vmem:[#allocation2 + $0x24] sm:$0xf] }
 0x22d   : > { %v10366_v44 = vsel %vm9555_vm14, %v4446_v27, %v4447_v23  ;;  %v4290_v55 = vld [vmem:[#allocation2 + $0x40] sm:$0xe]  ;;  %v7399_v23 = vrot.slane %v4302_v59, 9  ;;  %v8790_v35 = vld [vmem:[#allocation2 + $0x48] sm:$0x1]  ;;  %v11950_v59 = vrot.slane %v10358_v4, 5 }
 0x22e   : > { %12008 = vst [vmem:[#allocation14_spill] sm:$0xff] %v10366_v44  ;;  %v4368_v7 = vsel %vm9555_vm14, %v7386_v3, %v4367_v63  ;;  %v10389_v27 = vld [vmem:[#allocation2 + $0x28] sm:$0x1]  ;;  %v8745_v44 = vld [vmem:[#allocation2 + $0xd0] sm:$0xff]  }
 0x22f   : > { %8451 = vmatpush3.bf16.msra.mxu0 %v8748_v62  ;;  %v7385_v62 = vrot.slane %v4288_v37, 9  ;;  %v7418_v3 = vcombine.low %v4368_v7, %v4371_v6  ;;  %v8737_v6 = vld [vmem:[#allocation2 + $0x90] sm:$0xff]   ;;  %v5926_v7 = vld [vmem:[#allocation2 + $0x20] sm:$0xe] }
 0x230   : > { %8452 = vmatprep.subr.bf16.mxu0 %v8751_v9 }
 0x231   : > { %v10350_v48 = vpop.f32.mrf.mxu0  ;;  %8373 = vmatmul.mubr.bf16.gmra.mxu0 %v8734_v42  ;;  %v10377_v42 = vsel %vm9555_vm14, %v7398_v19, %v4451_v34  ;;  %v8792_v34 = vld [vmem:[#allocation2 + $0x58] sm:$0x1] }
 0x232   : > { %8249 = vmatmul.mubr.bf16.gmra.mxu1 %v8733_v0  ;;  %12005 = vst [vmem:[#allocation11_spill] sm:$0xff] %v10350_v48  ;;  %8376 = vmatprep.mubr.bf16.mxu0 %v8735_v22  ;;  %v8789_v0 = vld [vmem:[#allocation2 + $0x44] sm:$0xf]  ;;  %12009 = vst [vmem:[#allocation15_spill] sm:$0xff] %v10377_v42  ;;  %v4361_v22 = vsel %vm9555_vm14, %v7385_v62, %v4360_v45  ;;  %v4458_v45 = vrot.slane %v10185_v20, 5  ;;  %v4461_v62 = vrot.slane %v10193_v25, 5 }
 0x233   : > { %8316 = vmatprep.mubr.bf16.mxu1 %v7416_v14  ;;  %v4374_v37 = vrot.slane %v8789_v0, 5  ;;  %v10356_v31 = vpop.f32.mrf.mxu0  ;;  %8453 = vmatpush3.bf16.msra.mxu0 %v8751_v9  ;;  %v10362_v14 = vsel %vm9555_vm14, %v7397_v61, %v4444_v38  ;;  %v10381_v38 = vsel %vm9555_vm14, %v4453_v56, %v4454_v17  ;;  %v4377_v61 = vrot.slane %v8790_v35, 5  ;;  %v10391_v0 = vld [vmem:[#allocation2 + $0x34] sm:$0xf]  ;;  %v10406_v20 = vld [vmem:[#allocation2 + $0x44] sm:$0xf] }
 0x234   : > { %12006 = vst [vmem:[#allocation12_spill] sm:$0xff] %v10356_v31  ;;  %12007 = vst [vmem:[#allocation13_spill] sm:$0xff] %v10362_v14  ;;  %8454 = vmatprep.subr.bf16.mxu0 %v8753_v8  ;;  %v8791_v17 = vld [vmem:[#allocation2 + $0x54] sm:$0xf]  ;;  %v7417_v63 = vcombine.low %v4361_v22, %v4364_v15  ;;  %v7387_v35 = vrot.slane %v4290_v55, 9  ;;  %v4384_v21 = vrot.slane %v8792_v34, 5  ;;  %v10410_v25 = vsel %vm9555_vm14, %v7399_v23, %v4458_v45 }
 0x235   : > { %12010 = vst [vmem:[#allocation16_spill] sm:$0xff] %v10381_v38  ;;  %v4381_v19 = vrot.slane %v8791_v17, 5  ;;  %v8740_v56 = vld [vmem:[%s11933_s4 + $0x1f0] sm:$0xff]   ;;  %v4376_v9 = vrot.slane %v4374_v37, 4  ;;  %v10403_v57 = vpop.f32.mrf.mxu0  ;;  %v5172_v17 = vld [vmem:[#allocation2 + $0x20] sm:$0xf]  ;;  %v12021_v42 = vcombine.low %v10225_v47, %v10229_v52  ;;  %v12022_v14 = vcombine.low %v10233_v41, %v10237_v53 }
 0x236   : > { %12011 = vst [vmem:[#allocation17_spill] sm:$0xff] %v10403_v57  ;;  %v5999_v60 = vrot.slane %v10391_v0, 5  ;;  %12012 = vst [vmem:[#allocation18_spill] sm:$0xff] %v10410_v25  ;;  %v4460_v15 = vrot.slane %v4458_v45, 4  ;;  %v4375_v55 = vsel %vm9555_vm14, %v7387_v35, %v4374_v37  ;;  %v7388_v22 = vrot.slane %v10368_v49, 9  ;;  %v8739_v23 = vld [vmem:[#allocation2 + $0xa0] sm:$0xff]  }
 0x237   : > { %8455 = vmatpush3.bf16.msra.mxu0 %v8753_v8  ;;  %v4378_v8 = vsel %vm9555_vm14, %v4376_v9, %v4377_v61  ;;  %v5995_v34 = vrot.slane %v10389_v27, 5  ;;  %v4383_v45 = vrot.slane %v4381_v19, 4  ;;  %v5994_v37 = vrot.slane %v11950_v59, 4  ;;  %v10425_v9 = vld [vmem:[#allocation2 + $0x48] sm:$0x1]  ;;  %v10434_v61 = vpop.f32.mrf.mxu0 }
 0x238   : > { %8456 = vmatprep.subr.bf16.mxu0 %v8756_v5  ;;  %v10429_v49 = vsel %vm9555_vm14, %v4460_v15, %v4461_v62  ;;  %12014 = vst [vmem:[#allocation20_spill] sm:$0xff] %v10434_v61  ;;  %v6006_v35 = vrot.slane %v10406_v20, 5  ;;  %v5221_v24 = vshrl.u32 %v5172_v17, 16  ;;  %v5224_v13 = vshll.u32 %v5172_v17, 16  ;;  %v5928_v31 = vld [vmem:[#allocation2 + $0x40] sm:$0xe] }
 0x239   : > { %12013 = vst [vmem:[#allocation19_spill] sm:$0xff] %v10429_v49  ;;  %8377 = vmatmul.mubr.bf16.gmra.mxu0 %v8737_v6  ;;  %v7419_v59 = vcombine.low %v4375_v55, %v4378_v8  ;;  %v4385_v62 = vsel %vm9555_vm14, %v4383_v45, %v4384_v21  ;;  %v6001_v15 = vrot.slane %v5999_v60, 4  ;;  %v4382_v6 = vsel %vm9555_vm14, %v7388_v22, %v4381_v19  ;;  %v10448_v17 = vld [vmem:[#allocation2 + $0x54] sm:$0xf]  ;;  %v10454_v8 = vld [vmem:[#allocation2 + $0x64] sm:$0xf] }
 0x23a   : > { %8317 = vmatmul.mubr.bf16.vlgmr.msra.gmra.mxu1 %v7417_v63  ;;  %v6002_v63 = vrot.slane %v10396_v2, 5  ;;  %8380 = vmatprep.mubr.bf16.mxu0 %v8739_v23  ;;  %v7520_v57 = vrot.slane %v5926_v7, 9  ;;  %v10445_v61 = vsel %vm9555_vm14, %v5994_v37, %v5995_v34  ;;  %v6009_v50 = vrot.slane %v10425_v9, 5  ;;  %v8749_v34 = vld [vmem:[%s11933_s4 + $0x1e0] sm:$0xff]   ;;  %v10463_v45 = vld [vmem:[#allocation2 + $0x58] sm:$0x1] }
 0x23b   : > { %8397 = vmatpush3.bf16.msra.mxu1 %v10210_v43  ;;  %8320 = vmatprep.mubr.bf16.mxu1 %v7418_v3  ;;  %v8744_v43 = vld [vmem:[%s11933_s4 + $0x1e8] sm:$0xff]   ;;  %v5927_v3 = vld [vmem:[#allocation2 + $0x30] sm:$0xe]  ;;  %v5230_v19 = vshll.u32 %v10358_v4, 16  ;;  %v5234_v22 = vshrl.u32 %v10358_v4, 16  ;;  %v7420_v7 = vcombine.low %v4382_v6, %v4385_v62  ;;  %v5223_v37 = vrot.slane %v5221_v24, 4 }
 0x23c   : > { %8398 = vmatprep.subr.bf16.mxu1 %v8740_v56  ;;  %8457 = vmatpush3.bf16.msra.mxu0 %v8756_v5  ;;  %v7521_v55 = vrot.slane %v5927_v3, 9  ;;  %v10452_v21 = vsel %vm9555_vm14, %v6001_v15, %v6002_v63  ;;  %v5929_v5 = vld [vmem:[#allocation2 + $0x50] sm:$0xe]  ;;  %v5226_v63 = vrot.slane %v5224_v13, 5  ;;  %v12016_v3 = vrot.slane %v10358_v4, 5 }
 0x23d   : > { %8458 = vmatprep.subr.bf16.mxu0 %v8757_v54  ;;  %v10461_v23 = vpop.f32.mrf.mxu0  ;;  %v7522_v6 = vrot.slane %v5928_v31, 9  ;;  %v6013_v48 = vrot.slane %v10448_v17, 5  ;;  %v8741_v24 = vld [vmem:[#allocation2 + $0xb0] sm:$0xff]   ;;  %v6020_v31 = vrot.slane %v10454_v8, 5  ;;  %v10494_v13 = vrot.slane %v5230_v19, 5 }
 0x23e   : > { %12015 = vst [vmem:[#allocation21_spill] sm:$0xff] %v10461_v23  ;;  %v10469_v15 = vsel %vm9555_vm14, %v7520_v57, %v12016_v3  ;;  %v10473_v62 = vsel %vm9555_vm14, %v7521_v55, %v5999_v60  ;;  %v10476_v23 = vld [vmem:[#allocation2 + $0x68] sm:$0x1]  ;;  %v5930_v60 = vld [vmem:[#allocation2 + $0x60] sm:$0xe]  ;;  %v6016_v3 = vrot.slane %v10463_v45, 5 }
 0x23f   : > { %8399 = vmatpush3.bf16.msra.mxu1 %v8740_v56  ;;  %v6008_v56 = vrot.slane %v6006_v35, 4  ;;  %v10487_v4 = vld [vmem:[#allocation2 + $0x74] sm:$0xf]  ;;  %v8743_v55 = vld [vmem:[#allocation2 + $0xc0] sm:$0xff]   ;;  %v5236_v57 = vrot.slane %v5234_v22, 4  ;;  %v6015_v22 = vrot.slane %v6013_v48, 4 }
 0x240   : > { %8400 = vmatprep.subr.bf16.mxu1 %v8744_v43  ;;  %8459 = vmatpush3.bf16.msra.mxu0 %v8757_v54  ;;  %v10514_v25 = vld [vmem:[#allocation2 + $0x88] sm:$0x1]  ;;  %v5272_v38 = vshll.u32 %v5178_v12, 16  ;;  %v5278_v47 = vshll.u32 %v10406_v20, 16  ;;  %v5282_v52 = vshrl.u32 %v10406_v20, 16 }
 0x241   : > { %v10484_v54 = vsel %vm9555_vm14, %v6008_v56, %v6009_v50  ;;  %8381 = vmatmul.mubr.bf16.gmra.mxu0 %v8741_v24  ;;  %v10498_v50 = vpop.f32.mrf.mxu0  ;;  %v6023_v56 = vrot.slane %v10476_v23, 5  ;;  %v7524_v24 = vrot.slane %v5930_v60, 9  ;;  %12019 = vst [vmem:[#allocation24_spill] sm:$0xff] %v10514_v25  ;;  %v6037_v19 = vrot.slane %v10514_v25, 5 }
 0x242   : > { %8321 = vmatmul.mubr.bf16.gmra.mxu1 %v7419_v59  ;;  %v10491_v59 = vsel %vm9555_vm14, %v7522_v6, %v6006_v35  ;;  %12018 = vst [vmem:[#allocation23_spill] sm:$0xff] %v10498_v50  ;;  %v5227_v35 = vor.u32 %v5226_v63, %v5223_v37  ;;  %v5240_v6 = vshll.u32 %v10389_v27, 16  ;;  %8384 = vmatprep.mubr.bf16.mxu0 %v8743_v55  ;;  %v11957_v50 = vrot.slane %v10487_v4, 5 }
 0x243   : > { %8324 = vmatprep.mubr.bf16.mxu1 %v7420_v7  ;;  %8401 = vmatpush3.bf16.msra.mxu1 %v8744_v43  ;;  %v8754_v7 = vld [vmem:[%s11933_s4 + $0x1d8] sm:$0xff]   ;;  %v7523_v43 = vrot.slane %v5929_v5, 9  ;;  %v6022_v5 = vrot.slane %v6020_v31, 4  ;;  %v5245_v37 = vshrl.u32 %v5175_v1, 16  ;;  %v5248_v27 = vshll.u32 %v5175_v1, 16  ;;  %v8758_v1 = vld [vmem:[%s11933_s4 + $0x1d0] sm:$0xff]  }
 0x244   : > { %8402 = vmatprep.subr.bf16.mxu1 %v8749_v34  ;;  %v10518_v63 = vsel %vm9555_vm14, %v6015_v22, %v6016_v3  ;;  %v10522_v60 = vsel %vm9555_vm14, %v7524_v24, %v6020_v31  ;;  %v5237_v55 = vor.u32 %v5236_v57, %v10494_v13  ;;  %v5228_v3 = vrot.slane %v5227_v35, 4  ;;  %v5931_v22 = vld [vmem:[#allocation2 + $0x70] sm:$0xe]  ;;  %v5932_v24 = vld [vmem:[#allocation2 + $0x80] sm:$0xe] }
 0x245   : > { %v10512_v49 = vsel %vm9555_vm14, %v7523_v43, %v6013_v48  ;;  %v10526_v48 = vpop.f32.mrf.mxu0  ;;  %v5242_v43 = vrot.slane %v5240_v6, 5  ;;  %v6030_v31 = vrot.slane %v10496_v29, 5  ;;  %v6029_v57 = vrot.slane %v11957_v50, 4  ;;  %v8747_v50 = vld [vmem:[#allocation2 + $0xe0] sm:$0xff]  }
 0x246   : > { %12020 = vst [vmem:[#allocation25_spill] sm:$0xff] %v10526_v48  ;;  %v5269_v48 = vshrl.u32 %v5178_v12, 16  ;;  %v5254_v35 = vshll.u32 %v10391_v0, 16  ;;  %v5258_v6 = vshrl.u32 %v10391_v0, 16  ;;  %v5238_v25 = vrot.slane %v5237_v55, 4  ;;  %v8759_v0 = vld [vmem:[%s11933_s4 + $0x1c8] sm:$0xff]  }
 0x247   : > { %8403 = vmatpush3.bf16.msra.mxu1 %v8749_v34  ;;  %v10533_v34 = vsel %vm9555_vm14, %v6022_v5, %v6023_v56  ;;  %v5247_v56 = vrot.slane %v5245_v37, 4  ;;  %v5250_v5 = vrot.slane %v5248_v27, 5  ;;  %v12023_v12 = vrot.slane %v10505_v40, 5  ;;  %v5181_v37 = vld [vmem:[#allocation2 + $0x50] sm:$0xf] }
 0x248   : > { %8404 = vmatprep.subr.bf16.mxu1 %v8754_v7  ;;  %v5233_v41 = vsel %vm9348_vm11, %v5228_v3, %v10494_v13  ;;  %v7525_v53 = vrot.slane %v5931_v22, 9  ;;  %v5243_v20 = vsel %vm9348_vm11, %v5238_v25, %v5242_v43  ;;  %v5271_v55 = vrot.slane %v5269_v48, 4 }
 0x249   : > { %v6036_v29 = vrot.slane %v12023_v12, 4  ;;  %8385 = vmatmul.mubr.bf16.gmra.mxu0 %v8745_v44  ;;  %v5274_v12 = vrot.slane %v5272_v38, 5  ;;  %v5251_v13 = vor.u32 %v5250_v5, %v5247_v56  ;;  %v10571_v3 = vrot.slane %v5254_v35, 5  ;;  %v10594_v56 = vld [vmem:[#allocation2 + $0x94] sm:$0xf] }
 0x24a   : > { %8325 = vmatmul.mubr.bf16.gmra.mxu1 %v12021_v42  ;;  %v10551_v42 = vpop.f32.mrf.mxu0  ;;  %8388 = vmatprep.mubr.bf16.mxu0 %v8747_v50  ;;  %v5260_v22 = vrot.slane %v5258_v6, 4  ;;  %v10576_v50 = vrot.slane %v5278_v47, 5  ;;  %v5296_v25 = vshll.u32 %v5181_v37, 16  ;;  %v10596_v5 = vcombine.low %v5233_v41, %v5243_v20  ;;  %v10627_v20 = vld [vmem:[#allocation2 + $0xa4] sm:$0xf] }
 0x24b   : > { %8328 = vmatprep.mubr.bf16.mxu1 %v12022_v14  ;;  %8405 = vmatpush3.bf16.msra.mxu1 %v8754_v7  ;;  %12024 = vst [vmem:[#allocation26_spill] sm:$0xff] %v10551_v42  ;;  %v10561_v14 = vsel %vm9555_vm14, %v6029_v57, %v6030_v31  ;;  %v7526_v7 = vrot.slane %v5932_v24, 9  ;;  %v10563_v44 = vpop.f32.mrf.mxu1  ;;  %v10569_v27 = vsel %vm9555_vm14, %v6036_v29, %v6037_v19  ;;  %v5264_v31 = vshll.u32 %v10396_v2, 16  ;;  %v8760_v2 = vld [vmem:[%s11933_s4 + $0x1c0] sm:$0xff]  }
 0x24c   : > { %8406 = vmatprep.subr.bf16.mxu1 %v8758_v1  ;;  %12025 = vst [vmem:[#allocation27_spill] sm:$0xff] %v10563_v44  ;;  %12026 = vst [vmem:[#allocation28_spill] sm:$0xff] %v10569_v27  ;;  %v5284_v24 = vrot.slane %v5282_v52, 4  ;;  %v5293_v44 = vshrl.u32 %v5181_v37, 16  ;;  %v12029_v19 = vrot.slane %v10487_v4, 5  ;;  %v12030_v6 = vrot.slane %v10505_v40, 5 }
 0x24d   : > { %v10574_v57 = vpop.f32.mrf.mxu1  ;;  %v5275_v52 = vor.u32 %v5274_v12, %v5271_v55  ;;  %v10606_v37 = vld [vmem:[#allocation2 + $0x90] sm:$0xe]  ;;  %v10615_v35 = vrot.slane %v5251_v13, 4  ;;  %v5261_v38 = vor.u32 %v5260_v22, %v10571_v3  ;;  %v12033_v55 = vcombine.low %v10272_v10, %v10276_v30  ;;  %v8752_v12 = vld [vmem:[#allocation2 + $0x100] sm:$0xff]  }
 0x24e   : > { %12027 = vst [vmem:[#allocation29_spill] sm:$0xff] %v10574_v57  ;;  %v10591_v48 = vsel %vm9555_vm14, %v7525_v53, %v12029_v19  ;;  %v10604_v47 = vsel %vm9555_vm14, %v7526_v7, %v12030_v6  ;;  %v5184_v53 = vld [vmem:[#allocation2 + $0x60] sm:$0xf]  ;;  %v8750_v19 = vld [vmem:[#allocation2 + $0xf0] sm:$0xff]   ;;  %v5266_v7 = vrot.slane %v5264_v31, 5  ;;  %v5295_v13 = vrot.slane %v5293_v44, 4 }
 0x24f   : > { %8407 = vmatpush3.bf16.msra.mxu1 %v8758_v1  ;;  %v10578_v43 = vpop.f32.mrf.mxu0  ;;  %v5288_v1 = vshll.u32 %v10425_v9, 16  ;;  %v12031_v9 = vcombine.low %v10253_v39, %v10257_v33  ;;  %v10618_v6 = vld [vmem:[#allocation2 + $0x98] sm:$0x1]  ;;  %v10623_v39 = vpop.f32.mrf.mxu1  ;;  %v5285_v33 = vor.u32 %v5284_v24, %v10576_v50  ;;  %v5298_v29 = vrot.slane %v5296_v25, 5  ;;  %v10633_v24 = vld [vmem:[#allocation2 + $0xa8] sm:$0x1] }
 0x250   : > { %12028 = vst [vmem:[#allocation30_spill] sm:$0xff] %v10578_v43  ;;  %8408 = vmatprep.subr.bf16.mxu1 %v8759_v0  ;;  %12034 = vst [vmem:[#allocation32_spill] sm:$0xff] %v10623_v39  ;;  %v7527_v10 = vrot.slane %v10606_v37, 9  ;;  %v5317_v30 = vshrl.u32 %v5184_v53, 16  ;;  %v5276_v39 = vrot.slane %v5275_v52, 4  ;;  %v5302_v57 = vshll.u32 %v10448_v17, 16 }
 0x251   : > { %v10611_v41 = vpop.f32.mrf.mxu0  ;;  %8389 = vmatmul.mubr.bf16.gmra.mxu0 %v8750_v19  ;;  %v5290_v31 = vrot.slane %v5288_v1, 5  ;;  %v5306_v44 = vshrl.u32 %v10448_v17, 16  ;;  %v5262_v19 = vrot.slane %v5261_v38, 4  ;;  %v5326_v1 = vshll.u32 %v10454_v8, 16 }
 0x252   : > { %8329 = vmatmul.mubr.bf16.gmra.mxu1 %v12031_v9  ;;  %12032 = vst [vmem:[#allocation31_spill] sm:$0xff] %v10611_v41  ;;  %v6041_v9 = vrot.slane %v10594_v56, 5  ;;  %8392 = vmatprep.mubr.bf16.mxu0 %v8752_v12  ;;  %v5330_v37 = vshrl.u32 %v10454_v8, 16  ;;  %v5257_v52 = vsel %vm9348_vm11, %v10615_v35, %v10571_v3  ;;  %v5286_v12 = vrot.slane %v5285_v33, 4 }
 0x253   : > { %8332 = vmatprep.mubr.bf16.mxu1 %v12033_v55  ;;  %8409 = vmatpush3.bf16.msra.mxu1 %v8759_v0  ;;  %v10629_v22 = vpop.f32.mrf.mxu0  ;;  %v5320_v55 = vshll.u32 %v5184_v53, 16  ;;  %v6044_v0 = vrot.slane %v10618_v6, 5  ;;  %v10642_v53 = vpop.f32.mrf.mxu1  ;;  %v5299_v17 = vor.u32 %v5298_v29, %v5295_v13  ;;  %v5267_v38 = vsel %vm9348_vm11, %v5262_v19, %v5266_v7  ;;  %v8755_v7 = vld [vmem:[#allocation2 + $0x110] sm:$0xff]  }
 0x254   : > { %12035 = vst [vmem:[#allocation33_spill] sm:$0xff] %v10629_v22  ;;  %8410 = vmatprep.subr.bf16.mxu1 %v8760_v2  ;;  %v6048_v22 = vrot.slane %v10627_v20, 5  ;;  %12037 = vst [vmem:[#allocation35_spill] sm:$0xff] %v10642_v53  ;;  %v6043_v41 = vrot.slane %v6041_v9, 4  ;;  %v6051_v42 = vrot.slane %v10633_v24, 5  ;;  %v5319_v8 = vrot.slane %v5317_v30, 4 }
 0x255   : > { %v10637_v25 = vpop.f32.mrf.mxu0  ;;  %v5322_v27 = vrot.slane %v5320_v55, 5  ;;  %v10660_v35 = vrot.slane %v5302_v57, 5  ;;  %v5308_v29 = vrot.slane %v5306_v44, 4  ;;  %v12038_v33 = vcombine.low %v10280_v28, %v10286_v51  ;;  %v5187_v44 = vld [vmem:[#allocation2 + $0x70] sm:$0xf] }
 0x256   : > { %12036 = vst [vmem:[#allocation34_spill] sm:$0xff] %v10637_v25  ;;  %v5934_v25 = vld [vmem:[#allocation2 + $0xa0] sm:$0xe]  ;;  %v10658_v3 = vsel %vm9555_vm14, %v6043_v41, %v6044_v0  ;;  %v5291_v30 = vsel %vm9348_vm11, %v5286_v12, %v5290_v31  ;;  %v6050_v55 = vrot.slane %v6048_v22, 4  ;;  %v10669_v19 = vrot.slane %v5326_v1, 5 }
 0x257   : > { %8411 = vmatpush3.bf16.msra.mxu1 %v8760_v2  ;;  %v10648_v43 = vpop.f32.mrf.mxu0  ;;  %v5281_v2 = vsel %vm9348_vm11, %v5276_v39, %v10576_v50  ;;  %v5332_v50 = vrot.slane %v5330_v37, 4  ;;  %v10671_v39 = vld [vmem:[#allocation2 + $0xb4] sm:$0xf]  ;;  %v12039_v57 = vcombine.low %v10290_v11, %v10294_v18  ;;  %v10680_v28 = vsel %vm9555_vm14, %v7527_v10, %v6041_v9  ;;  %v5935_v12 = vld [vmem:[#allocation2 + $0xb0] sm:$0xe] }
 0x258   : > { %v7528_v51 = vrot.slane %v5934_v25, 9  ;;  %v10682_v0 = vrot.slane %v5299_v17, 4  ;;  %v5312_v31 = vshll.u32 %v10463_v45, 16  ;;  %v10685_v1 = vcombine.low %v5257_v52, %v5267_v38  ;;  %v10704_v17 = vld [vmem:[#allocation2 + $0xb8] sm:$0x1] }
 0x259   : > { %v10665_v13 = vpop.f32.mrf.mxu0  ;;  %v10676_v41 = vpop.f32.mrf.mxu1  ;;  %8393 = vmatmul.mubr.bf16.gmra.mxu0 %v8755_v7  ;;  %v10689_v37 = vsel %vm9555_vm14, %v6050_v55, %v6051_v42  ;;  %v5323_v11 = vor.u32 %v5322_v27, %v5319_v8  ;;  %v5336_v18 = vshll.u32 %v10476_v23, 16  ;;  %v12041_v9 = vcombine.low %v10469_v15, %v10445_v61  ;;  %v10707_v27 = vld [vmem:[#allocation2 + $0xc4] sm:$0xf]  ;;  %v5190_v55 = vld [vmem:[#allocation2 + $0x80] sm:$0xf] }
 0x25a   : > { %8333 = vmatmul.mubr.bf16.gmra.mxu1 %v12038_v33  ;;  %12040 = vst [vmem:[#allocation36_spill] sm:$0xff] %v10676_v41  ;;  %v10699_v45 = vcombine.low %v5281_v2, %v5291_v30  ;;  %v5309_v42 = vor.u32 %v5308_v29, %v10660_v35  ;;  %v6055_v23 = vrot.slane %v10671_v39, 5  ;;  %v10711_v61 = vsel %vm9555_vm14, %v7528_v51, %v6048_v22 }
 0x25b   : > { %8336 = vmatprep.mubr.bf16.mxu1 %v12039_v57  ;;  %8460 = vmatprep.mubr.bf16.mxu0 %v12041_v9  ;;  %v10695_v10 = vpop.f32.mrf.mxu1  ;;  %v10697_v25 = vpop.f32.mrf.mxu0  ;;  %v5333_v15 = vor.u32 %v5332_v50, %v10669_v19  ;;  %v5341_v38 = vshrl.u32 %v5187_v44, 16  ;;  %v5344_v8 = vshll.u32 %v5187_v44, 16  ;;  %v5305_v29 = vsel %vm9348_vm11, %v10682_v0, %v10660_v35  ;;  %v10723_v50 = vld [vmem:[#allocation2 + $0xc8] sm:$0x1] }
 0x25c   : > { %12042 = vst [vmem:[#allocation37_spill] sm:$0xff] %v10695_v10  ;;  %12043 = vst [vmem:[#allocation38_spill] sm:$0xff] %v10697_v25  ;;  %v5314_v7 = vrot.slane %v5312_v31, 5  ;;  %v7529_v30 = vrot.slane %v5935_v12, 9  ;;  %v5324_v57 = vrot.slane %v5323_v11, 4  ;;  %v5338_v22 = vrot.slane %v5336_v18, 5 }
 0x25d   : > { %v10714_v2 = vpop.f32.mrf.mxu1  ;;  %v6058_v51 = vrot.slane %v10704_v17, 5  ;;  %v6062_v44 = vrot.slane %v10707_v27, 5  ;;  %v10726_v9 = vpop.f32.mrf.mxu0  ;;  %v5310_v52 = vrot.slane %v5309_v42, 4  ;;  %v5350_v35 = vshll.u32 %v10487_v4, 16  ;;  %v5936_v10 = vld [vmem:[#allocation2 + $0xc0] sm:$0xe] }
 0x25e   : > { %12044 = vst [vmem:[#allocation39_spill] sm:$0xff] %v10714_v2  ;;  %12045 = vst [vmem:[#allocation40_spill] sm:$0xff] %v10726_v9  ;;  %v10730_v33 = vsel %vm9555_vm14, %v7529_v30, %v6055_v23  ;;  %v5354_v0 = vshrl.u32 %v10487_v4, 16  ;;  %v12046_v31 = vcombine.low %v10319_v26, %v10323_v32  ;;  %v5334_v18 = vrot.slane %v5333_v15, 4 }
 0x25f   : > { %v10737_v11 = vpop.f32.mrf.mxu1  ;;  %v6057_v12 = vrot.slane %v6055_v23, 4  ;;  %v5343_v53 = vrot.slane %v5341_v38, 4  ;;  %v5346_v2 = vrot.slane %v5344_v8, 5  ;;  %v12048_v42 = vcombine.low %v10331_v36, %v10335_v16  ;;  %v5193_v23 = vld [vmem:[#allocation2 + $0x90] sm:$0xf] }
 0x260   : > { %12047 = vst [vmem:[#allocation41_spill] sm:$0xff] %v10737_v11  ;;  %v5315_v30 = vsel %vm9348_vm11, %v5310_v52, %v5314_v7  ;;  %v6065_v4 = vrot.slane %v10723_v50, 5  ;;  %v5365_v41 = vshrl.u32 %v5190_v55, 16  ;;  %v5368_v9 = vshll.u32 %v5190_v55, 16  ;;  %v12063_v11 = vld [vmem:[#allocation16_spill] sm:$0xff] }
 0x261   : > { %v12049_v26 = vcombine.low %v10473_v62, %v10452_v21  ;;  %v5329_v32 = vsel %vm9348_vm11, %v5324_v57, %v10669_v19  ;;  %v5339_v36 = vsel %vm9348_vm11, %v5334_v18, %v5338_v22  ;;  %v10755_v16 = vsel %vm9555_vm14, %v6057_v12, %v6058_v51  ;;  %v12053_v51 = vld [vmem:[#allocation22_spill] sm:$0xff] }
 0x262   : > { %8337 = vmatmul.mubr.bf16.gmra.mxu1 %v12046_v31  ;;  %v6064_v52 = vrot.slane %v6062_v44, 4  ;;  %v12050_v15 = vcombine.low %v10491_v59, %v10484_v54  ;;  %v10762_v21 = vrot.slane %v5350_v35, 5  ;;  %v5356_v62 = vrot.slane %v5354_v0, 4  ;;  %v10777_v0 = vld [vmem:[#allocation2 + $0xd0] sm:$0xe] }
 0x263   : > { %8340 = vmatprep.mubr.bf16.mxu1 %v12048_v42  ;;  %8461 = vmatmul.mubr.bf16.vlgmr.msra.gmra.mxu0 %v12049_v26  ;;  %v5374_v19 = vshll.u32 %v10505_v40, 16  ;;  %v5378_v8 = vshrl.u32 %v10505_v40, 16  ;;  %v10768_v55 = vcombine.low %v5305_v29, %v5315_v30  ;;  %v7530_v57 = vrot.slane %v5936_v10, 9  ;;  %v12057_v26 = vld [vmem:[#allocation24_spill] sm:$0xff] }
 0x264   : > { %8464 = vmatprep.mubr.bf16.mxu0 %v12050_v15  ;;  %v10760_v38 = vpop.f32.mrf.mxu0  ;;  %v5347_v22 = vor.u32 %v5346_v2, %v5343_v53  ;;  %v5360_v31 = vshll.u32 %v12053_v51, 16  ;;  %v10775_v54 = vsel %vm9555_vm14, %v6064_v52, %v6065_v4  ;;  %v5367_v59 = vrot.slane %v5365_v41, 4  ;;  %v10789_v2 = vld [vmem:[#allocation2 + $0xd4] sm:$0xf]  ;;  %v5196_v52 = vld [vmem:[#allocation2 + $0xa0] sm:$0xf] }
 0x265   : > { %12051 = vst [vmem:[#allocation42_spill] sm:$0xff] %v10760_v38  ;;  %v10766_v7 = vpop.f32.mrf.mxu1  ;;  %v5370_v35 = vrot.slane %v5368_v9, 5  ;;  %v5389_v12 = vshrl.u32 %v5193_v23, 16  ;;  %v10781_v42 = vcombine.low %v5329_v32, %v5339_v36  ;;  %v10787_v10 = vsel %vm9555_vm14, %v7530_v57, %v6062_v44  ;;  %v10797_v36 = vld [vmem:[#allocation2 + $0xd8] sm:$0x1]  ;;  %v12058_v15 = vld [vmem:[#allocation13_spill] sm:$0xff] }
 0x266   : > { %12052 = vst [vmem:[#allocation43_spill] sm:$0xff] %v10766_v7  ;;  %v10771_v18 = vpop.f32.mrf.mxu0  ;;  %v5392_v29 = vshll.u32 %v5193_v23, 16  ;;  %v5357_v41 = vor.u32 %v5356_v62, %v10762_v21  ;;  %v10794_v9 = vrot.slane %v5374_v19, 5  ;;  %v5380_v4 = vrot.slane %v5378_v8, 4  ;;  %v12059_v51 = vld [vmem:[#allocation14_spill] sm:$0xff] }
 0x267   : > { %12054 = vst [vmem:[#allocation22_spill] sm:$0xff] %v10771_v18  ;;  %v10779_v40 = vpop.f32.mrf.mxu1  ;;  %v5384_v32 = vshll.u32 %v12057_v26, 16  ;;  %v12060_v53 = vcombine.low %v12058_v15, %v12059_v51  ;;  %v10806_v57 = vrot.slane %v5347_v22, 4  ;;  %v10808_v62 = vrot.slane %v5360_v31, 5  ;;  %v10811_v8 = vld [vmem:[#allocation2 + $0xe4] sm:$0xf] }
 0x268   : > { %12055 = vst [vmem:[#allocation44_spill] sm:$0xff] %v10779_v40  ;;  %v10791_v30 = vpop.f32.mrf.mxu0  ;;  %v7531_v19 = vrot.slane %v10777_v0, 9  ;;  %v12062_v26 = vld [vmem:[#allocation15_spill] sm:$0xff]  ;;  %v5371_v7 = vor.u32 %v5370_v35, %v5367_v59  ;;  %v5391_v51 = vrot.slane %v5389_v12, 4  ;;  %v12065_v22 = vcombine.low %v10512_v49, %v10518_v63  ;;  %v10821_v31 = vld [vmem:[#allocation2 + $0xe8] sm:$0x1] }
 0x269   : > { %12056 = vst [vmem:[#allocation45_spill] sm:$0xff] %v10791_v30  ;;  %v10802_v44 = vpop.f32.mrf.mxu1  ;;  %v12064_v40 = vcombine.low %v12062_v26, %v12063_v11  ;;  %v5938_v15 = vld [vmem:[#allocation2 + $0xe0] sm:$0xe]  ;;  %v5394_v0 = vrot.slane %v5392_v29, 5  ;;  %v5402_v23 = vshrl.u32 %v10594_v56, 16  ;;  %v5413_v30 = vshrl.u32 %v5196_v52, 16 }
 0x26a   : > { %8341 = vmatmul.mubr.bf16.gmra.mxu1 %v12060_v53  ;;  %12061 = vst [vmem:[#allocation24_spill] sm:$0xff] %v10802_v44  ;;  %v6069_v53 = vrot.slane %v10789_v2, 5  ;;  %v5398_v44 = vshll.u32 %v10594_v56, 16  ;;  %v5416_v18 = vshll.u32 %v5196_v52, 16  ;;  %v12066_v11 = vcombine.low %v10522_v60, %v10533_v34  ;;  %v10827_v59 = vpop.f32.mrf.mxu0 }
 0x26b   : > { %8344 = vmatprep.mubr.bf16.mxu1 %v12064_v40  ;;  %8465 = vmatmul.mubr.bf16.gmra.mxu0 %v12065_v22  ;;  %12067 = vst [vmem:[#allocation13_spill] sm:$0xff] %v10827_v59  ;;  %v5358_v35 = vrot.slane %v5357_v41, 4  ;;  %v5381_v12 = vor.u32 %v5380_v4, %v10794_v9  ;;  %v5386_v40 = vrot.slane %v5384_v32, 5  ;;  %v6076_v49 = vrot.slane %v10811_v8, 5  ;;  %v10831_v63 = vpop.f32.mrf.mxu1 }
 0x26c   : > { %8468 = vmatprep.mubr.bf16.mxu0 %v12066_v11  ;;  %12068 = vst [vmem:[#allocation14_spill] sm:$0xff] %v10831_v63  ;;  %v6072_v29 = vrot.slane %v10797_v36, 5  ;;  %v7532_v26 = vrot.slane %v5938_v15, 9  ;;  %v5422_v56 = vshll.u32 %v10627_v20, 16  ;;  %v5426_v52 = vshrl.u32 %v10627_v20, 16 }
 0x26d   : > { %v5372_v22 = vrot.slane %v5371_v7, 4  ;;  %v6071_v60 = vrot.slane %v6069_v53, 4  ;;  %v6079_v34 = vrot.slane %v10821_v31, 5  ;;  %v10837_v11 = vrot.slane %v5398_v44, 5  ;;  %v12070_v44 = vld [vmem:[#allocation18_spill] sm:$0xff] }
 0x26e   : > { %v5395_v41 = vor.u32 %v5394_v0, %v5391_v51  ;;  %v5404_v4 = vrot.slane %v5402_v23, 4  ;;  %v5415_v32 = vrot.slane %v5413_v30, 4  ;;  %v5418_v59 = vrot.slane %v5416_v18, 5  ;;  %v12071_v51 = vld [vmem:[#allocation19_spill] sm:$0xff] }
 0x26f   : > { %v5353_v15 = vsel %vm9348_vm11, %v10806_v57, %v10762_v21  ;;  %v5363_v20 = vsel %vm9348_vm11, %v5358_v35, %v10808_v62  ;;  %v5382_v7 = vrot.slane %v5381_v12, 4  ;;  %v6078_v63 = vrot.slane %v6076_v49, 4  ;;  %v10860_v57 = vld [vmem:[#allocation2 + $0xf4] sm:$0xf] }
 0x270   : > { %v10839_v38 = vpop.f32.mrf.mxu0  ;;  %v12072_v23 = vcombine.low %v12070_v44, %v12071_v51  ;;  %v10855_v18 = vsel %vm9555_vm14, %v6071_v60, %v6072_v29  ;;  %v5408_v30 = vshll.u32 %v10618_v6, 16  ;;  %v10858_v0 = vrot.slane %v5422_v56, 5  ;;  %v5939_v60 = vld [vmem:[#allocation2 + $0xf0] sm:$0xe] }
 0x271   : > { %v10848_v25 = vpop.f32.mrf.mxu1  ;;  %v5428_v21 = vrot.slane %v5426_v52, 4  ;;  %v5377_v35 = vsel %vm9348_vm11, %v5372_v22, %v10794_v9  ;;  %v5387_v12 = vsel %vm9348_vm11, %v5382_v7, %v5386_v40  ;;  %v10872_v29 = vsel %vm9555_vm14, %v6078_v63, %v6079_v34  ;;  %v5199_v63 = vld [vmem:[#allocation2 + $0xb0] sm:$0xf]  ;;  %v12075_v34 = vld [vmem:[#allocation28_spill] sm:$0xff] }
 0x272   : > { %12069 = vst [vmem:[#allocation15_spill] sm:$0xff] %v10848_v25  ;;  %8345 = vmatmul.mubr.bf16.gmra.mxu1 %v12072_v23  ;;  %v10863_v62 = vpop.f32.mrf.mxu0  ;;  %v5432_v6 = vshll.u32 %v10633_v24, 16  ;;  %v12073_v56 = vcombine.low %v10591_v48, %v10561_v14  ;;  %v10882_v52 = vsel %vm9555_vm14, %v7531_v19, %v6069_v53  ;;  %v10884_v9 = vrot.slane %v5395_v41, 4  ;;  %v10900_v53 = vld [vmem:[#allocation2 + $0xf8] sm:$0x1] }
 0x273   : > { %8412 = vmatprep.mubr.bf16.mxu1 %v10596_v5  ;;  %v10878_v5 = vpop.f32.mrf.mxu1  ;;  %v5405_v40 = vor.u32 %v5404_v4, %v10837_v11  ;;  %v5419_v22 = vor.u32 %v5418_v59, %v5415_v32  ;;  %v12076_v24 = vcombine.low %v10604_v47, %v12075_v34  ;;  %v10892_v14 = vcombine.low %v5353_v15, %v5363_v20  ;;  %v5202_v20 = vld [vmem:[#allocation2 + $0xc0] sm:$0xf]  ;;  %v12142_v58 = vld [vmem:[#allocation14_spill] sm:$0xff] }
 0x274   : > { %8469 = vmatmul.mubr.bf16.gmra.mxu0 %v12073_v56  ;;  %12074 = vst [vmem:[#allocation16_spill] sm:$0xff] %v10878_v5  ;;  %v10890_v7 = vpop.f32.mrf.mxu0  ;;  %v10898_v19 = vsel %vm9555_vm14, %v7532_v26, %v6076_v49  ;;  %12077 = vst [vmem:[#allocation18_spill] sm:$0xff] %v10900_v53  ;;  %v6083_v59 = vrot.slane %v10860_v57, 5  ;;  %v10905_v4 = vcombine.low %v5377_v35, %v5387_v12  ;;  %v5410_v32 = vrot.slane %v5408_v30, 5  ;;  %v10912_v26 = vld [vmem:[#allocation2 + $0x100] sm:$0xe] }
 0x275   : > { %8472 = vmatprep.mubr.bf16.mxu0 %v12076_v24  ;;  %v10903_v41 = vpop.f32.mrf.mxu1  ;;  %v5429_v15 = vor.u32 %v5428_v21, %v10858_v0  ;;  %v5434_v51 = vrot.slane %v5432_v6, 5  ;;  %v7533_v49 = vrot.slane %v5939_v60, 9  ;;  %v5437_v23 = vshrl.u32 %v5199_v63, 16 }
 0x276   : > { %12078 = vst [vmem:[#allocation19_spill] sm:$0xff] %v10903_v41  ;;  %v10910_v44 = vpop.f32.mrf.mxu0  ;;  %v5440_v56 = vshll.u32 %v5199_v63, 16  ;;  %v5401_v35 = vsel %vm9348_vm11, %v10884_v9, %v10837_v11  ;;  %v5406_v12 = vrot.slane %v5405_v40, 4  ;;  %v5420_v30 = vrot.slane %v5419_v22, 4  ;;  %v5205_v22 = vld [vmem:[#allocation2 + $0xd0] sm:$0xf] }
 0x277   : > { %v10914_v34 = vpop.f32.mrf.mxu1  ;;  %v6086_v21 = vrot.slane %v10900_v53, 5  ;;  %v10925_v6 = vsel %vm9555_vm14, %v7533_v49, %v6083_v59  ;;  %v6085_v60 = vrot.slane %v6083_v59, 4  ;;  %v5461_v47 = vshrl.u32 %v5202_v20, 16  ;;  %v10936_v49 = vld [vmem:[#allocation2 + $0x108] sm:$0x1] }
 0x278   : > { %12079 = vst [vmem:[#allocation28_spill] sm:$0xff] %v10914_v34  ;;  %v10921_v24 = vpop.f32.mrf.mxu0  ;;  %v5464_v63 = vshll.u32 %v5202_v20, 16  ;;  %v5430_v34 = vrot.slane %v5429_v15, 4  ;;  %v5446_v9 = vshll.u32 %v10671_v39, 16  ;;  %v5450_v40 = vshrl.u32 %v10671_v39, 16  ;;  %12082 = vst [vmem:[#allocation48_spill] sm:$0xff] %v10936_v49 }
 0x279   : > { %12080 = vst [vmem:[#allocation46_spill] sm:$0xff] %v10921_v24  ;;  %v10927_v48 = vpop.f32.mrf.mxu1  ;;  %v5439_v59 = vrot.slane %v5437_v23, 4  ;;  %v5442_v20 = vrot.slane %v5440_v56, 5  ;;  %v5470_v5 = vshll.u32 %v10707_v27, 16  ;;  %v12083_v15 = vcombine.low %v10680_v28, %v10658_v3 }
 0x27a   : > { %8413 = vmatmul.mubr.bf16.vlgmr.msra.gmra.mxu1 %v10685_v1  ;;  %v10934_v41 = vpop.f32.mrf.mxu0  ;;  %v5474_v1 = vshrl.u32 %v10707_v27, 16  ;;  %v5411_v39 = vsel %vm9348_vm11, %v5406_v12, %v5410_v32  ;;  %v5435_v23 = vsel %vm9348_vm11, %v5430_v34, %v5434_v51  ;;  %v10954_v56 = vsel %vm9555_vm14, %v6085_v60, %v6086_v21  ;;  %v10956_v27 = vld [vmem:[#allocation2 + $0x104] sm:$0xf] }
 0x27b   : > { %8416 = vmatprep.mubr.bf16.mxu1 %v10699_v45  ;;  %12081 = vst [vmem:[#allocation47_spill] sm:$0xff] %v10934_v41  ;;  %v10943_v11 = vpop.f32.mrf.mxu1  ;;  %v5425_v45 = vsel %vm9348_vm11, %v5420_v30, %v10858_v0  ;;  %v12084_v3 = vcombine.low %v10711_v61, %v10689_v37  ;;  %v5463_v32 = vrot.slane %v5461_v47, 4  ;;  %v5466_v12 = vrot.slane %v5464_v63, 5 }
 0x27c   : > { %8473 = vmatmul.mubr.bf16.gmra.mxu0 %v12083_v15  ;;  %v10961_v28 = vpop.f32.mrf.mxu0  ;;  %v10963_v15 = vld [vmem:[#allocation2 + $0x114] sm:$0xf]  ;;  %v5485_v0 = vshrl.u32 %v5205_v22, 16  ;;  %v5488_v30 = vshll.u32 %v5205_v22, 16  ;;  %v6090_v51 = vrot.slane %v10956_v27, 5  ;;  %v6093_v34 = vrot.slane %v10936_v49, 5 }
 0x27d   : > { %8476 = vmatprep.mubr.bf16.mxu0 %v12084_v3  ;;  %12085 = vst [vmem:[#allocation49_spill] sm:$0xff] %v10961_v28  ;;  %12086 = vst [vmem:[#allocation50_spill] sm:$0xff] %v10963_v15  ;;  %v10965_v25 = vpop.f32.mrf.mxu1  ;;  %v10969_v21 = vrot.slane %v5446_v9, 5  ;;  %v5452_v60 = vrot.slane %v5450_v40, 4  ;;  %v10973_v37 = vcombine.low %v5401_v35, %v5411_v39  ;;  %v5443_v61 = vor.u32 %v5442_v20, %v5439_v59  ;;  %v10984_v9 = vld [vmem:[#allocation2 + $0x118] sm:$0x1] }
 0x27e   : > { %v10971_v53 = vpop.f32.mrf.mxu0  ;;  %v10975_v47 = vrot.slane %v5470_v5, 5  ;;  %v5476_v63 = vrot.slane %v5474_v1, 4  ;;  %v10979_v22 = vcombine.low %v5425_v45, %v5435_v23  ;;  %v5456_v49 = vshll.u32 %v10704_v17, 16  ;;  %12088 = vst [vmem:[#allocation52_spill] sm:$0xff] %v10984_v9  ;;  %v5941_v20 = vld [vmem:[#allocation2 + $0x110] sm:$0xe] }
 0x27f   : > { %12087 = vst [vmem:[#allocation51_spill] sm:$0xff] %v10971_v53  ;;  %v10977_v3 = vpop.f32.mrf.mxu1  ;;  %v6097_v40 = vrot.slane %v10963_v15, 5  ;;  %v5208_v53 = vld [vmem:[#allocation2 + $0xe0] sm:$0xf]  ;;  %v5467_v59 = vor.u32 %v5466_v12, %v5463_v32  ;;  %v5480_v5 = vshll.u32 %v10723_v50, 16  ;;  %v5487_v1 = vrot.slane %v5485_v0, 4 }
 0x280   : > { %v10987_v35 = vpop.f32.mrf.mxu0  ;;  %v5490_v39 = vrot.slane %v5488_v30, 5  ;;  %v6092_v23 = vrot.slane %v6090_v51, 4  ;;  %v5453_v17 = vor.u32 %v5452_v60, %v10969_v21  ;;  %v5494_v28 = vshll.u32 %v10789_v2, 16 }
 0x281   : > { %12089 = vst [vmem:[#allocation53_spill] sm:$0xff] %v10987_v35  ;;  %v10990_v45 = vpop.f32.mrf.mxu1  ;;  %v5498_v15 = vshrl.u32 %v10789_v2, 16  ;;  %v5444_v32 = vrot.slane %v5443_v61, 4  ;;  %v5477_v50 = vor.u32 %v5476_v63, %v10975_v47  ;;  %v5509_v12 = vshrl.u32 %v5208_v53, 16 }
 0x282   : > { %8417 = vmatmul.mubr.bf16.gmra.mxu1 %v10768_v55  ;;  %v10997_v35 = vpop.f32.mrf.mxu0  ;;  %v5512_v0 = vshll.u32 %v5208_v53, 16  ;;  %v12091_v30 = vcombine.low %v10730_v33, %v10755_v16  ;;  %v5458_v60 = vrot.slane %v5456_v49, 5  ;;  %v7535_v41 = vrot.slane %v5941_v20, 9 }
 0x283   : > { %8420 = vmatprep.mubr.bf16.mxu1 %v10781_v42  ;;  %12090 = vst [vmem:[#allocation54_spill] sm:$0xff] %v10997_v35  ;;  %v11003_v55 = vpop.f32.mrf.mxu1  ;;  %v6099_v24 = vrot.slane %v6097_v40, 4  ;;  %v6100_v2 = vrot.slane %v10984_v9, 5  ;;  %v12092_v42 = vcombine.low %v10787_v10, %v10775_v54  ;;  %v12093_v63 = vrot.slane %v10912_v26, 9 }
 0x284   : > { %8477 = vmatmul.mubr.bf16.gmra.mxu0 %v12091_v30  ;;  %v11009_v61 = vpop.f32.mrf.mxu0  ;;  %v5468_v33 = vrot.slane %v5467_v59, 4  ;;  %v5482_v16 = vrot.slane %v5480_v5, 5  ;;  %v5491_v30 = vor.u32 %v5490_v39, %v5487_v1  ;;  %v11019_v20 = vsel %vm9555_vm14, %v6092_v23, %v6093_v34  ;;  %v11028_v5 = vld [vmem:[#allocation2 + $0xf0] sm:$0xf] }
 0x285   : > { %8480 = vmatprep.mubr.bf16.mxu0 %v12092_v42  ;;  %v11015_v53 = vsel %vm9555_vm14, %v12093_v63, %v6090_v51  ;;  %v8131_v49 = vpop.f32.mrf.mxu1  ;;  %v5454_v9 = vrot.slane %v5453_v17, 4  ;;  %v11021_v35 = vrot.slane %v5494_v28, 5  ;;  %v5500_v54 = vrot.slane %v5498_v15, 4 }
 0x286   : > { %v11023_v10 = vpop.f32.mrf.mxu0  ;;  %v5449_v26 = vsel %vm9348_vm11, %v5444_v32, %v10969_v21  ;;  %v5478_v51 = vrot.slane %v5477_v50, 4  ;;  %v5511_v42 = vrot.slane %v5509_v12, 4  ;;  %v5514_v59 = vrot.slane %v5512_v0, 5 }
 0x287   : > { %v2553_v1 = vpop.f32.mrf.mxu1  ;;  %v5459_v34 = vsel %vm9348_vm11, %v5454_v9, %v5458_v60  ;;  %v11034_v28 = vsel %vm9555_vm14, %v7535_v41, %v6097_v40  ;;  %v11038_v15 = vsel %vm9555_vm14, %v6099_v24, %v6100_v2  ;;  %v5504_v39 = vshll.u32 %v10797_v36, 16  ;;  %v12095_v2 = vld [vmem:[#allocation9_spill] sm:$0xff] }
 0x288   : > { %v11041_v21 = vpop.f32.mrf.mxu0  ;;  %v5473_v23 = vsel %vm9348_vm11, %v5468_v33, %v10975_v47  ;;  %v5483_v17 = vsel %vm9348_vm11, %v5478_v51, %v5482_v16  ;;  %v11048_v9 = vrot.slane %v5491_v30, 4  ;;  %v5518_v41 = vshll.u32 %v10811_v8, 16  ;;  %v12094_v47 = vld [vmem:[#allocation7_spill] sm:$0xff]  ;;  %v12096_v33 = vld [vmem:[#allocation8_spill] sm:$0xff] }
 0x289   : > { %v8134_v40 = vpop.f32.mrf.mxu1  ;;  %v5501_v36 = vor.u32 %v5500_v54, %v11021_v35  ;;  %v5522_v24 = vshrl.u32 %v10811_v8, 16  ;;  %v5533_v32 = vshrl.u32 %v11028_v5, 16  ;;  %v2543_v50 = vadd.f32 %v10927_v48, %v12094_v47  ;;  %v12098_v54 = vld [vmem:[#allocation10_spill] sm:$0xff] }
 0x28a   : > { %8421 = vmatmul.mubr.bf16.gmra.mxu1 %v10892_v14  ;;  %v11060_v12 = vpop.f32.mrf.mxu0  ;;  %v11062_v0 = vcombine.low %v5449_v26, %v5459_v34  ;;  %v5515_v60 = vor.u32 %v5514_v59, %v5511_v42  ;;  %v2535_v63 = vadd.f32 %v10943_v11, %v12095_v2  ;;  %v2546_v8 = vadd.f32 %v10965_v25, %v12096_v33  ;;  %v12100_v42 = vld [vmem:[#allocation11_spill] sm:$0xff]  ;;  %v12104_v2 = vld [vmem:[#allocation20_spill] sm:$0xff]  ;;  %v12107_v25 = vld [vmem:[#allocation25_spill] sm:$0xff] }
 0x28b   : > { %8424 = vmatprep.mubr.bf16.mxu1 %v10905_v4  ;;  %v12097_v16 = vcombine.low %v10882_v52, %v10855_v18  ;;  %v2566_v48 = vpop.f32.mrf.mxu1  ;;  %v11073_v4 = vcombine.low %v5473_v23, %v5483_v17  ;;  %v11075_v30 = vrot.slane %v5504_v39, 5  ;;  %v2538_v26 = vadd.f32 %v10977_v3, %v12098_v54  ;;  %v8761_v23 = vld [vmem:[%s11936_s7 + $0x38] sm:$0xff]   ;;  %v12101_v17 = vld [vmem:[#allocation12_spill] sm:$0xff] }
 0x28c   : > { %v12099_v51 = vcombine.low %v10898_v19, %v10872_v29  ;;  %v11082_v11 = vpop.f32.mrf.mxu0  ;;  %v11088_v18 = vrot.slane %v5518_v41, 5  ;;  %v5528_v52 = vshll.u32 %v10821_v31, 16  ;;  %v2559_v59 = vadd.f32 %v10990_v45, %v12100_v42  ;;  %v5214_v19 = vld [vmem:[#allocation2 + $0x100] sm:$0xf]  ;;  %8492 = vmatprep.subr.bf16.mxu1 %v8761_v23 }
 0x28d   : > { %8481 = vmatmul.mubr.bf16.gmra.mxu0 %v12097_v16  ;;  %v8135_v34 = vpop.f32.mrf.mxu1  ;;  %v11093_v3 = vrot.slane %v5501_v36, 4  ;;  %v11095_v39 = vrot.slane %v5522_v24, 4  ;;  %v11097_v29 = vrot.slane %v5533_v32, 4  ;;  %v2551_v41 = vadd.f32 %v11003_v55, %v12101_v17  ;;  %v12103_v24 = vld [vmem:[#allocation17_spill] sm:$0xff]  ;;  %v12106_v55 = vld [vmem:[#allocation23_spill] sm:$0xff]  ;;  %8493 = vmatpush3.bf16.msra.mxu1 %v8761_v23 }
 0x28e   : > { %8484 = vmatprep.mubr.bf16.mxu0 %v12099_v51  ;;  %v11104_v47 = vpop.f32.mrf.mxu0  ;;  %v11106_v31 = vrot.slane %v5515_v60, 4  ;;  %v5536_v45 = vshll.u32 %v11028_v5, 16  ;;  %v11110_v36 = vadd.f32 %v10648_v43, %v2543_v50  ;;  %v2562_v32 = vadd.f32 %v8131_v49, %v12103_v24  ;;  %v12105_v16 = vld [vmem:[#allocation21_spill] sm:$0xff]  ;;  %v12108_v43 = vld [vmem:[#allocation26_spill] sm:$0xff] }
 0x28f   : > { %12102 = vst [vmem:[#allocation7_spill] sm:$0xff] %v11104_v47  ;;  %v2554_v33 = vadd.f32 %v2553_v1, %v12104_v2  ;;  %v2575_v54 = vadd.f32 %v8134_v40, %v12105_v16  ;;  %v2569_v51 = vpop.f32.mrf.mxu1  ;;  %v5542_v42 = vshll.u32 %v10860_v57, 16  ;;  %v2567_v17 = vadd.f32 %v2566_v48, %v12106_v55  ;;  %v12109_v40 = vld [vmem:[#allocation38_spill] sm:$0xff]  ;;  %v12110_v2 = vld [vmem:[#allocation40_spill] sm:$0xff]  ;;  %v12115_v55 = vld [vmem:[#allocation45_spill] sm:$0xff] }
 0x290   : > { %v2578_v60 = vadd.f32 %v8135_v34, %v12107_v25  ;;  %v11118_v14 = vpop.f32.mrf.mxu0  ;;  %v5557_v5 = vshrl.u32 %v5214_v19, 16  ;;  %v5560_v46 = vshll.u32 %v5214_v19, 16  ;;  %v2570_v50 = vadd.f32 %v2569_v51, %v12108_v43  ;;  %v12111_v25 = vld [vmem:[#allocation30_spill] sm:$0xff] }
 0x291   : > { %v8138_v49 = vpop.f32.mrf.mxu1  ;;  %v11123_v1 = vadd.f32 %v10665_v13, %v2535_v63  ;;  %v11126_v24 = vadd.f32 %v12109_v40, %v2546_v8  ;;  %v11129_v48 = vadd.f32 %v12110_v2, %v2538_v26  ;;  %v5566_v23 = vshll.u32 %v10956_v27, 16  ;;  %v12112_v16 = vld [vmem:[#allocation42_spill] sm:$0xff] }
 0x292   : > { %8425 = vmatmul.mubr.bf16.gmra.mxu1 %v10973_v37  ;;  %v2591_v34 = vadd.f32 %v8138_v49, %v12111_v25  ;;  %v11133_v19 = vpop.f32.mrf.mxu0  ;;  %v11137_v51 = vadd.f32 %v12112_v16, %v2559_v59  ;;  %v12113_v37 = vld [vmem:[#allocation22_spill] sm:$0xff]  ;;  %v12114_v63 = vcombine.low %v10925_v6, %v10954_v56  ;;  %v5570_v26 = vshrl.u32 %v10956_v27, 16  ;;  %v12117_v59 = vld [vmem:[#allocation31_spill] sm:$0xff]  ;;  %v12120_v16 = vld [vmem:[#allocation33_spill] sm:$0xff] }
 0x293   : > { %8428 = vmatprep.mubr.bf16.mxu1 %v10979_v22  ;;  %v11140_v13 = vadd.f32 %v12113_v37, %v2551_v41  ;;  %v2582_v8 = vpop.f32.mrf.mxu1  ;;  %v11147_v43 = vadd.f32 %v12115_v55, %v2562_v32  ;;  %v12116_v22 = vld [vmem:[#allocation13_spill] sm:$0xff]  ;;  %v11153_v40 = vadd.f32 %v10839_v38, %v2575_v54  ;;  %v12118_v41 = vcombine.low %v11015_v53, %v11019_v20  ;;  %v12119_v53 = vld [vmem:[#allocation46_spill] sm:$0xff] }
 0x294   : > { %v11150_v49 = vadd.f32 %v12116_v22, %v2554_v33  ;;  %v2583_v2 = vadd.f32 %v2582_v8, %v12117_v59  ;;  %v11159_v6 = vpop.f32.mrf.mxu0  ;;  %v5525_v56 = vor.u32 %v11095_v39, %v11088_v18  ;;  %v11164_v27 = vadd.f32 %v10863_v62, %v2567_v17  ;;  %v8762_v39 = vld [vmem:[%s11936_s7 + $0x30] sm:$0xff]   ;;  %v12122_v8 = vld [vmem:[#allocation34_spill] sm:$0xff] }
 0x295   : > { %8485 = vmatmul.mubr.bf16.gmra.mxu0 %v12114_v63  ;;  %v11167_v32 = vadd.f32 %v10890_v7, %v2578_v60  ;;  %v8139_v33 = vpop.f32.mrf.mxu1  ;;  %v5538_v38 = vrot.slane %v5536_v45, 5  ;;  %v5546_v54 = vshrl.u32 %v10860_v57, 16  ;;  %v11171_v25 = vadd.f32 %v10910_v44, %v2570_v50  ;;  %v12121_v45 = vld [vmem:[#allocation47_spill] sm:$0xff]  ;;  %8494 = vmatprep.subr.bf16.mxu1 %v8762_v39 }
 0x296   : > { %8488 = vmatprep.mubr.bf16.mxu0 %v12118_v41  ;;  %v11174_v20 = vadd.f32 %v12119_v53, %v2591_v34  ;;  %v2594_v62 = vadd.f32 %v8139_v33, %v12120_v16  ;;  %v11180_v17 = vpop.f32.mrf.mxu0  ;;  %v5507_v7 = vsel %vm9348_vm11, %v11093_v3, %v11075_v30  ;;  %v5530_v57 = vrot.slane %v5528_v52, 5  ;;  %v12123_v41 = vld [vmem:[#allocation18_spill] sm:$0xff]  ;;  %v5217_v53 = vld [vmem:[#allocation2 + $0x110] sm:$0xf]  ;;  %8495 = vmatpush3.bf16.msra.mxu1 %v8762_v39 }
 0x297   : > { %v11187_v44 = vadd.f32 %v12121_v45, %v2583_v2  ;;  %v2585_v60 = vpop.f32.mrf.mxu1  ;;  %v5559_v50 = vrot.slane %v5557_v5, 4  ;;  %v5562_v34 = vrot.slane %v5560_v46, 5  ;;  %v11189_v37 = vrot.slane %v5566_v23, 5  ;;  %v12124_v30 = vld [vmem:[#allocation49_spill] sm:$0xff]  ;;  %v12125_v2 = vld [vmem:[#allocation27_spill] sm:$0xff] }
 0x298   : > { %v5572_v63 = vrot.slane %v5570_v26, 4  ;;  %v2586_v55 = vadd.f32 %v2585_v60, %v12122_v8  ;;  %v11192_v22 = vpop.f32.mrf.mxu0  ;;  %v5526_v59 = vrot.slane %v5525_v56, 4  ;;  %v5552_v33 = vshll.u32 %v12123_v41, 16  ;;  %v12127_v45 = vld [vmem:[#allocation51_spill] sm:$0xff] }
 0x299   : > { %v11196_v52 = vadd.f32 %v12124_v30, %v2594_v62  ;;  %v8142_v3 = vpop.f32.mrf.mxu1  ;;  %v5521_v46 = vsel %vm9348_vm11, %v11106_v31, %v11088_v18  ;;  %v5539_v5 = vor.u32 %v5538_v38, %v11097_v29  ;;  %v11204_v23 = vrot.slane %v5542_v42, 5 }
 0x29a   : > { %8429 = vmatmul.mubr.bf16.gmra.mxu1 %v11062_v0  ;;  %v5548_v26 = vrot.slane %v5546_v54, 4  ;;  %v2607_v56 = vadd.f32 %v8142_v3, %v12125_v2  ;;  %v11208_v16 = vpop.f32.mrf.mxu0  ;;  %v5531_v39 = vsel %vm9348_vm11, %v5526_v59, %v5530_v57  ;;  %v12126_v0 = vld [vmem:[#allocation48_spill] sm:$0xff]  ;;  %v11214_v60 = vadd.f32 %v12127_v45, %v2586_v55  ;;  %v12129_v54 = vld [vmem:[#allocation29_spill] sm:$0xff]  ;;  %v12130_v57 = vld [vmem:[#allocation50_spill] sm:$0xff] }
 0x29b   : > { %8432 = vmatprep.mubr.bf16.mxu1 %v11073_v4  ;;  %v5576_v62 = vshll.u32 %v12126_v0, 16  ;;  %v12128_v18 = vcombine.low %v11034_v28, %v11038_v15  ;;  %v2598_v29 = vpop.f32.mrf.mxu1  ;;  %v5563_v31 = vor.u32 %v5562_v34, %v5559_v50  ;;  %v5573_v42 = vor.u32 %v5572_v63, %v11189_v37  ;;  %v12131_v55 = vld [vmem:[#allocation53_spill] sm:$0xff]  ;;  %v8763_v63 = vld [vmem:[%s11936_s7 + $0x28] sm:$0xff]  }
 0x29c   : > { %v5581_v38 = vshrl.u32 %v5217_v53, 16  ;;  %v5584_v4 = vshll.u32 %v5217_v53, 16  ;;  %v2599_v8 = vadd.f32 %v2598_v29, %v12129_v54  ;;  %v11221_v41 = vpop.f32.mrf.mxu0  ;;  %v5590_v59 = vshll.u32 %v12130_v57, 16  ;;  %v12133_v53 = vld [vmem:[#allocation32_spill] sm:$0xff]  ;;  %v12134_v29 = vld [vmem:[#allocation54_spill] sm:$0xff]  ;;  %8496 = vmatprep.subr.bf16.mxu1 %v8763_v63 }
 0x29d   : > { %8489 = vmatmul.mubr.bf16.gmra.mxu0 %v12128_v18  ;;  %v5594_v30 = vshrl.u32 %v12130_v57, 16  ;;  %v11226_v3 = vadd.f32 %v12131_v55, %v2607_v56  ;;  %v8143_v2 = vpop.f32.mrf.mxu1  ;;  %v12132_v28 = vsel %vm9348_vm11, %v11048_v9, %v11021_v35  ;;  %v5549_v50 = vor.u32 %v5548_v26, %v11204_v23  ;;  %8497 = vmatpush3.bf16.msra.mxu1 %v8763_v63 }
 0x29e   : > { %v7507_v15 = vcombine.low %v12132_v28, %v5507_v7  ;;  %v5554_v34 = vrot.slane %v5552_v33, 5  ;;  %v2610_v0 = vadd.f32 %v8143_v2, %v12133_v53  ;;  %v11238_v45 = vpop.f32.mrf.mxu0  ;;  %v7508_v56 = vcombine.low %v5521_v46, %v5531_v39  ;;  %v12135_v39 = vld [vmem:[#allocation36_spill] sm:$0xff] }
 0x29f   : > { %v5540_v18 = vrot.slane %v5539_v5, 4  ;;  %v11241_v54 = vadd.f32 %v12134_v29, %v2599_v8  ;;  %v11243_v57 = vpop.f32.mrf.mxu1  ;;  %v5564_v35 = vrot.slane %v5563_v31, 4  ;;  %v5574_v9 = vrot.slane %v5573_v42, 4 }
 0x2a0   : > { %v5578_v7 = vrot.slane %v5576_v62, 5  ;;  %v5583_v26 = vrot.slane %v5581_v38, 4  ;;  %v11245_v33 = vpop.f32.mrf.mxu0  ;;  %v5586_v55 = vrot.slane %v5584_v4, 5  ;;  %v5592_v28 = vrot.slane %v5590_v59, 5  ;;  %v12136_v59 = vld [vmem:[#allocation52_spill] sm:$0xff] }
 0x2a1   : > { %v5596_v47 = vrot.slane %v5594_v30, 4  ;;  %v11248_v2 = vadd.f32 %v11009_v61, %v2610_v0  ;;  %v5550_v5 = vrot.slane %v5549_v50, 4  ;;  %v5545_v62 = vsel %vm9348_vm11, %v5540_v18, %v11204_v23 }
 0x2a2   : > { %v8146_v46 = vpop.f32.mrf.mxu1  ;;  %8433 = vmatmul.mubr.bf16.gmra.mxu1 %v7507_v15  ;;  %v11251_v31 = vpop.f32.mrf.mxu0  ;;  %v5569_v61 = vsel %vm9348_vm11, %v5564_v35, %v11189_v37  ;;  %v5579_v4 = vsel %vm9348_vm11, %v5574_v9, %v5578_v7  ;;  %v5600_v30 = vshll.u32 %v12136_v59, 16  ;;  %v12137_v15 = vld [vmem:[#allocation37_spill] sm:$0xff]  ;;  %v5587_v53 = vor.u32 %v5586_v55, %v5583_v26  ;;  %v12138_v37 = vld [vmem:[#allocation39_spill] sm:$0xff] }
 0x2a3   : > { %v2623_v8 = vadd.f32 %v8146_v46, %v12135_v39  ;;  %8436 = vmatprep.mubr.bf16.mxu1 %v7508_v56  ;;  %v5555_v38 = vsel %vm9348_vm11, %v5550_v5, %v5554_v34  ;;  %v5597_v0 = vor.u32 %v5596_v47, %v5592_v28  ;;  %v8764_v34 = vld [vmem:[%s11936_s7 + $0x20] sm:$0xff]   ;;  %v7510_v26 = vcombine.low %v5569_v61, %v5579_v4 }
 0x2a4   : > { %v2614_v42 = vpop.f32.mrf.mxu1  ;;  %v11265_v63 = vpop.f32.mrf.mxu0  ;;  %v7509_v7 = vcombine.low %v5545_v62, %v5555_v38  ;;  %8498 = vmatprep.subr.bf16.mxu1 %v8764_v34  ;;  %v5602_v46 = vrot.slane %v5600_v30, 5  ;;  %v12140_v62 = vld [vmem:[#allocation44_spill] sm:$0xff] }
 0x2a5   : > { %v2615_v50 = vadd.f32 %v2614_v42, %v12137_v15  ;;  %v11268_v23 = vadd.f32 %v11041_v21, %v2623_v8  ;;  %v5588_v21 = vrot.slane %v5587_v53, 4  ;;  %v5598_v55 = vrot.slane %v5597_v0, 4  ;;  %8499 = vmatpush3.bf16.msra.mxu1 %v8764_v34  ;;  %v12139_v8 = vld [vmem:[#allocation43_spill] sm:$0xff]  ;;  %v12141_v53 = vld [vmem:[#allocation24_spill] sm:$0xff] }
 0x2a6   : > { %v8147_v56 = vpop.f32.mrf.mxu1  ;;  %v11274_v29 = vpop.f32.mrf.mxu0 }
 0x2a7   : > { %v2626_v18 = vadd.f32 %v8147_v56, %v12138_v37  ;;  %v11277_v35 = vadd.f32 %v11060_v12, %v2615_v50  ;;  %v5593_v4 = vsel %vm9348_vm11, %v5588_v21, %v5592_v28  ;;  %v8765_v50 = vld [vmem:[%s11936_s7 + $0x18] sm:$0xff]   ;;  %v12143_v21 = vld [vmem:[#allocation15_spill] sm:$0xff] }
 0x2a8   : > { %v11279_v9 = vpop.f32.mrf.mxu1  ;;  %v11281_v47 = vpop.f32.mrf.mxu0  ;;  %8500 = vmatprep.subr.bf16.mxu1 %v8765_v50 }
 0x2a9   : > { %v11284_v5 = vadd.f32 %v11082_v11, %v2626_v18  ;;  %v5603_v11 = vsel %vm9348_vm11, %v5598_v55, %v5602_v46  ;;  %8501 = vmatpush3.bf16.msra.mxu1 %v8765_v50 }
 0x2aa   : > { %v8150_v39 = vpop.f32.mrf.mxu1  ;;  %8437 = vmatmul.mubr.bf16.gmra.mxu1 %v7509_v7  ;;  %v11287_v12 = vpop.f32.mrf.mxu0  ;;  %v7511_v28 = vcombine.low %v5593_v4, %v5603_v11  ;;  %v12145_v4 = vld [vmem:[#allocation19_spill] sm:$0xff] }
 0x2ab   : > { %v2639_v42 = vadd.f32 %v8150_v39, %v12139_v8  ;;  %8440 = vmatprep.mubr.bf16.mxu1 %v7510_v26  ;;  %v12144_v8 = vld [vmem:[#allocation16_spill] sm:$0xff] }
 0x2ac   : > { %v2630_v59 = vpop.f32.mrf.mxu1  ;;  %v11290_v61 = vpop.f32.mrf.mxu0 }
 0x2ad   : > { %v2631_v38 = vadd.f32 %v2630_v59, %v12140_v62  ;;  %v11297_v30 = vadd.f32 %v11118_v14, %v2639_v42 }
 0x2ae   : > { %v8151_v15 = vpop.f32.mrf.mxu1  ;;  %v11303_v56 = vpop.f32.mrf.mxu0 }
 0x2af   : > { %v2642_v0 = vadd.f32 %v8151_v15, %v12141_v53  ;;  %v11306_v34 = vadd.f32 %v11133_v19, %v2631_v38  ;;  %v8766_v38 = vld [vmem:[%s11936_s7 + $0x10] sm:$0xff]   ;;  %v12146_v53 = vld [vmem:[#allocation28_spill] sm:$0xff] }
 0x2b0   : > { %v2633_v37 = vpop.f32.mrf.mxu1  ;;  %v11309_v7 = vpop.f32.mrf.mxu0  ;;  %8502 = vmatprep.subr.bf16.mxu1 %v8766_v38 }
 0x2b1   : > { %v2634_v18 = vadd.f32 %v2633_v37, %v12142_v58  ;;  %v11312_v14 = vadd.f32 %v11159_v6, %v2642_v0  ;;  %8503 = vmatpush3.bf16.msra.mxu1 %v8766_v38 }
 0x2b2   : > { %v8154_v26 = vpop.f32.mrf.mxu1  ;;  %8441 = vmatmul.mubr.bf16.gmra.mxu1 %v7511_v28  ;;  %v11315_v46 = vpop.f32.mrf.mxu0 }
 0x2b3   : > { %v2655_v55 = vadd.f32 %v8154_v26, %v12143_v21  ;;  %v11318_v19 = vadd.f32 %v11180_v17, %v2634_v18 }
 0x2b4   : > { %v2646_v39 = vpop.f32.mrf.mxu1  ;;  %v11321_v59 = vpop.f32.mrf.mxu0 }
 0x2b5   : > { %v2647_v42 = vadd.f32 %v2646_v39, %v12144_v8  ;;  %v11324_v62 = vadd.f32 %v11192_v22, %v2655_v55 }
 0x2b6   : > { %v8155_v6 = vpop.f32.mrf.mxu1  ;;  %v11330_v15 = vpop.f32.mrf.mxu0 }
 0x2b7   : > { %v2658_v11 = vadd.f32 %v8155_v6, %v12145_v4  ;;  %v11333_v17 = vadd.f32 %v11208_v16, %v2647_v42 }
 0x2b8   : > { %v2649_v50 = vpop.f32.mrf.mxu1  ;;  %v11336_v37 = vpop.f32.mrf.mxu0 }
 0x2b9   : > { %v2650_v0 = vadd.f32 %v2649_v50, %v12146_v53  ;;  %v11339_v22 = vadd.f32 %v11221_v41, %v2658_v11 }
 0x2ba   : > { %v8222_v28 = vpop.f32.mrf.mxu1  ;;  %v4176_v18 = vpop.f32.mrf.mxu0 }
 0x2bb   : > { %v3503_v58 = vadd.f32 %v8222_v28, %v11110_v36  ;;  %v11343_v26 = vadd.f32 %v11238_v45, %v2650_v0 }
 0x2bc   : > { %v3374_v21 = vpop.f32.mrf.mxu1  ;;  %v8283_v55 = vpop.f32.mrf.mxu0 }
 0x2bd   : > { %v3501_v16 = vadd.f32 %v3374_v21, %v11123_v1  ;;  %v11347_v39 = vadd.f32 %v11245_v33, %v3503_v58 }
 0x2be   : > { %v8223_v8 = vpop.f32.mrf.mxu1  ;;  %v11350_v41 = vpop.f32.mrf.mxu0 }
 0x2bf   : > { %v3504_v42 = vadd.f32 %v8223_v8, %v11126_v24  ;;  %v11353_v6 = vadd.f32 %v11251_v31, %v3501_v16  ;;  %v8767_v24 = vld [vmem:[%s11936_s7 + $0x8] sm:$0xff]  }
 0x2c0   : > { %v3377_v36 = vpop.f32.mrf.mxu1  ;;  %8504 = vmatprep.subr.bf16.mxu1 %v8767_v24 }
 0x2c1   : > { %v3502_v38 = vadd.f32 %v3377_v36, %v11129_v48  ;;  %v11357_v45 = vadd.f32 %v11265_v63, %v3504_v42  ;;  %v8286_v1 = vpop.f32.mrf.mxu0  ;;  %8505 = vmatpush3.bf16.msra.mxu1 %v8767_v24 }
 0x2c2   : > { %v8226_v4 = vpop.f32.mrf.mxu1 }
 0x2c3   : > { %v3507_v11 = vadd.f32 %v8226_v4, %v11137_v51  ;;  %v11361_v33 = vadd.f32 %v11274_v29, %v3502_v38  ;;  %v4192_v31 = vpop.f32.mrf.mxu0 }
 0x2c4   : > { %v3390_v50 = vpop.f32.mrf.mxu1 }
 0x2c5   : > { %v3505_v53 = vadd.f32 %v3390_v50, %v11140_v13  ;;  %v11368_v48 = vadd.f32 %v11281_v47, %v3507_v11  ;;  %v8287_v0 = vpop.f32.mrf.mxu0 }
 0x2c6   : > { %v8227_v63 = vpop.f32.mrf.mxu1 }
 0x2c7   : > { %v3508_v51 = vadd.f32 %v8227_v63, %v11147_v43  ;;  %v11372_v29 = vadd.f32 %v11287_v12, %v3505_v53  ;;  %v4195_v58 = vpop.f32.mrf.mxu0  ;;  %v8768_v43 = vld [vmem:[%s11936_s7] sm:$0xff]  }
 0x2c8   : > { %v3393_v28 = vpop.f32.mrf.mxu1  ;;  %8506 = vmatprep.subr.bf16.mxu1 %v8768_v43 }
 0x2c9   : > { %v3506_v21 = vadd.f32 %v3393_v28, %v11150_v49  ;;  %v11376_v16 = vadd.f32 %v11290_v61, %v3508_v51  ;;  %v8290_v8 = vpop.f32.mrf.mxu0  ;;  %8507 = vmatpush3.bf16.msra.mxu1 %v8768_v43 }
 0x2ca   : > { %v8230_v13 = vpop.f32.mrf.mxu1 }
 0x2cb   : > { %v3511_v47 = vadd.f32 %v8230_v13, %v11153_v40  ;;  %v11380_v42 = vadd.f32 %v11303_v56, %v3506_v21  ;;  %v4208_v36 = vpop.f32.mrf.mxu0 }
 0x2cc   : > { %v3406_v12 = vpop.f32.mrf.mxu1 }
 0x2cd   : > { %v3509_v38 = vadd.f32 %v3406_v12, %v11164_v27  ;;  %v11387_v49 = vadd.f32 %v11309_v7, %v3511_v47  ;;  %v8291_v4 = vpop.f32.mrf.mxu0 }
 0x2ce   : > { %v8231_v61 = vpop.f32.mrf.mxu1 }
 0x2cf   : > { %v3512_v40 = vadd.f32 %v8231_v61, %v11167_v32  ;;  %v11391_v56 = vadd.f32 %v11315_v46, %v3509_v38  ;;  %v4211_v24 = vpop.f32.mrf.mxu0  ;;  %v12147_v61 = vld [vmem:[#allocation35_spill] sm:$0xff] }
 0x2d0   : > { %v3409_v11 = vpop.f32.mrf.mxu1 }
 0x2d1   : > { %v3510_v50 = vadd.f32 %v3409_v11, %v11171_v25  ;;  %v11395_v53 = vadd.f32 %v11321_v59, %v3512_v40  ;;  %v8294_v63 = vpop.f32.mrf.mxu0  ;;  %v2602_v40 = vadd.f32 %v11243_v57, %v12147_v61 }
 0x2d2   : > { %v8234_v27 = vpop.f32.mrf.mxu1 }
 0x2d3   : > { %v3515_v7 = vadd.f32 %v8234_v27, %v11174_v20  ;;  %v11399_v51 = vadd.f32 %v11330_v15, %v3510_v50  ;;  %v4224_v21 = vpop.f32.mrf.mxu0 }
 0x2d4   : > { %v3422_v28 = vpop.f32.mrf.mxu1 }
 0x2d5   : > { %v3513_v32 = vadd.f32 %v3422_v28, %v11187_v44  ;;  %v11403_v46 = vadd.f32 %v11336_v37, %v3515_v7  ;;  %v8295_v47 = vpop.f32.mrf.mxu0  ;;  %v3131_v28 = vadd.f32 %v11023_v10, %v2602_v40 }
 0x2d6   : > { %v8235_v13 = vpop.f32.mrf.mxu1 }
 0x2d7   : > { %v3516_v25 = vadd.f32 %v8235_v13, %v11196_v52  ;;  %v11406_v59 = vadd.f32 %v4176_v18, %v3513_v32  ;;  %v4227_v12 = vpop.f32.mrf.mxu0 }
 0x2d8   : > { %v3425_v43 = vpop.f32.mrf.mxu1 }
 0x2d9   : > { %v3514_v20 = vadd.f32 %v3425_v43, %v11214_v60  ;;  %v11409_v38 = vadd.f32 %v8283_v55, %v3516_v25  ;;  %v8298_v37 = vpop.f32.mrf.mxu0  ;;  %v12148_v43 = vld [vmem:[#allocation41_spill] sm:$0xff] }
 0x2da   : > { %v8238_v15 = vpop.f32.mrf.mxu1 }
 0x2db   : > { %v3519_v44 = vadd.f32 %v8238_v15, %v11226_v3  ;;  %v11415_v11 = vadd.f32 %v11350_v41, %v3514_v20  ;;  %v4240_v18 = vpop.f32.mrf.mxu0 }
 0x2dc   : > { %v3438_v50 = vpop.f32.mrf.mxu1 }
 0x2dd   : > { %v3517_v52 = vadd.f32 %v3438_v50, %v11241_v54  ;;  %v11418_v27 = vadd.f32 %v8286_v1, %v3519_v44  ;;  %v8299_v55 = vpop.f32.mrf.mxu0  ;;  %v2618_v54 = vadd.f32 %v11279_v9, %v12148_v43  ;;  %v12149_v50 = vld [vmem:[#allocation7_spill] sm:$0xff] }
 0x2de   : > { %v8239_v7 = vpop.f32.mrf.mxu1 }
 0x2df   : > { %v3520_v60 = vadd.f32 %v8239_v7, %v11248_v2  ;;  %v11422_v32 = vadd.f32 %v4192_v31, %v3517_v52  ;;  %v4243_v13 = vpop.f32.mrf.mxu0  ;;  %v3135_v52 = vadd.f32 %v12149_v50, %v2618_v54 }
 0x2e0   : > { %v3441_v57 = vpop.f32.mrf.mxu1 }
 0x2e1   : > { %v3518_v3 = vadd.f32 %v3441_v57, %v3131_v28  ;;  %v11424_v25 = vadd.f32 %v8287_v0, %v3520_v60  ;;  %v8366_v20 = vpop.f32.mrf.mxu0 }
 0x2e2   : > { %v8242_v41 = vpop.f32.mrf.mxu1 }
 0x2e3   : > { %v3523_v1 = vadd.f32 %v8242_v41, %v11268_v23  ;;  %v11429_v15 = vadd.f32 %v4195_v58, %v3518_v3  ;;  %v5013_v10 = vpop.f32.mrf.mxu0 }
 0x2e4   : > { %v3454_v2 = vpop.f32.mrf.mxu1 }
 0x2e5   : > { %v3521_v61 = vadd.f32 %v3454_v2, %v11277_v35  ;;  %v11432_v31 = vadd.f32 %v8290_v8, %v3523_v1  ;;  %v8367_v0 = vpop.f32.mrf.mxu0 }
 0x2e6   : > { %v8243_v40 = vpop.f32.mrf.mxu1 }
 0x2e7   : > { %v3524_v44 = vadd.f32 %v8243_v40, %v11284_v5  ;;  %v11436_v7 = vadd.f32 %v4208_v36, %v3521_v61  ;;  %v11438_v23 = vpop.f32.mrf.mxu0 }
 0x2e8   : > { %v3457_v9 = vpop.f32.mrf.mxu1 }
 0x2e9   : > { %v3522_v60 = vadd.f32 %v3457_v9, %v3135_v52  ;;  %v11440_v58 = vadd.f32 %v8291_v4, %v3524_v44  ;;  %v8370_v57 = vpop.f32.mrf.mxu0 }
 0x2ea   : > { %v8246_v28 = vpop.f32.mrf.mxu1 }
 0x2eb   : > { %v3527_v35 = vadd.f32 %v8246_v28, %v11297_v30  ;;  %v11443_v8 = vadd.f32 %v4211_v24, %v3522_v60  ;;  %v5029_v41 = vpop.f32.mrf.mxu0 }
 0x2ec   : > { %v3470_v3 = vpop.f32.mrf.mxu1 }
 0x2ed   : > { %12150 = vst [vmem:[#allocation9_spill] sm:$0xff] %v11443_v8  ;;  %v3525_v5 = vadd.f32 %v3470_v3, %v11306_v34  ;;  %v11446_v43 = vadd.f32 %v8294_v63, %v3527_v35  ;;  %v8371_v1 = vpop.f32.mrf.mxu0 }
 0x2ee   : > { %v8247_v36 = vpop.f32.mrf.mxu1 }
 0x2ef   : > { %v3528_v54 = vadd.f32 %v8247_v36, %v11312_v14  ;;  %v11449_v2 = vadd.f32 %v4224_v21, %v3525_v5  ;;  %v11452_v40 = vpop.f32.mrf.mxu0 }
 0x2f0   : > { %v3473_v4 = vpop.f32.mrf.mxu1 }
 0x2f1   : > { %v3526_v61 = vadd.f32 %v3473_v4, %v11318_v19  ;;  %v11454_v30 = vadd.f32 %v8295_v47, %v3528_v54  ;;  %v8374_v34 = vpop.f32.mrf.mxu0 }
 0x2f2   : > { %v8250_v24 = vpop.f32.mrf.mxu1 }
 0x2f3   : > { %v3531_v44 = vadd.f32 %v8250_v24, %v11324_v62  ;;  %v11457_v50 = vadd.f32 %v4227_v12, %v3526_v61  ;;  %v5045_v14 = vpop.f32.mrf.mxu0 }
 0x2f4   : > { %v3486_v63 = vpop.f32.mrf.mxu1 }
 0x2f5   : > { %12151 = vst [vmem:[#allocation8_spill] sm:$0xff] %v11457_v50  ;;  %v3529_v52 = vadd.f32 %v3486_v63, %v11333_v17  ;;  %v11460_v9 = vadd.f32 %v8298_v37, %v3531_v44  ;;  %v8375_v19 = vpop.f32.mrf.mxu0 }
 0x2f6   : > { %v8251_v21 = vpop.f32.mrf.mxu1 }
 0x2f7   : > { %v3532_v60 = vadd.f32 %v8251_v21, %v11339_v22  ;;  %v11463_v28 = vadd.f32 %v4240_v18, %v3529_v52  ;;  %v11466_v3 = vpop.f32.mrf.mxu0 }
 0x2f8   : > { %v3489_v47 = vpop.f32.mrf.mxu1 }
 0x2f9   : > { %v3530_v35 = vadd.f32 %v3489_v47, %v11343_v26  ;;  %v11468_v62 = vadd.f32 %v8299_v55, %v3532_v60  ;;  %v8378_v37 = vpop.f32.mrf.mxu0 }
 0x2fa   : > { %v8318_v12 = vpop.f32.mrf.mxu1 }
 0x2fb   : > { %v4755_v5 = vadd.f32 %v8318_v12, %v11347_v39  ;;  %v11471_v17 = vadd.f32 %v4243_v13, %v3530_v35  ;;  %v5061_v18 = vpop.f32.mrf.mxu0 }
 0x2fc   : > { %v4626_v36 = vpop.f32.mrf.mxu1 }
 0x2fd   : > { %12152 = vst [vmem:[#allocation10_spill] sm:$0xff] %v11471_v17  ;;  %v4753_v54 = vadd.f32 %v4626_v36, %v11353_v6  ;;  %v11474_v22 = vadd.f32 %v8366_v20, %v4755_v5  ;;  %v8379_v24 = vpop.f32.mrf.mxu0 }
 0x2fe   : > { %v8319_v4 = vpop.f32.mrf.mxu1 }
 0x2ff   : > { %v4756_v61 = vadd.f32 %v8319_v4, %v11357_v45  ;;  %v11477_v26 = vadd.f32 %v5013_v10, %v4753_v54  ;;  %v11483_v39 = vpop.f32.mrf.mxu0 }
 0x300   : > { %v11479_v55 = vpop.f32.mrf.mxu1 }
 0x301   : > { %v11481_v44 = vadd.f32 %v8367_v0, %v4756_v61  ;;  %v8382_v52 = vpop.f32.mrf.mxu0 }
 0x302   : > { %v8322_v13 = vpop.f32.mrf.mxu1 }
 0x303   : > { %v4759_v63 = vadd.f32 %v8322_v13, %v11368_v48  ;;  %v5077_v60 = vpop.f32.mrf.mxu0 }
 0x304   : > { %v4642_v6 = vpop.f32.mrf.mxu1 }
 0x305   : > { %v4757_v20 = vadd.f32 %v4642_v6, %v11372_v29  ;;  %v11487_v21 = vadd.f32 %v8370_v57, %v4759_v63  ;;  %v8383_v35 = vpop.f32.mrf.mxu0 }
 0x306   : > { %v8323_v45 = vpop.f32.mrf.mxu1 }
 0x307   : > { %v4760_v10 = vadd.f32 %v8323_v45, %v11376_v16  ;;  %v11490_v47 = vadd.f32 %v5029_v41, %v4757_v20  ;;  %v11496_v5 = vpop.f32.mrf.mxu0 }
 0x308   : > { %v11492_v0 = vpop.f32.mrf.mxu1 }
 0x309   : > { %v11494_v12 = vadd.f32 %v8371_v1, %v4760_v10  ;;  %v8386_v54 = vpop.f32.mrf.mxu0 }
 0x30a   : > { %v8326_v48 = vpop.f32.mrf.mxu1 }
 0x30b   : > { %v4763_v36 = vadd.f32 %v8326_v48, %v11387_v49  ;;  %v5093_v61 = vpop.f32.mrf.mxu0 }
 0x30c   : > { %v4658_v29 = vpop.f32.mrf.mxu1 }
 0x30d   : > { %v4761_v57 = vadd.f32 %v4658_v29, %v11391_v56  ;;  %v11500_v4 = vadd.f32 %v8374_v34, %v4763_v36  ;;  %v8387_v63 = vpop.f32.mrf.mxu0 }
 0x30e   : > { %v8327_v16 = vpop.f32.mrf.mxu1 }
 0x30f   : > { %v4764_v41 = vadd.f32 %v8327_v16, %v11395_v53  ;;  %v11503_v13 = vadd.f32 %v5045_v14, %v4761_v57  ;;  %v11509_v20 = vpop.f32.mrf.mxu0 }
 0x310   : > { %v11505_v1 = vpop.f32.mrf.mxu1  ;;  %12153 = vst [vmem:[#allocation11_spill] sm:$0xff] %v11509_v20 }
 0x311   : > { %v11507_v6 = vadd.f32 %v8375_v19, %v4764_v41  ;;  %v8390_v10 = vpop.f32.mrf.mxu0 }
 0x312   : > { %v8330_v49 = vpop.f32.mrf.mxu1 }
 0x313   : > { %v4767_v45 = vadd.f32 %v8330_v49, %v11403_v46  ;;  %v5109_v36 = vpop.f32.mrf.mxu0 }
 0x314   : > { %v4674_v56 = vpop.f32.mrf.mxu1 }
 0x315   : > { %v4765_v34 = vadd.f32 %v4674_v56, %v11406_v59  ;;  %v11513_v48 = vadd.f32 %v8378_v37, %v4767_v45  ;;  %v8391_v57 = vpop.f32.mrf.mxu0 }
 0x316   : > { %v8331_v53 = vpop.f32.mrf.mxu1 }
 0x317   : > { %v4768_v14 = vadd.f32 %v8331_v53, %v11409_v38  ;;  %v11516_v29 = vadd.f32 %v5061_v18, %v4765_v34  ;;  %v11522_v41 = vpop.f32.mrf.mxu0 }
 0x318   : > { %v11518_v19 = vpop.f32.mrf.mxu1  ;;  %12154 = vst [vmem:[#allocation12_spill] sm:$0xff] %v11522_v41 }
 0x319   : > { %v11520_v16 = vadd.f32 %v8379_v24, %v4768_v14  ;;  %v8394_v17 = vpop.f32.mrf.mxu0 }
 0x31a   : > { %v8334_v46 = vpop.f32.mrf.mxu1 }
 0x31b   : > { %v4771_v49 = vadd.f32 %v8334_v46, %v11418_v27  ;;  %v5125_v56 = vpop.f32.mrf.mxu0 }
 0x31c   : > { %v4690_v59 = vpop.f32.mrf.mxu1 }
 0x31d   : > { %v4769_v37 = vadd.f32 %v4690_v59, %v11422_v32  ;;  %v11526_v45 = vadd.f32 %v8382_v52, %v4771_v49  ;;  %v8395_v53 = vpop.f32.mrf.mxu0 }
 0x31e   : > { %v8335_v38 = vpop.f32.mrf.mxu1 }
 0x31f   : > { %v4772_v18 = vadd.f32 %v8335_v38, %v11424_v25  ;;  %v11529_v34 = vadd.f32 %v5077_v60, %v4769_v37  ;;  %v11535_v41 = vpop.f32.mrf.mxu0 }
 0x320   : > { %v11531_v24 = vpop.f32.mrf.mxu1  ;;  %12155 = vst [vmem:[#allocation17_spill] sm:$0xff] %v11535_v41 }
 0x321   : > { %v11533_v14 = vadd.f32 %v8383_v35, %v4772_v18 }
 0x322   : > { %v8338_v27 = vpop.f32.mrf.mxu1 }
 0x323   : > { %v4775_v46 = vadd.f32 %v8338_v27, %v11432_v31  ;;  %v8462_v50 = vpop.f32.mrf.mxu0 }
 0x324   : > { %v4706_v32 = vpop.f32.mrf.mxu1 }
 0x325   : > { %v4773_v52 = vadd.f32 %v4706_v32, %v11436_v7  ;;  %v11539_v49 = vadd.f32 %v8386_v54, %v4775_v46  ;;  %v6265_v59 = vpop.f32.mrf.mxu0 }
 0x326   : > { %v8339_v25 = vpop.f32.mrf.mxu1 }
 0x327   : > { %v4776_v60 = vadd.f32 %v8339_v25, %v11440_v58  ;;  %v11542_v37 = vadd.f32 %v5093_v61, %v4773_v52  ;;  %v8463_v38 = vpop.f32.mrf.mxu0 }
 0x328   : > { %v11544_v35 = vpop.f32.mrf.mxu1 }
 0x329   : > { %v11546_v18 = vadd.f32 %v8387_v63, %v4776_v60  ;;  %v6268_v41 = vpop.f32.mrf.mxu0 }
 0x32a   : > { %v8342_v20 = vpop.f32.mrf.mxu1 }
 0x32b   : > { %v4779_v31 = vadd.f32 %v8342_v20, %v11446_v43  ;;  %v8466_v27 = vpop.f32.mrf.mxu0 }
 0x32c   : > { %v4722_v8 = vpop.f32.mrf.mxu1 }
 0x32d   : > { %v4777_v7 = vadd.f32 %v4722_v8, %v11449_v2  ;;  %v11550_v54 = vadd.f32 %v8390_v10, %v4779_v31  ;;  %v6281_v46 = vpop.f32.mrf.mxu0 }
 0x32e   : > { %v8343_v32 = vpop.f32.mrf.mxu1 }
 0x32f   : > { %v4780_v58 = vadd.f32 %v8343_v32, %v11454_v30  ;;  %v11553_v61 = vadd.f32 %v5109_v36, %v4777_v7  ;;  %v11555_v52 = vpop.f32.mrf.mxu0 }
 0x330   : > { %v11557_v63 = vpop.f32.mrf.mxu1 }
 0x331   : > { %v11559_v25 = vadd.f32 %v8391_v57, %v4780_v58  ;;  %v11561_v60 = vpop.f32.mrf.mxu0 }
 0x332   : > { %v8346_v43 = vpop.f32.mrf.mxu1 }
 0x333   : > { %12156 = vst [vmem:[#allocation20_spill] sm:$0xff] %v11559_v25  ;;  %v4783_v20 = vadd.f32 %v8346_v43, %v11460_v9 }
 0x334   : > { %v11564_v8 = vpop.f32.mrf.mxu0  ;;  %v4738_v2 = vpop.f32.mrf.mxu1 }
 0x335   : > { %v4781_v10 = vadd.f32 %v4738_v2, %v11463_v28  ;;  %v11567_v31 = vadd.f32 %v8394_v17, %v4783_v20  ;;  %v4754_v28 = vadd.f32 %v11479_v55, %v11361_v33  ;;  %v11601_v55 = vld [vmem:[%s11935_s6] ss:$0 sm:$0xff] }
 0x336   : > { %v11569_v30 = vpop.f32.mrf.mxu0  ;;  %v8347_v36 = vpop.f32.mrf.mxu1 }
 0x337   : > { %12157 = vst [vmem:[#allocation21_spill] sm:$0xff] %v11567_v31  ;;  %v4784_v7 = vadd.f32 %v8347_v36, %v11468_v62  ;;  %v11572_v32 = vadd.f32 %v5125_v56, %v4781_v10  ;;  %v11588_v62 = vld [vmem:[%s11934_s5] ss:$0 sm:$0xff] }
 0x338   : > { %v11574_v57 = vpop.f32.mrf.mxu0  ;;  %v11576_v58 = vpop.f32.mrf.mxu1 }
 0x339   : > { %12158 = vst [vmem:[#allocation23_spill] sm:$0xff] %v11572_v32  ;;  %v11578_v25 = vadd.f32 %v8395_v53, %v4784_v7 }
 0x33a   : > { %v11580_v9 = vpop.f32.mrf.mxu0  ;;  %v8414_v43 = vpop.f32.mrf.mxu1 }
 0x33b   : > { %12159 = vst [vmem:[#allocation25_spill] sm:$0xff] %v11578_v25  ;;  %v5896_v17 = vadd.f32 %v8414_v43, %v11474_v22  ;;  %v5141_v22 = vadd.f32 %v11438_v23, %v4754_v28 }
 0x33c   : > { %v11590_v56 = vpop.f32.mrf.mxu0  ;;  %v5767_v20 = vpop.f32.mrf.mxu1 }
 0x33d   : > { %v6394_v2 = vadd.f32 %v8462_v50, %v5896_v17  ;;  %v5894_v53 = vadd.f32 %v5767_v20, %v11477_v26 }
 0x33e   : > { %v11593_v10 = vpop.f32.mrf.mxu0  ;;  %v8415_v36 = vpop.f32.mrf.mxu1 }
 0x33f   : > { %v6433_v7 = vmul.f32 %v11588_v62, %v6394_v2  ;;  %v6392_v25 = vadd.f32 %v6265_v59, %v5894_v53  ;;  %v5897_v33 = vadd.f32 %v8415_v36, %v11481_v44  ;;  %v4758_v53 = vadd.f32 %v11492_v0, %v11380_v42 }
 0x340   : > { %v11603_v43 = vpop.f32.mrf.mxu0  ;;  %v5770_v50 = vpop.f32.mrf.mxu1 }
 0x341   : > { %v6395_v17 = vadd.f32 %v8463_v38, %v5897_v33  ;;  %v5895_v26 = vadd.f32 %v5770_v50, %v5141_v22  ;;  %v6431_v20 = vmul.f32 %v11588_v62, %v6392_v25  ;;  %v6472_v59 = vadd.f32 %v11601_v55, %v6433_v7 }
 0x342   : > { %v11606_v32 = vpop.f32.mrf.mxu0  ;;  %v8418_v2 = vpop.f32.mrf.mxu1 }
 0x343   : > { %v6434_v44 = vmul.f32 %v11588_v62, %v6395_v17  ;;  %v6393_v23 = vadd.f32 %v6268_v41, %v5895_v26  ;;  %v5900_v28 = vadd.f32 %v8418_v2, %v11487_v21  ;;  %v6470_v41 = vadd.f32 %v11601_v55, %v6431_v20 }
 0x344   : > { %v11613_v36 = vpop.f32.mrf.mxu0  ;;  %v5783_v31 = vpop.f32.mrf.mxu1  ;;  %v6504_v17 = vmax.f32 %v6472_v59, 0.0 }
 0x345   : > { %v6473_v38 = vadd.f32 %v11601_v55, %v6434_v44  ;;  %v6432_v25 = vmul.f32 %v11588_v62, %v6393_v23  ;;  %v6398_v33 = vadd.f32 %v8466_v27, %v5900_v28  ;;  %v5898_v22 = vadd.f32 %v5783_v31, %v11490_v47 }
 0x346   : > { %v11618_v50 = vpop.f32.mrf.mxu0  ;;  %v8419_v7 = vpop.f32.mrf.mxu1  ;;  %v5145_v44 = vadd.f32 %v11452_v40, %v4758_v53 }
 0x347   : > { %v6505_v21 = vmax.f32 %v6473_v38, 0.0  ;;  %v6396_v26 = vadd.f32 %v6281_v46, %v5898_v22  ;;  %v5901_v42 = vadd.f32 %v8419_v7, %v11494_v12  ;;  %v6437_v0 = vmul.f32 %v11588_v62, %v6398_v33 }
 0x348   : > { %v11623_v2 = vpop.f32.mrf.mxu0  ;;  %v5786_v23 = vpop.f32.mrf.mxu1  ;;  %v6471_v27 = vadd.f32 %v11601_v55, %v6432_v25  ;;  %v6502_v38 = vmax.f32 %v6470_v41, 0.0  ;;  %v4762_v33 = vadd.f32 %v11505_v1, %v11399_v51 }
 0x349   : > { %v6535_v47 = vpack.c.bf16 %v6505_v21, %v6504_v17  ;;  %v6399_v31 = vadd.f32 %v11555_v52, %v5901_v42  ;;  %v6435_v28 = vmul.f32 %v11588_v62, %v6396_v26  ;;  %v5899_v20 = vadd.f32 %v5786_v23, %v5145_v44 }
 0x34a   : > { %v11629_v59 = vpop.f32.mrf.mxu0  ;;  %v8422_v46 = vpop.f32.mrf.mxu1  ;;  %v6503_v12 = vmax.f32 %v6471_v27, 0.0  ;;  %v6476_v53 = vadd.f32 %v11601_v55, %v6437_v0  ;;  %v5149_v44 = vadd.f32 %v11466_v3, %v4762_v33  ;;  %v4766_v3 = vadd.f32 %v11518_v19, %v11415_v11 }
 0x34b   : > { %v6438_v22 = vmul.f32 %v11588_v62, %v6399_v31  ;;  %v5904_v40 = vadd.f32 %v8422_v46, %v11500_v4  ;;  %v6397_v25 = vadd.f32 %v11561_v60, %v5899_v20  ;;  %v6474_v4 = vadd.f32 %v11601_v55, %v6435_v28 }
 0x34c   : > { %v5799_v52 = vpop.f32.mrf.mxu1  ;;  %v6534_v7 = vpack.c.bf16 %v6503_v12, %v6502_v38  ;;  %v6508_v23 = vmax.f32 %v6476_v53, 0.0 }
 0x34d   : > { %v6477_v17 = vadd.f32 %v11601_v55, %v6438_v22  ;;  %v6402_v21 = vadd.f32 %v11564_v8, %v5904_v40  ;;  %v5902_v41 = vadd.f32 %v5799_v52, %v11503_v13  ;;  %v6436_v26 = vmul.f32 %v11588_v62, %v6397_v25  ;;  %v11641_v42 = vpop.f32.mrf.mxu0 }
 0x34e   : > { %8508 = vmatprep.mubr.bf16.mxu1 %v6534_v7  ;;  %v8423_v51 = vpop.f32.mrf.mxu1 }
 0x34f   : > { %v6509_v1 = vmax.f32 %v6477_v17, 0.0  ;;  %v6400_v0 = vadd.f32 %v11569_v30, %v5902_v41  ;;  %v5905_v60 = vadd.f32 %v8423_v51, %v11507_v6  ;;  %8509 = vmatmul.mubr.bf16.vlgmr.msra.gmra.mxu1 %v6535_v47  ;;  %v6441_v8 = vmul.f32 %v11588_v62, %v6402_v21  ;;  %v11651_v28 = vpop.f32.mrf.mxu0 }
 0x350   : > { %v5802_v13 = vpop.f32.mrf.mxu1  ;;  %v6475_v27 = vadd.f32 %v11601_v55, %v6436_v26  ;;  %v6506_v30 = vmax.f32 %v6474_v4, 0.0  ;;  %v5153_v26 = vadd.f32 %v11483_v39, %v4766_v3  ;;  %v4770_v39 = vadd.f32 %v11531_v24, %v11429_v15 }
 0x351   : > { %v6403_v31 = vadd.f32 %v11574_v57, %v5905_v60  ;;  %v5903_v20 = vadd.f32 %v5802_v13, %v5149_v44  ;;  %v6439_v46 = vmul.f32 %v11588_v62, %v6400_v0  ;;  %v6537_v6 = vpack.c.bf16 %v6509_v1, %v6508_v23  ;;  %v11663_v21 = vpop.f32.mrf.mxu0 }
 0x352   : > { %v8426_v38 = vpop.f32.mrf.mxu1  ;;  %v6507_v12 = vmax.f32 %v6475_v27, 0.0  ;;  %v6480_v57 = vadd.f32 %v11601_v55, %v6441_v8 }
 0x353   : > { %v6442_v47 = vmul.f32 %v11588_v62, %v6403_v31  ;;  %v6401_v33 = vadd.f32 %v11580_v9, %v5903_v20  ;;  %v5908_v22 = vadd.f32 %v8426_v38, %v11513_v48  ;;  %v6478_v19 = vadd.f32 %v11601_v55, %v6439_v46  ;;  %v11672_v60 = vpop.f32.mrf.mxu0 }
 0x354   : > { %v5815_v40 = vpop.f32.mrf.mxu1  ;;  %v6536_v53 = vpack.c.bf16 %v6507_v12, %v6506_v30  ;;  %v6512_v51 = vmax.f32 %v6480_v57, 0.0 }
 0x355   : > { %v6481_v25 = vadd.f32 %v11601_v55, %v6442_v47  ;;  %v6440_v52 = vmul.f32 %v11588_v62, %v6401_v33  ;;  %v6406_v7 = vadd.f32 %v11590_v56, %v5908_v22  ;;  %v5906_v17 = vadd.f32 %v5815_v40, %v11516_v29  ;;  %v8486_v3 = vpop.f32.mrf.mxu0 }
 0x356   : > { %8512 = vmatprep.mubr.bf16.mxu1 %v6536_v53  ;;  %v8427_v11 = vpop.f32.mrf.mxu1  ;;  %v5157_v33 = vadd.f32 %v11496_v5, %v4770_v39 }
 0x357   : > { %v6513_v9 = vmax.f32 %v6481_v25, 0.0  ;;  %v6404_v48 = vadd.f32 %v11593_v10, %v5906_v17  ;;  %v5909_v41 = vadd.f32 %v8427_v11, %v11520_v16  ;;  %8513 = vmatmul.mubr.bf16.gmra.mxu1 %v6537_v6  ;;  %v6445_v4 = vmul.f32 %v11588_v62, %v6406_v7  ;;  %v6361_v25 = vpop.f32.mrf.mxu0 }
 0x358   : > { %v5818_v56 = vpop.f32.mrf.mxu1  ;;  %v6479_v29 = vadd.f32 %v11601_v55, %v6440_v52  ;;  %v6510_v10 = vmax.f32 %v6478_v19, 0.0 }
 0x359   : > { %v6407_v1 = vadd.f32 %v11603_v43, %v5909_v41  ;;  %v5907_v0 = vadd.f32 %v5818_v56, %v5153_v26  ;;  %v6443_v44 = vmul.f32 %v11588_v62, %v6404_v48  ;;  %v6539_v16 = vpack.c.bf16 %v6513_v9, %v6512_v51 }
 0x35a   : > { %v8430_v23 = vpop.f32.mrf.mxu1  ;;  %v6511_v8 = vmax.f32 %v6479_v29, 0.0  ;;  %v6484_v43 = vadd.f32 %v11601_v55, %v6445_v4 }
 0x35b   : > { %v6446_v13 = vmul.f32 %v11588_v62, %v6407_v1  ;;  %v6405_v27 = vadd.f32 %v11606_v32, %v5907_v0  ;;  %v5912_v31 = vadd.f32 %v8430_v23, %v11526_v45  ;;  %v6482_v24 = vadd.f32 %v11601_v55, %v6443_v44  ;;  %v8487_v1 = vpop.f32.mrf.mxu0  ;;  %v12161_v23 = vld [vmem:[#allocation11_spill] sm:$0xff] }
 0x35c   : > { %v5831_v20 = vpop.f32.mrf.mxu1  ;;  %v6538_v46 = vpack.c.bf16 %v6511_v8, %v6510_v10  ;;  %v6516_v22 = vmax.f32 %v6484_v43, 0.0 }
 0x35d   : > { %v6485_v38 = vadd.f32 %v11601_v55, %v6446_v13  ;;  %v6444_v30 = vmul.f32 %v11588_v62, %v6405_v27  ;;  %v6410_v12 = vadd.f32 %v11613_v36, %v5912_v31  ;;  %v5910_v6 = vadd.f32 %v5831_v20, %v11529_v34  ;;  %v6364_v27 = vpop.f32.mrf.mxu0 }
 0x35e   : > { %8516 = vmatprep.mubr.bf16.mxu1 %v6538_v46  ;;  %v8431_v15 = vpop.f32.mrf.mxu1  ;;  %v6514_v17 = vmax.f32 %v6482_v24, 0.0 }
 0x35f   : > { %v6517_v32 = vmax.f32 %v6485_v38, 0.0  ;;  %v6408_v45 = vadd.f32 %v11618_v50, %v5910_v6  ;;  %v5913_v47 = vadd.f32 %v8431_v15, %v11533_v14  ;;  %8517 = vmatmul.mubr.bf16.gmra.mxu1 %v6539_v16  ;;  %v6449_v57 = vmul.f32 %v11588_v62, %v6410_v12  ;;  %v12160_v14 = vld [vmem:[#allocation9_spill] sm:$0xff] }
 0x360   : > { %v5834_v40 = vpop.f32.mrf.mxu1  ;;  %v6483_v36 = vadd.f32 %v11601_v55, %v6444_v30  ;;  %v4774_v19 = vadd.f32 %v11544_v35, %v12160_v14 }
 0x361   : > { %v6411_v34 = vadd.f32 %v11623_v2, %v5913_v47  ;;  %v5911_v53 = vadd.f32 %v5834_v40, %v5157_v33  ;;  %v6447_v52 = vmul.f32 %v11588_v62, %v6408_v45  ;;  %v6541_v11 = vpack.c.bf16 %v6517_v32, %v6516_v22  ;;  %v8490_v22 = vpop.f32.mrf.mxu0 }
 0x362   : > { %v8434_v7 = vpop.f32.mrf.mxu1  ;;  %v6515_v50 = vmax.f32 %v6483_v36, 0.0  ;;  %v6488_v41 = vadd.f32 %v11601_v55, %v6449_v57  ;;  %v5161_v10 = vadd.f32 %v12161_v23, %v4774_v19  ;;  %v12163_v36 = vld [vmem:[#allocation20_spill] sm:$0xff] }
 0x363   : > { %v6450_v5 = vmul.f32 %v11588_v62, %v6411_v34  ;;  %v6409_v9 = vadd.f32 %v11629_v59, %v5911_v53  ;;  %v5916_v48 = vadd.f32 %v8434_v7, %v11539_v49  ;;  %v6486_v0 = vadd.f32 %v11601_v55, %v6447_v52  ;;  %v12164_v34 = vld [vmem:[#allocation12_spill] sm:$0xff]  ;;  %v6377_v19 = vpop.f32.mrf.mxu0 }
 0x364   : > { %v5847_v2 = vpop.f32.mrf.mxu1  ;;  %v6540_v26 = vpack.c.bf16 %v6515_v50, %v6514_v17  ;;  %v6520_v8 = vmax.f32 %v6488_v41, 0.0  ;;  %v12165_v50 = vld [vmem:[#allocation10_spill] sm:$0xff] }
 0x365   : > { %v6489_v51 = vadd.f32 %v11601_v55, %v6450_v5  ;;  %v6448_v4 = vmul.f32 %v11588_v62, %v6409_v9  ;;  %v6414_v56 = vadd.f32 %v11641_v42, %v5916_v48  ;;  %v5914_v29 = vadd.f32 %v5847_v2, %v11542_v37 }
 0x366   : > { %8520 = vmatprep.mubr.bf16.mxu1 %v6540_v26  ;;  %v8435_v35 = vpop.f32.mrf.mxu1  ;;  %v6518_v20 = vmax.f32 %v6486_v0, 0.0 }
 0x367   : > { %v6521_v59 = vmax.f32 %v6489_v51, 0.0  ;;  %v6412_v49 = vadd.f32 %v11651_v28, %v5914_v29  ;;  %v5917_v44 = vadd.f32 %v8435_v35, %v11546_v18  ;;  %8521 = vmatmul.mubr.bf16.gmra.mxu1 %v6541_v11  ;;  %v6453_v16 = vmul.f32 %v11588_v62, %v6414_v56  ;;  %v12162_v18 = vld [vmem:[#allocation8_spill] sm:$0xff]  ;;  %v12166_v51 = vld [vmem:[#allocation21_spill] sm:$0xff] }
 0x368   : > { %v5850_v39 = vpop.f32.mrf.mxu1  ;;  %v6487_v42 = vadd.f32 %v11601_v55, %v6448_v4  ;;  %v4778_v38 = vadd.f32 %v11557_v63, %v12162_v18 }
 0x369   : > { %v6415_v37 = vadd.f32 %v11663_v21, %v5917_v44  ;;  %v5915_v13 = vadd.f32 %v5850_v39, %v5161_v10  ;;  %v6451_v31 = vmul.f32 %v11588_v62, %v6412_v49  ;;  %v6543_v46 = vpack.c.bf16 %v6521_v59, %v6520_v8  ;;  %v12167_v59 = vld [vmem:[#allocation23_spill] sm:$0xff]  ;;  %v8491_v44 = vpop.f32.mrf.mxu0  ;;  %v12168_v10 = vld [vmem:[#allocation17_spill] sm:$0xff] }
 0x36a   : > { %v8438_v43 = vpop.f32.mrf.mxu1  ;;  %v6519_v28 = vmax.f32 %v6487_v42, 0.0  ;;  %v6492_v15 = vadd.f32 %v11601_v55, %v6453_v16  ;;  %v5165_v53 = vadd.f32 %v12164_v34, %v4778_v38  ;;  %v7727_v34 = vld [vmem:[%s8999_s27 + $0x10] sm:$0xff]  }
 0x36b   : > { %v6454_v30 = vmul.f32 %v11588_v62, %v6415_v37  ;;  %v6413_v12 = vadd.f32 %v11672_v60, %v5915_v13  ;;  %v5920_v6 = vadd.f32 %v8438_v43, %v11550_v54  ;;  %v6490_v57 = vadd.f32 %v11601_v55, %v6451_v31  ;;  %v12169_v13 = vld [vmem:[#allocation25_spill] sm:$0xff]  ;;  %v6380_v38 = vpop.f32.mrf.mxu0 }
 0x36c   : > { %v5863_v21 = vpop.f32.mrf.mxu1  ;;  %v6542_v24 = vpack.c.bf16 %v6519_v28, %v6518_v20  ;;  %v6524_v52 = vmax.f32 %v6492_v15, 0.0 }
 0x36d   : > { %v6493_v32 = vadd.f32 %v11601_v55, %v6454_v30  ;;  %v6452_v45 = vmul.f32 %v11588_v62, %v6413_v12  ;;  %v6418_v47 = vadd.f32 %v8486_v3, %v5920_v6  ;;  %v5918_v33 = vadd.f32 %v5863_v21, %v11553_v61 }
 0x36e   : > { %8524 = vmatprep.mubr.bf16.mxu1 %v6542_v24  ;;  %v8439_v63 = vpop.f32.mrf.mxu1  ;;  %v4782_v61 = vadd.f32 %v11576_v58, %v12165_v50  ;;  %v6522_v9 = vmax.f32 %v6490_v57, 0.0 }
 0x36f   : > { %v6525_v40 = vmax.f32 %v6493_v32, 0.0  ;;  %v6416_v60 = vadd.f32 %v6361_v25, %v5918_v33  ;;  %v5921_v54 = vadd.f32 %v8439_v63, %v12163_v36  ;;  %8525 = vmatmul.mubr.bf16.gmra.mxu1 %v6543_v46  ;;  %v6457_v7 = vmul.f32 %v11588_v62, %v6418_v47 }
 0x370   : > { %v5866_v17 = vpop.f32.mrf.mxu1  ;;  %v6491_v3 = vadd.f32 %v11601_v55, %v6452_v45  ;;  %v5169_v8 = vadd.f32 %v12168_v10, %v4782_v61 }
 0x371   : > { %v6419_v11 = vadd.f32 %v8487_v1, %v5921_v54  ;;  %v5919_v14 = vadd.f32 %v5866_v17, %v5165_v53  ;;  %v6455_v5 = vmul.f32 %v11588_v62, %v6416_v60  ;;  %v6545_v41 = vpack.c.bf16 %v6525_v40, %v6524_v52  ;;  %v7726_v52 = vld [vmem:[%s8999_s27 + $0x8] sm:$0xff]  }
 0x372   : > { %v8442_v25 = vpop.f32.mrf.mxu1  ;;  %v6523_v48 = vmax.f32 %v6491_v3, 0.0  ;;  %v6496_v56 = vadd.f32 %v11601_v55, %v6457_v7  ;;  %v7668_v7 = vunpack.c.l.bf16 %v7727_v34  ;;  %v7664_v61 = vunpack.c.l.bf16 %v7726_v52 }
 0x373   : > { %v6458_v2 = vmul.f32 %v11588_v62, %v6419_v11  ;;  %v6417_v26 = vadd.f32 %v6364_v27, %v5919_v14  ;;  %v5924_v4 = vadd.f32 %v8442_v25, %v12166_v51  ;;  %v6494_v16 = vadd.f32 %v11601_v55, %v6455_v5 }
 0x374   : > { %v5879_v29 = vpop.f32.mrf.mxu1  ;;  %v6544_v35 = vpack.c.bf16 %v6523_v48, %v6522_v9  ;;  %v6528_v31 = vmax.f32 %v6496_v56, 0.0  ;;  %v7669_v25 = vunpack.c.h.bf16 %v7727_v34  ;;  %v7729_v48 = vld [vmem:[%s8999_s27 + $0x20] sm:$0xff]  }
 0x375   : > { %v6497_v58 = vadd.f32 %v11601_v55, %v6458_v2  ;;  %v6456_v1 = vmul.f32 %v11588_v62, %v6417_v26  ;;  %v6422_v0 = vadd.f32 %v8490_v22, %v5924_v4  ;;  %v5922_v49 = vadd.f32 %v5879_v29, %v12167_v59  ;;  %v7728_v29 = vld [vmem:[%s8999_s27 + $0x18] sm:$0xff]  }
 0x376   : > { %8528 = vmatprep.mubr.bf16.mxu1 %v6544_v35  ;;  %v8443_v23 = vpop.f32.mrf.mxu1  ;;  %v6526_v30 = vmax.f32 %v6494_v16, 0.0  ;;  %v7665_v2 = vunpack.c.h.bf16 %v7726_v52 }
 0x377   : > { %v6529_v39 = vmax.f32 %v6497_v58, 0.0  ;;  %v6461_v42 = vmul.f32 %v11588_v62, %v6422_v0  ;;  %v6420_v37 = vadd.f32 %v6377_v19, %v5922_v49  ;;  %v5925_v27 = vadd.f32 %v8443_v23, %v12169_v13  ;;  %8529 = vmatmul.mubr.bf16.gmra.mxu1 %v6545_v41 }
 0x378   : > { %v5882_v43 = vpop.f32.mrf.mxu1  ;;  %v6495_v20 = vadd.f32 %v11601_v55, %v6456_v1  ;;  %v7676_v58 = vunpack.c.l.bf16 %v7729_v48  ;;  %v7672_v23 = vunpack.c.l.bf16 %v7728_v29 }
 0x379   : > { %v6459_v28 = vmul.f32 %v11588_v62, %v6420_v37  ;;  %v6423_v46 = vadd.f32 %v8491_v44, %v5925_v27  ;;  %v5923_v18 = vadd.f32 %v5882_v43, %v5169_v8  ;;  %v6547_v6 = vpack.c.bf16 %v6529_v39, %v6528_v31 }
 0x37a   : > { %v6527_v12 = vmax.f32 %v6495_v20, 0.0  ;;  %v6500_v15 = vadd.f32 %v11601_v55, %v6461_v42  ;;  %v7677_v37 = vunpack.c.h.bf16 %v7729_v48  ;;  %v7731_v20 = vld [vmem:[%s8999_s27 + $0x30] sm:$0xff]  }
 0x37b   : > { %v6462_v21 = vmul.f32 %v11588_v62, %v6423_v46  ;;  %v6421_v24 = vadd.f32 %v6380_v38, %v5923_v18  ;;  %v6498_v33 = vadd.f32 %v11601_v55, %v6459_v28  ;;  %v7673_v46 = vunpack.c.h.bf16 %v7728_v29 }
 0x37c   : > { %v6546_v32 = vpack.c.bf16 %v6527_v12, %v6526_v30  ;;  %v6532_v22 = vmax.f32 %v6500_v15, 0.0 }
 0x37d   : > { %v6501_v45 = vadd.f32 %v11601_v55, %v6462_v21  ;;  %v6460_v47 = vmul.f32 %v11588_v62, %v6421_v24  ;;  %v6530_v40 = vmax.f32 %v6498_v33, 0.0  ;;  %v11750_v62 = vld [vmem:[%s11937_s8] ss:$0 sm:$0xff]  ;;  %v7684_v21 = vunpack.c.l.bf16 %v7731_v20 }
 0x37e   : > { %8532 = vmatprep.mubr.bf16.mxu1 %v6546_v32 }
 0x37f   : > { %v6533_v63 = vmax.f32 %v6501_v45, 0.0  ;;  %8533 = vmatmul.mubr.bf16.gmra.mxu1 %v6547_v6  ;;  %v6499_v57 = vadd.f32 %v11601_v55, %v6460_v47  ;;  %v11756_v55 = vld [vmem:[%s11938_s9] ss:$0 sm:$0xff]  ;;  %v7730_v6 = vld [vmem:[%s8999_s27 + $0x28] sm:$0xff]  }
 0x381   : > { %v6531_v60 = vmax.f32 %v6499_v57, 0.0  ;;  %v6549_v36 = vpack.c.bf16 %v6533_v63, %v6532_v22  ;;  %v7680_v22 = vunpack.c.l.bf16 %v7730_v6 }
 0x383   : > { %v6548_v54 = vpack.c.bf16 %v6531_v60, %v6530_v40 }
 0x385   : > { %8536 = vmatprep.mubr.bf16.mxu1 %v6548_v54  ;;  %v7685_v54 = vunpack.c.h.bf16 %v7731_v20 }
 0x387   : > { %8537 = vmatmul.mubr.bf16.gmra.mxu1 %v6549_v36 }
 0x40f   : > { %v8510_v53 = vpop.f32.mrf.mxu1 }
 0x410   : > { %v6820_v17 = vmul.f32 %v8510_v53, %v11750_v62 }
 0x411   : > { %v6648_v3 = vpop.f32.mrf.mxu1 }
 0x412   : > { %v6859_v50 = vadd.f32 %v11756_v55, %v6820_v17  ;;  %v6818_v11 = vmul.f32 %v11750_v62, %v6648_v3  ;;  %v7733_v17 = vld [vmem:[%s8999_s27 + $0x40] sm:$0xff]  }
 0x413   : > { %v8511_v14 = vpop.f32.mrf.mxu1 }
 0x414   : > { %v6923_v19 = vadd.f32 %v7668_v7, %v6859_v50  ;;  %v6857_v5 = vadd.f32 %v11756_v55, %v6818_v11  ;;  %v6821_v9 = vmul.f32 %v8511_v14, %v11750_v62  ;;  %v7681_v50 = vunpack.c.h.bf16 %v7730_v6 }
 0x415   : > { %v6651_v41 = vpop.f32.mrf.mxu1 }
 0x416   : > { %v6955_v26 = vmax.f32 %v6923_v19, 0.0  ;;  %v6921_v51 = vadd.f32 %v7664_v61, %v6857_v5  ;;  %v6860_v4 = vadd.f32 %v11756_v55, %v6821_v9  ;;  %v6819_v56 = vmul.f32 %v11750_v62, %v6651_v41  ;;  %v7732_v5 = vld [vmem:[%s8999_s27 + $0x38] sm:$0xff]  }
 0x417   : > { %v8514_v35 = vpop.f32.mrf.mxu1  ;;  %v7692_v9 = vunpack.c.l.bf16 %v7733_v17 }
 0x418   : > { %6987 = vst [vmem:[%s11770_s21 + $0x10] sm:$0xff] %v6955_v26  ;;  %v6953_v1 = vmax.f32 %v6921_v51, 0.0  ;;  %v6924_v0 = vadd.f32 %v7669_v25, %v6860_v4  ;;  %v6858_v59 = vadd.f32 %v11756_v55, %v6819_v56  ;;  %v6824_v49 = vmul.f32 %v8514_v35, %v11750_v62 }
 0x419   : > { %v6664_v44 = vpop.f32.mrf.mxu1  ;;  %v7688_v4 = vunpack.c.l.bf16 %v7732_v5 }
 0x41a   : > { %6985 = vst [vmem:[%s11770_s21] sm:$0xff] %v6953_v1  ;;  %v6956_v10 = vmax.f32 %v6924_v0, 0.0  ;;  %v6922_v8 = vadd.f32 %v7665_v2, %v6858_v59  ;;  %v6863_v16 = vadd.f32 %v11756_v55, %v6824_v49  ;;  %v6822_v39 = vmul.f32 %v11750_v62, %v6664_v44 }
 0x41b   : > { %v8515_v42 = vpop.f32.mrf.mxu1  ;;  %v7693_v0 = vunpack.c.h.bf16 %v7733_v17 }
 0x41c   : > { %6988 = vst [vmem:[%s11770_s21 + $0x18] sm:$0xff] %v6956_v10  ;;  %v6954_v13 = vmax.f32 %v6922_v8, 0.0  ;;  %v6927_v27 = vadd.f32 %v7676_v58, %v6863_v16  ;;  %v6861_v31 = vadd.f32 %v11756_v55, %v6822_v39  ;;  %v6825_v43 = vmul.f32 %v8515_v42, %v11750_v62  ;;  %v7735_v10 = vld [vmem:[%s8999_s27 + $0x50] sm:$0xff]  }
 0x41d   : > { %v6667_v28 = vpop.f32.mrf.mxu1  ;;  %v7689_v16 = vunpack.c.h.bf16 %v7732_v5 }
 0x41e   : > { %6986 = vst [vmem:[%s11770_s21 + $0x8] sm:$0xff] %v6954_v13  ;;  %v6959_v18 = vmax.f32 %v6927_v27, 0.0  ;;  %v6925_v38 = vadd.f32 %v7672_v23, %v6861_v31  ;;  %v6864_v30 = vadd.f32 %v11756_v55, %v6825_v43  ;;  %v6823_v12 = vmul.f32 %v11750_v62, %v6667_v28  ;;  %v7734_v27 = vld [vmem:[%s8999_s27 + $0x48] sm:$0xff]  }
 0x41f   : > { %v8518_v15 = vpop.f32.mrf.mxu1  ;;  %v7700_v43 = vunpack.c.l.bf16 %v7735_v10 }
 0x420   : > { %6991 = vst [vmem:[%s11770_s21 + $0x30] sm:$0xff] %v6959_v18  ;;  %v6957_v24 = vmax.f32 %v6925_v38, 0.0  ;;  %v6928_v32 = vadd.f32 %v7677_v37, %v6864_v30  ;;  %v6862_v45 = vadd.f32 %v11756_v55, %v6823_v12  ;;  %v6828_v47 = vmul.f32 %v8518_v15, %v11750_v62 }
 0x421   : > { %v6680_v33 = vpop.f32.mrf.mxu1  ;;  %v7696_v30 = vunpack.c.l.bf16 %v7734_v27 }
 0x422   : > { %6989 = vst [vmem:[%s11770_s21 + $0x20] sm:$0xff] %v6957_v24  ;;  %v6960_v63 = vmax.f32 %v6928_v32, 0.0  ;;  %v6926_v57 = vadd.f32 %v7673_v46, %v6862_v45  ;;  %v6867_v40 = vadd.f32 %v11756_v55, %v6828_v47  ;;  %v6826_v60 = vmul.f32 %v11750_v62, %v6680_v33 }
 0x423   : > { %v8519_v36 = vpop.f32.mrf.mxu1  ;;  %v7701_v32 = vunpack.c.h.bf16 %v7735_v10 }
 0x424   : > { %6992 = vst [vmem:[%s11770_s21 + $0x38] sm:$0xff] %v6960_v63  ;;  %v6958_v34 = vmax.f32 %v6926_v57, 0.0  ;;  %v6931_v53 = vadd.f32 %v7684_v21, %v6867_v40  ;;  %v6865_v52 = vadd.f32 %v11756_v55, %v6826_v60  ;;  %v6829_v7 = vmul.f32 %v8519_v36, %v11750_v62  ;;  %v7737_v63 = vld [vmem:[%s8999_s27 + $0x60] sm:$0xff]  }
 0x425   : > { %v6683_v3 = vpop.f32.mrf.mxu1  ;;  %v7697_v40 = vunpack.c.h.bf16 %v7734_v27 }
 0x426   : > { %6990 = vst [vmem:[%s11770_s21 + $0x28] sm:$0xff] %v6958_v34  ;;  %v6963_v61 = vmax.f32 %v6931_v53, 0.0  ;;  %v6929_v11 = vadd.f32 %v7680_v22, %v6865_v52  ;;  %v6868_v14 = vadd.f32 %v11756_v55, %v6829_v7  ;;  %v6827_v19 = vmul.f32 %v11750_v62, %v6683_v3  ;;  %v7736_v53 = vld [vmem:[%s8999_s27 + $0x58] sm:$0xff]  }
 0x427   : > { %v8522_v25 = vpop.f32.mrf.mxu1  ;;  %v7708_v7 = vunpack.c.l.bf16 %v7737_v63 }
 0x428   : > { %6995 = vst [vmem:[%s11770_s21 + $0x50] sm:$0xff] %v6963_v61  ;;  %v6961_v48 = vmax.f32 %v6929_v11, 0.0  ;;  %v6932_v41 = vadd.f32 %v7685_v54, %v6868_v14  ;;  %v6866_v2 = vadd.f32 %v11756_v55, %v6827_v19  ;;  %v6832_v26 = vmul.f32 %v8522_v25, %v11750_v62 }
 0x429   : > { %v6696_v51 = vpop.f32.mrf.mxu1  ;;  %v7704_v14 = vunpack.c.l.bf16 %v7736_v53 }
 0x42a   : > { %6993 = vst [vmem:[%s11770_s21 + $0x40] sm:$0xff] %v6961_v48  ;;  %v6964_v56 = vmax.f32 %v6932_v41, 0.0  ;;  %v6930_v29 = vadd.f32 %v7681_v50, %v6866_v2  ;;  %v6871_v35 = vadd.f32 %v11756_v55, %v6832_v26  ;;  %v6830_v58 = vmul.f32 %v11750_v62, %v6696_v51 }
 0x42b   : > { %v8523_v1 = vpop.f32.mrf.mxu1  ;;  %v7709_v41 = vunpack.c.h.bf16 %v7737_v63 }
 0x42c   : > { %6996 = vst [vmem:[%s11770_s21 + $0x58] sm:$0xff] %v6964_v56  ;;  %v6962_v59 = vmax.f32 %v6930_v29, 0.0  ;;  %v6935_v49 = vadd.f32 %v7692_v9, %v6871_v35  ;;  %v6869_v44 = vadd.f32 %v11756_v55, %v6830_v58  ;;  %v6833_v23 = vmul.f32 %v8523_v1, %v11750_v62  ;;  %v7739_v56 = vld [vmem:[%s8999_s27 + $0x70] sm:$0xff]  }
 0x42d   : > { %v6699_v8 = vpop.f32.mrf.mxu1  ;;  %v7705_v35 = vunpack.c.h.bf16 %v7736_v53 }
 0x42e   : > { %6994 = vst [vmem:[%s11770_s21 + $0x48] sm:$0xff] %v6962_v59  ;;  %v6967_v39 = vmax.f32 %v6935_v49, 0.0  ;;  %v6933_v42 = vadd.f32 %v7688_v4, %v6869_v44  ;;  %v6872_v37 = vadd.f32 %v11756_v55, %v6833_v23  ;;  %v6831_v13 = vmul.f32 %v11750_v62, %v6699_v8  ;;  %v7738_v49 = vld [vmem:[%s8999_s27 + $0x68] sm:$0xff]  }
 0x42f   : > { %v8526_v31 = vpop.f32.mrf.mxu1  ;;  %v7716_v23 = vunpack.c.l.bf16 %v7739_v56 }
 0x430   : > { %6999 = vst [vmem:[%s11770_s21 + $0x70] sm:$0xff] %v6967_v39  ;;  %v6965_v20 = vmax.f32 %v6933_v42, 0.0  ;;  %v6936_v28 = vadd.f32 %v7693_v0, %v6872_v37  ;;  %v6870_v46 = vadd.f32 %v11756_v55, %v6831_v13  ;;  %v6836_v18 = vmul.f32 %v8526_v31, %v11750_v62 }
 0x431   : > { %v6712_v38 = vpop.f32.mrf.mxu1  ;;  %v7712_v37 = vunpack.c.l.bf16 %v7738_v49 }
 0x432   : > { %6997 = vst [vmem:[%s11770_s21 + $0x60] sm:$0xff] %v6965_v20  ;;  %v6968_v12 = vmax.f32 %v6936_v28, 0.0  ;;  %v6934_v6 = vadd.f32 %v7689_v16, %v6870_v46  ;;  %v6875_v15 = vadd.f32 %v11756_v55, %v6836_v18  ;;  %v6834_v21 = vmul.f32 %v11750_v62, %v6712_v38 }
 0x433   : > { %v8527_v24 = vpop.f32.mrf.mxu1  ;;  %v7717_v28 = vunpack.c.h.bf16 %v7739_v56 }
 0x434   : > { %7000 = vst [vmem:[%s11770_s21 + $0x78] sm:$0xff] %v6968_v12  ;;  %v6966_v45 = vmax.f32 %v6934_v6, 0.0  ;;  %v6939_v47 = vadd.f32 %v7700_v43, %v6875_v15  ;;  %v6873_v33 = vadd.f32 %v11756_v55, %v6834_v21  ;;  %v6837_v22 = vmul.f32 %v8527_v24, %v11750_v62  ;;  %v7741_v12 = vld [vmem:[%s8999_s27 + $0x80] sm:$0xff]  }
 0x435   : > { %v6715_v57 = vpop.f32.mrf.mxu1  ;;  %v7713_v15 = vunpack.c.h.bf16 %v7738_v49 }
 0x436   : > { %6998 = vst [vmem:[%s11770_s21 + $0x68] sm:$0xff] %v6966_v45  ;;  %v6971_v60 = vmax.f32 %v6939_v47, 0.0  ;;  %v6937_v36 = vadd.f32 %v7696_v30, %v6873_v33  ;;  %v6876_v54 = vadd.f32 %v11756_v55, %v6837_v22  ;;  %v6835_v34 = vmul.f32 %v11750_v62, %v6715_v57  ;;  %v7740_v47 = vld [vmem:[%s8999_s27 + $0x78] sm:$0xff]   ;;  %s7661_s27 = sshll.u32 %s8861_s16, 12  ;;  %s8793_s16 = scalar_lea.vmem %s11878_s19, 4096 }
 0x437   : > { %v8530_v52 = vpop.f32.mrf.mxu1  ;;  %v7724_v22 = vunpack.c.l.bf16 %v7741_v12  ;;  %s11876_s24 = scalar_lea.hbm %s11939_s10, %s7661_s27  ;;  %p8794_p12 = scmp.ne.s32.totalorder %s11878_s19, %s8793_s16 }
 0x438   : > { %7003 = vst [vmem:[%s11770_s21 + $0x90] sm:$0xff] %v6971_v60  ;;  %v6969_v17 = vmax.f32 %v6937_v36, 0.0  ;;  %v6940_v3 = vadd.f32 %v7701_v32, %v6876_v54  ;;  %v6874_v50 = vadd.f32 %v11756_v55, %v6835_v34  ;;  %v6840_v61 = vmul.f32 %v8530_v52, %v11750_v62  ;;  %p8801_p2 = scmp.lt.s32.totalorder %s8799_s12, %s8793_s16 }
 0x439   : > { %v6728_v11 = vpop.f32.mrf.mxu1  ;;  %v7720_v54 = vunpack.c.l.bf16 %v7740_v47  ;;  %p8795_p13 = pnand %p8794_p12, %p8970_p4 }
 0x43a   : > { %7001 = vst [vmem:[%s11770_s21 + $0x80] sm:$0xff] %v6969_v17  ;;  %v6972_v19 = vmax.f32 %v6940_v3, 0.0  ;;  %v6938_v5 = vadd.f32 %v7697_v40, %v6874_v50  ;;  %v6879_v25 = vadd.f32 %v11756_v55, %v6840_v61  ;;  %v6838_v9 = vmul.f32 %v11750_v62, %v6728_v11  ;;  %p8802_p3 = por %p8801_p2, %p8800_p1 }
 0x43b   : > { %v8531_v48 = vpop.f32.mrf.mxu1  ;;  %v7725_v3 = vunpack.c.h.bf16 %v7741_v12  ;;  %p8796_p0 = pneg %p8795_p13 }
 0x43c   : > { %7004 = vst [vmem:[%s11770_s21 + $0x98] sm:$0xff] %v6972_v19  ;;  %v6970_v2 = vmax.f32 %v6938_v5, 0.0  ;;  %v6943_v26 = vadd.f32 %v7708_v7, %v6879_v25  ;;  %v6877_v51 = vadd.f32 %v11756_v55, %v6838_v9  ;;  %v6841_v4 = vmul.f32 %v8531_v48, %v11750_v62 }
 0x43d   : > { %v6731_v29 = vpop.f32.mrf.mxu1  ;;  %v7721_v5 = vunpack.c.h.bf16 %v7740_v47  ;;  %p8803_p5 = pnand %p8802_p3, %p8796_p0 }
 0x43e   : > { %7002 = vst [vmem:[%s11770_s21 + $0x88] sm:$0xff] %v6970_v2  ;;  %v6975_v58 = vmax.f32 %v6943_v26, 0.0  ;;  %v6941_v1 = vadd.f32 %v7704_v14, %v6877_v51  ;;  %v6880_v0 = vadd.f32 %v11756_v55, %v6841_v4  ;;  %v6839_v59 = vmul.f32 %v11750_v62, %v6731_v29 }
 0x43f   : > { %v8534_v44 = vpop.f32.mrf.mxu1 }
 0x440   : > { %7007 = vst [vmem:[%s11770_s21 + $0xb0] sm:$0xff] %v6975_v58  ;;  %v6973_v10 = vmax.f32 %v6941_v1, 0.0  ;;  %v6944_v8 = vadd.f32 %v7709_v41, %v6880_v0  ;;  %v6878_v16 = vadd.f32 %v11756_v55, %v6839_v59  ;;  %v6844_v39 = vmul.f32 %v8534_v44, %v11750_v62 }
 0x441   : > { %v6744_v42 = vpop.f32.mrf.mxu1 }
 0x442   : > { %7005 = vst [vmem:[%s11770_s21 + $0xa0] sm:$0xff] %v6973_v10  ;;  %v6976_v13 = vmax.f32 %v6944_v8, 0.0  ;;  %v6942_v27 = vadd.f32 %v7705_v35, %v6878_v16  ;;  %v6883_v31 = vadd.f32 %v11756_v55, %v6844_v39  ;;  %v6842_v43 = vmul.f32 %v11750_v62, %v6744_v42 }
 0x443   : > { %v8535_v20 = vpop.f32.mrf.mxu1 }
 0x444   : > { %7008 = vst [vmem:[%s11770_s21 + $0xb8] sm:$0xff] %v6976_v13  ;;  %v6974_v46 = vmax.f32 %v6942_v27, 0.0  ;;  %v6947_v18 = vadd.f32 %v7716_v23, %v6883_v31  ;;  %v6881_v38 = vadd.f32 %v11756_v55, %v6842_v43  ;;  %v6845_v30 = vmul.f32 %v8535_v20, %v11750_v62 }
 0x445   : > { %v6747_v6 = vpop.f32.mrf.mxu1 }
 0x446   : > { %7006 = vst [vmem:[%s11770_s21 + $0xa8] sm:$0xff] %v6974_v46  ;;  %v6979_v21 = vmax.f32 %v6947_v18, 0.0  ;;  %v6945_v24 = vadd.f32 %v7712_v37, %v6881_v38  ;;  %v6884_v32 = vadd.f32 %v11756_v55, %v6845_v30  ;;  %v6843_v45 = vmul.f32 %v11750_v62, %v6747_v6 }
 0x447   : > { %v8538_v33 = vpop.f32.mrf.mxu1 }
 0x448   : > { %7011 = vst [vmem:[%s11770_s21 + $0xd0] sm:$0xff] %v6979_v21  ;;  %v6977_v63 = vmax.f32 %v6945_v24, 0.0  ;;  %v6948_v57 = vadd.f32 %v7717_v28, %v6884_v32  ;;  %v6882_v40 = vadd.f32 %v11756_v55, %v6843_v45  ;;  %v6848_v60 = vmul.f32 %v8538_v33, %v11750_v62 }
 0x449   : > { %v6760_v36 = vpop.f32.mrf.mxu1 }
 0x44a   : > { %7009 = vst [vmem:[%s11770_s21 + $0xc0] sm:$0xff] %v6977_v63  ;;  %v6980_v34 = vmax.f32 %v6948_v57, 0.0  ;;  %v6946_v53 = vadd.f32 %v7713_v15, %v6882_v40  ;;  %v6887_v52 = vadd.f32 %v11756_v55, %v6848_v60  ;;  %v6846_v7 = vmul.f32 %v11750_v62, %v6760_v36 }
 0x44b   : > { %v8539_v17 = vpop.f32.mrf.mxu1 }
 0x44c   : > { %7012 = vst [vmem:[%s11770_s21 + $0xd8] sm:$0xff] %v6980_v34  ;;  %v6978_v50 = vmax.f32 %v6946_v53, 0.0  ;;  %v6951_v61 = vadd.f32 %v7724_v22, %v6887_v52  ;;  %v6885_v11 = vadd.f32 %v11756_v55, %v6846_v7  ;;  %v6849_v14 = vmul.f32 %v8539_v17, %v11750_v62 }
 0x44d   : > { %v6763_v19 = vpop.f32.mrf.mxu1 }
 0x44e   : > { %7010 = vst [vmem:[%s11770_s21 + $0xc8] sm:$0xff] %v6978_v50  ;;  %v6983_v25 = vmax.f32 %v6951_v61, 0.0  ;;  %v6949_v9 = vadd.f32 %v7720_v54, %v6885_v11  ;;  %v6888_v48 = vadd.f32 %v11756_v55, %v6849_v14  ;;  %v6847_v41 = vmul.f32 %v11750_v62, %v6763_v19 }
 0x450   : > { %7015 = vst [vmem:[%s11770_s21 + $0xf0] sm:$0xff] %v6983_v25  ;;  %v6981_v2 = vmax.f32 %v6949_v9, 0.0  ;;  %v6952_v26 = vadd.f32 %v7725_v3, %v6888_v48  ;;  %v6886_v51 = vadd.f32 %v11756_v55, %v6847_v41 }
 0x452   : > { %7013 = vst [vmem:[%s11770_s21 + $0xe0] sm:$0xff] %v6981_v2  ;;  %v6984_v4 = vmax.f32 %v6952_v26, 0.0  ;;  %v6950_v56 = vadd.f32 %v7721_v5, %v6886_v51 }
 0x454   : > { %7016 = vst [vmem:[%s11770_s21 + $0xf8] sm:$0xff] %v6984_v4  ;;  %v6982_v62 = vmax.f32 %v6950_v56, 0.0 }
 0x456   : > { %7014 = vst [vmem:[%s11770_s21 + $0xe8] sm:$0xff] %v6982_v62 }
 0x457   : > { %8806 = shalt.err (!%p8803_p5)
}
 0x458   : > { %s8807_s29 = scalar_lea.hbm %s11876_s24, 4096  ;;  %s8811_s20 = scalar_lea.hbm %s11939_s10, 8192 }
 0x459   : > { %p8808_p6 = scmp.ne.s32.totalorder %s11876_s24, %s8807_s29  ;;  %p8812_p10 = scmp.lt.s32.totalorder %s11876_s24, %s11939_s10 }
 0x45a   : > { %p8813_p11 = scmp.lt.s32.totalorder %s8811_s20, %s8807_s29 }
 0x45b   : > { %p8809_p7 = pnand %p8808_p6, %p8970_p4 }
 0x45c   : > { %p8814_p12 = por %p8813_p11, %p8812_p10 }
 0x45d   : > { %p8810_p9 = pneg %p8809_p7 }
 0x45f   : > { %p8815_p13 = pnand %p8814_p12, %p8810_p9 }
 0x461   : > { %8818 = shalt.err (!%p8815_p13)
}
 0x462   : > { %s8873_s16 = smov 128   ;;  %s8874_s11 = smov 8  }
 0x463   : > { %8557 = dma.vmem_to_hbm [thread:$0]  (%p8970_p4), %s11878_s19, 4096, %s11876_s24, %s11884_s28, %s8873_s16, %s8873_s16, %s8874_s11  }
 0x464 PF: > { %p8563_p0 = scmp.ge.s32.totalorder %s8869_s18, 2  ;;  %s7049_s12 = sand.u32 1, %s8849_s13  }
 0x465   : > { %s7050_s29 = scalar_lea.sflag [#allocation4], %s7049_s12 }
 0x466   : > { %p8560_p1 = pnand %p8563_p0, %p8977_p8 }
 0x468   : > { %p8561_p2 = pneg %p8560_p1 }
 0x46a   : > { %8844 = dma.done.wait (%p8561_p2), %s7050_s29, 4096  }
 0x46b   : > { %8846 = vsyncadd (%p8561_p2), %s7050_s29, 4294963200  ;;  %s23_s18 = sadd.s32 1, %s8869_s18   ;;  %s12170_s23 = sld [smem:[#allocation6_spill]] }
 0x46c   : > { %p20_p3 = scmp.ge.s32.totalorder %s23_s18, 4   ;;  %s12171_s13 = smov %s8853_s14 }
 0x46d   : > { %s12172_s14 = smov %s8857_s15  ;;  %s12173_s15 = smov %s8983_s26 }
 0x46e   : > { %s12174_s16 = smov %s8865_s17  ;;  %22 = sbr.rel (!%p20_p3) target bundleno = 4 (0x4), region = 112 }
 0x471   : > { %s12175_s17 = smov %s12170_s23 }
 0x473   :  { %7055 = vsyncpa [#allocation4], 1 }
 0x474   :  { %7057 = vsyncpa [#allocation4 + $0x1], 1 }

</bundles_post_ra>
